<compile_context>
chip_gen: v7x
topology: tpu7x:2x2x1
jax: 0.10.0
libtpu: 0.0.40
codegen_flags: <defaults>
</compile_context>

<pallas_src>
import jax
import jax.numpy as jnp
from jax.experimental import pallas as pl
from jax.experimental.pallas import tpu as pltpu

# Module hyperparameters (defaults of PointWiseConvolutionBatch.__init__)
C_IN = 1
C_OUT = 9
KERNEL_SIZE = 2
NUM_CELLS = KERNEL_SIZE * 8  # 16
RADIUS = 0.1


def _round_up(x, m):
    return (x + m - 1) // m * m


def _make_kernel(num_cells, c_in, c_out, tile_i, mxu_dtype):
    """Unified kernel for any c_in: MXU mask-matmul reduction + fused conv."""

    def kernel(cells_ref, attr_ref, w_ref, b_ref, out_ref, acc_ref):
        j = pl.program_id(2)

        @pl.when(j == 0)
        def _init():
            acc_ref[...] = jnp.zeros_like(acc_ref)

        # cells block: (tile_j, tile_i) int8 -- neighbour index j on sublanes
        # (the contraction dim), point index i on lanes.
        cells = cells_ref[...].astype(jnp.int32)          # safe i8 -> i32 widen
        attr_aug = attr_ref[...]                          # (rows, tile_j), rows = rup(c_in+1, 8)

        for q in range(num_cells):                        # static unroll
            mask = (cells == q).astype(mxu_dtype)         # (tile_j, tile_i); -1 never matches
            # Rows [0, c_in) = per-cell attribute sums, row c_in = per-cell count
            # (ones row of attr_aug).  Reduction over neighbours done on the MXU.
            part = jnp.dot(attr_aug, mask,
                           preferred_element_type=jnp.float32)   # (rows, tile_i)
            acc_ref[q] += part

        @pl.when(j == pl.num_programs(2) - 1)
        def _finalize():
            w = w_ref[...]                                # (num_cells, c_out, c_in) f32
            out = jnp.broadcast_to(b_ref[...], (c_out, tile_i)).astype(jnp.float32)
            for q in range(num_cells):
                blk = acc_ref[q]                          # (rows, tile_i) f32
                cnt = blk[c_in:c_in + 1, :]               # (1, tile_i)
                # Cold path (once per output tile): exact reciprocal; empty cell
                # -> cnt = 0 -> divide by 1 -> avg = 0 (matches the module).
                inv = pl.reciprocal(jnp.maximum(cnt, 1.0), approx=False)
                for c in range(c_in):
                    avg = blk[c:c + 1, :] * inv           # (1, tile_i)
                    # Conv fused as a broadcast FMA: (c_out,1)*(1,tile_i).
                    out = out + w[q, :, c:c + 1] * avg
            out_ref[...] = out                            # lane-dense (c_out, tile_i) store

    return kernel


def pointwise_convolution_batch(cells, attributes, weight, bias, *,
                                tile_i=256, tile_j=256,
                                mxu_dtype=jnp.bfloat16):
    """
    cells:      (B, N, N) int  cells[b, i, j] = kernel-cell index of point j relative
                to point i (in [0, k*8)) or -1 if outside the radius.
    attributes: (B, N, c_in) float
    weight:     (c_out, c_in, k*8) float  (Conv1d weight)
    bias:       (c_out,) float
    returns:    (B, N, c_out) float32  == PyTorch `out_atributes`
    """
    b_dim, n, n2 = cells.shape
    assert n == n2, "cells must be (B, N, N)"
    c_out, c_in, num_cells = weight.shape
    assert tile_i % 128 == 0 and tile_j % 128 == 0

    tile_i = min(tile_i, _round_up(n, 128))
    tile_j = min(tile_j, _round_up(n, 128))
    np_i = _round_up(n, tile_i)
    np_j = _round_up(n, tile_j)
    rows = _round_up(c_in + 1, 8)            # attrs + ones (+ zero pad to 8 sublanes)

    # Neighbour axis j on sublanes (contraction), point axis i on lanes.
    cells_t = jnp.transpose(cells, (0, 2, 1)).astype(jnp.int8)        # (B, Nj, Ni)
    if np_i != n or np_j != n:
        # Pad with -1: padded neighbours never match a cell (no spurious counts);
        # padded points only produce output columns that are sliced away below.
        cells_t = jnp.pad(cells_t, ((0, 0), (0, np_j - n), (0, np_i - n)),
                          constant_values=-1)

    aug = jnp.concatenate(
        [attributes.astype(jnp.float32),
         jnp.ones((b_dim, n, 1), jnp.float32),
         jnp.zeros((b_dim, n, rows - c_in - 1), jnp.float32)], axis=-1)  # (B, N, rows)
    attr_t = jnp.transpose(aug, (0, 2, 1)).astype(mxu_dtype)             # (B, rows, N)
    if np_j != n:
        attr_t = jnp.pad(attr_t, ((0, 0), (0, 0), (0, np_j - n)))

    # weight[o, c, q] -> (q, o, c): the finalize loop reads a (c_out, c_in) slab per q.
    w_in = jnp.transpose(weight, (2, 0, 1)).astype(jnp.float32)          # (Q, c_out, c_in)
    b_in = bias.reshape(c_out, 1).astype(jnp.float32)

    grid = (b_dim, np_i // tile_i, np_j // tile_j)

    cost = pl.CostEstimate(
        flops=int(2 * b_dim * np_i * np_j * num_cells * rows),
        transcendentals=0,
        bytes_accessed=int(cells_t.size * cells_t.dtype.itemsize
                           + attr_t.size * attr_t.dtype.itemsize
                           + b_dim * np_i * c_out * 4),
    )

    kernel = _make_kernel(num_cells, c_in, c_out, tile_i, mxu_dtype)

    out_t = pl.pallas_call(
        kernel,
        out_shape=jax.ShapeDtypeStruct((b_dim, c_out, np_i), jnp.float32),
        grid=grid,
        in_specs=[
            pl.BlockSpec((None, tile_j, tile_i), lambda b, i, j: (b, j, i)),   # cells^T tile
            pl.BlockSpec((None, rows, tile_j), lambda b, i, j: (b, 0, j)),     # [attr;1]^T tile
            pl.BlockSpec((num_cells, c_out, c_in), lambda b, i, j: (0, 0, 0)),
            pl.BlockSpec((c_out, 1), lambda b, i, j: (0, 0)),
        ],
        out_specs=pl.BlockSpec((None, c_out, tile_i), lambda b, i, j: (b, 0, i)),
        scratch_shapes=[pltpu.VMEM((num_cells, rows, tile_i), jnp.float32)],
        compiler_params=pltpu.CompilerParams(
            dimension_semantics=("parallel", "parallel", "arbitrary"),
            vmem_limit_bytes=32 * 1024 * 1024),
        cost_estimate=cost,
    )(cells_t, attr_t, w_in, b_in)

    return jnp.transpose(out_t[:, :, :n], (0, 2, 1))      # (B, N, c_out)


def sort_in_grid_surrogate(points, radius, k):
    # TODO(synk): `sort_in_grid.forward` is a custom CUDA extension not included in the
    # module source; this deterministic surrogate bins each neighbour j of point i into
    # one of k*8 cells (8 octants x k radial shells within `radius`), -1 outside.
    diff = points[..., None, :, :] - points[..., :, None, :]     # (B, N, N, 3): j rel. to i
    dist = jnp.sqrt(jnp.sum(diff * diff, axis=-1))               # (B, N, N)
    octant = ((diff[..., 0] >= 0).astype(jnp.int32) * 4
              + (diff[..., 1] >= 0).astype(jnp.int32) * 2
              + (diff[..., 2] >= 0).astype(jnp.int32))
    shell = jnp.minimum((dist / (radius / k)).astype(jnp.int32), k - 1)
    cell = shell * 8 + octant
    return jnp.where(dist <= radius, cell, -1).astype(jnp.int8)


def _reference(cells, attributes, w, b):
    """Pure-JAX reference of the same semantics (for verification)."""
    num_cells = w.shape[2]
    onehot = (cells[..., None].astype(jnp.int32)
              == jnp.arange(num_cells)).astype(jnp.float32)          # (B, N, N, Q)
    cnt = onehot.sum(axis=2)                                         # (B, N, Q)
    sums = jnp.einsum("bijq,bjc->biqc", onehot, attributes,
                      precision="highest")                           # (B, N, Q, c_in)
    avg = jnp.where(cnt[..., None] > 0,
                    sums / jnp.maximum(cnt[..., None], 1.0), 0.0)
    return jnp.einsum("biqc,ocq->bio", avg, w, precision="highest") + b


if __name__ == "__main__":
    key = jax.random.PRNGKey(0)
    kp, ka, kw, kb = jax.random.split(key, 4)

    B, N = 2, 256
    points = jax.random.uniform(kp, (B, N, 3), dtype=jnp.float32) * 0.3
    attributes = jax.random.normal(ka, (B, N, C_IN), dtype=jnp.float32)

    # Conv1d(c_in, c_out, kernel_size=NUM_CELLS) params, PyTorch default init.
    fan_in = C_IN * NUM_CELLS
    bound = 1.0 / (fan_in ** 0.5)
    w = jax.random.uniform(kw, (C_OUT, C_IN, NUM_CELLS), dtype=jnp.float32,
                           minval=-bound, maxval=bound)
    b = jax.random.uniform(kb, (C_OUT,), dtype=jnp.float32,
                           minval=-bound, maxval=bound)

    cells = sort_in_grid_surrogate(points, RADIUS, KERNEL_SIZE)      # (B, N, N) int8

    # References computed on bf16-rounded attributes isolate kernel correctness
    # from the (intended) bf16 MXU quantization of the attribute values.
    def _bf16_round(x):
        return x.astype(jnp.bfloat16).astype(jnp.float32)

    # Default config (c_in = 1): 128-wide tiles -> grid (2, 2, 2), j reduction exercised.
    out = pointwise_convolution_batch(cells, attributes, w, b,
                                      tile_i=128, tile_j=128)
    out = jax.block_until_ready(out)
    assert out.shape == (B, N, C_OUT)
    ref = _reference(cells, _bf16_round(attributes), w, b)
    assert jnp.allclose(out, ref, atol=1e-3, rtol=1e-3), "mismatch vs reference (c_in=1)"

    # General c_in > 1 path (same kernel), default 256 tiles.
    C_IN2, C_OUT2 = 4, 8
    ka2, kw2, kb2 = jax.random.split(jax.random.PRNGKey(1), 3)
    attributes2 = jax.random.normal(ka2, (B, N, C_IN2), dtype=jnp.float32)
    bound2 = 1.0 / ((C_IN2 * NUM_CELLS) ** 0.5)
    w2 = jax.random.uniform(kw2, (C_OUT2, C_IN2, NUM_CELLS), dtype=jnp.float32,
                            minval=-bound2, maxval=bound2)
    b2 = jax.random.uniform(kb2, (C_OUT2,), dtype=jnp.float32,
                            minval=-bound2, maxval=bound2)
    out2 = jax.block_until_ready(
        pointwise_convolution_batch(cells, attributes2, w2, b2))
    ref2 = _reference(cells, _bf16_round(attributes2), w2, b2)
    assert jnp.allclose(out2, ref2, atol=1e-3, rtol=1e-3), "mismatch vs reference (c_in>1)"

    print("KERNEL_OK")
</pallas_src>

<mosaic_0001>
module attributes {stable_mosaic.version = 11 : i64} {
  func.func @kernel(%arg0: i32, %arg1: i32, %arg2: i32, %arg3: memref<1x128x128xi8, #tpu.memory_space<vmem>>, %arg4: memref<1x8x128xbf16, #tpu.memory_space<vmem>>, %arg5: memref<16x9x1xf32, #tpu.memory_space<vmem>>, %arg6: memref<9x1xf32, #tpu.memory_space<vmem>>, %arg7: memref<1x9x128xf32, #tpu.memory_space<vmem>>, %arg8: memref<16x8x128xf32, #tpu.memory_space<vmem>>) attributes {dimension_semantics = [#tpu.dimension_semantics<parallel>, #tpu.dimension_semantics<parallel>, #tpu.dimension_semantics<arbitrary>], iteration_bounds = array<i64: 2, 2, 2>, scalar_prefetch = 0 : i64, scratch_operands = 1 : i64, tpu.core_type = #tpu.core_type<tc>, window_params = [{transform_indices = @transform_0, window_bounds = array<i64: 1, 128, 128>}, {transform_indices = @transform_1, window_bounds = array<i64: 1, 8, 128>}, {pipeline_mode = #tpu.pipeline_mode<synchronous>, transform_indices = @transform_2, window_bounds = array<i64: 16, 9, 1>}, {pipeline_mode = #tpu.pipeline_mode<synchronous>, transform_indices = @transform_3, window_bounds = array<i64: 9, 1>}, {transform_indices = @transform_4, window_bounds = array<i64: 1, 9, 128>}]} {
    %c0_i32 = arith.constant 0 : i32
    %0 = arith.cmpi eq, %arg2, %c0_i32 : i32
    %1 = arith.extui %0 : i1 to i32
    %c0_i32_0 = arith.constant 0 : i32
    %2 = arith.cmpi ne, %1, %c0_i32_0 : i32
    scf.if %2 {
      %cst_105 = arith.constant 0.000000e+00 : f32
      %203 = vector.broadcast %cst_105 : f32 to vector<16x8x128xf32>
      %c0_106 = arith.constant 0 : index
      %c0_107 = arith.constant 0 : index
      %c0_108 = arith.constant 0 : index
      %204 = vector.load %arg8[%c0_106, %c0_107, %c0_108] : memref<16x8x128xf32, #tpu.memory_space<vmem>>, vector<16x8x128xf32>
      tpu.vector_store %arg8[%c0_106, %c0_107, %c0_108], %203 {strides = array<i32>} : memref<16x8x128xf32, #tpu.memory_space<vmem>>, vector<16x8x128xf32>,
    } else {
    }
    %c0 = arith.constant 0 : index
    %c0_1 = arith.constant 0 : index
    %c0_2 = arith.constant 0 : index
    %3 = vector.load %arg3[%c0, %c0_1, %c0_2] : memref<1x128x128xi8, #tpu.memory_space<vmem>>, vector<1x128x128xi8>
    %4 = vector.shape_cast %3 : vector<1x128x128xi8> to vector<128x128xi8>
    %5 = arith.extsi %4 : vector<128x128xi8> to vector<128x128xi32>
    %c0_3 = arith.constant 0 : index
    %c0_4 = arith.constant 0 : index
    %c0_5 = arith.constant 0 : index
    %6 = vector.load %arg4[%c0_3, %c0_4, %c0_5] : memref<1x8x128xbf16, #tpu.memory_space<vmem>>, vector<1x8x128xbf16>
    %7 = vector.shape_cast %6 : vector<1x8x128xbf16> to vector<8x128xbf16>
    %c0_i32_6 = arith.constant 0 : i32
    %8 = vector.broadcast %c0_i32_6 : i32 to vector<128x128xi32>
    %9 = arith.cmpi eq, %5, %8 : vector<128x128xi32>
    %10 = arith.extui %9 : vector<128x128xi1> to vector<128x128xi32>
    %11 = arith.sitofp %10 : vector<128x128xi32> to vector<128x128xf32>
    %12 = arith.truncf %11 : vector<128x128xf32> to vector<128x128xbf16>
    %cst = arith.constant dense<0.000000e+00> : vector<8x128xf32>
    %13 = tpu.matmul %7, %12, %cst {dimension_numbers = #tpu.dot_dimension_numbers<[1], [0], [0], [1], [0, 0, 1, 1], [], []>} : vector<8x128xbf16>, vector<128x128xbf16>, vector<8x128xf32> -> vector<8x128xf32>
    %c0_7 = arith.constant 0 : index
    %c0_8 = arith.constant 0 : index
    %c0_9 = arith.constant 0 : index
    %14 = vector.load %arg8[%c0_7, %c0_8, %c0_9] : memref<16x8x128xf32, #tpu.memory_space<vmem>>, vector<1x8x128xf32>
    %15 = vector.shape_cast %14 : vector<1x8x128xf32> to vector<8x128xf32>
    %16 = arith.addf %15, %13 : vector<8x128xf32>
    %c0_10 = arith.constant 0 : index
    %c0_11 = arith.constant 0 : index
    %c0_12 = arith.constant 0 : index
    %17 = vector.load %arg8[%c0_10, %c0_11, %c0_12] : memref<16x8x128xf32, #tpu.memory_space<vmem>>, vector<1x8x128xf32>
    %18 = vector.shape_cast %17 : vector<1x8x128xf32> to vector<8x128xf32>
    %19 = vector.shape_cast %16 : vector<8x128xf32> to vector<1x8x128xf32>
    tpu.vector_store %arg8[%c0_10, %c0_11, %c0_12], %19 {strides = array<i32>} : memref<16x8x128xf32, #tpu.memory_space<vmem>>, vector<1x8x128xf32>,
    %c1_i32 = arith.constant 1 : i32
    %20 = vector.broadcast %c1_i32 : i32 to vector<128x128xi32>
    %21 = arith.cmpi eq, %5, %20 : vector<128x128xi32>
    %22 = arith.extui %21 : vector<128x128xi1> to vector<128x128xi32>
    %23 = arith.sitofp %22 : vector<128x128xi32> to vector<128x128xf32>
    %24 = arith.truncf %23 : vector<128x128xf32> to vector<128x128xbf16>
    %cst_13 = arith.constant dense<0.000000e+00> : vector<8x128xf32>
    %25 = tpu.matmul %7, %24, %cst_13 {dimension_numbers = #tpu.dot_dimension_numbers<[1], [0], [0], [1], [0, 0, 1, 1], [], []>} : vector<8x128xbf16>, vector<128x128xbf16>, vector<8x128xf32> -> vector<8x128xf32>
    %c1 = arith.constant 1 : index
    %c0_14 = arith.constant 0 : index
    %c0_15 = arith.constant 0 : index
    %26 = vector.load %arg8[%c1, %c0_14, %c0_15] : memref<16x8x128xf32, #tpu.memory_space<vmem>>, vector<1x8x128xf32>
    %27 = vector.shape_cast %26 : vector<1x8x128xf32> to vector<8x128xf32>
    %28 = arith.addf %27, %25 : vector<8x128xf32>
    %c1_16 = arith.constant 1 : index
    %c0_17 = arith.constant 0 : index
    %c0_18 = arith.constant 0 : index
    %29 = vector.load %arg8[%c1_16, %c0_17, %c0_18] : memref<16x8x128xf32, #tpu.memory_space<vmem>>, vector<1x8x128xf32>
    %30 = vector.shape_cast %29 : vector<1x8x128xf32> to vector<8x128xf32>
    %31 = vector.shape_cast %28 : vector<8x128xf32> to vector<1x8x128xf32>
    tpu.vector_store %arg8[%c1_16, %c0_17, %c0_18], %31 {strides = array<i32>} : memref<16x8x128xf32, #tpu.memory_space<vmem>>, vector<1x8x128xf32>,
    %c2_i32 = arith.constant 2 : i32
    %32 = vector.broadcast %c2_i32 : i32 to vector<128x128xi32>
    %33 = arith.cmpi eq, %5, %32 : vector<128x128xi32>
    %34 = arith.extui %33 : vector<128x128xi1> to vector<128x128xi32>
    %35 = arith.sitofp %34 : vector<128x128xi32> to vector<128x128xf32>
    %36 = arith.truncf %35 : vector<128x128xf32> to vector<128x128xbf16>
    %cst_19 = arith.constant dense<0.000000e+00> : vector<8x128xf32>
    %37 = tpu.matmul %7, %36, %cst_19 {dimension_numbers = #tpu.dot_dimension_numbers<[1], [0], [0], [1], [0, 0, 1, 1], [], []>} : vector<8x128xbf16>, vector<128x128xbf16>, vector<8x128xf32> -> vector<8x128xf32>
    %c2 = arith.constant 2 : index
    %c0_20 = arith.constant 0 : index
    %c0_21 = arith.constant 0 : index
    %38 = vector.load %arg8[%c2, %c0_20, %c0_21] : memref<16x8x128xf32, #tpu.memory_space<vmem>>, vector<1x8x128xf32>
    %39 = vector.shape_cast %38 : vector<1x8x128xf32> to vector<8x128xf32>
    %40 = arith.addf %39, %37 : vector<8x128xf32>
    %c2_22 = arith.constant 2 : index
    %c0_23 = arith.constant 0 : index
    %c0_24 = arith.constant 0 : index
    %41 = vector.load %arg8[%c2_22, %c0_23, %c0_24] : memref<16x8x128xf32, #tpu.memory_space<vmem>>, vector<1x8x128xf32>
    %42 = vector.shape_cast %41 : vector<1x8x128xf32> to vector<8x128xf32>
    %43 = vector.shape_cast %40 : vector<8x128xf32> to vector<1x8x128xf32>
    tpu.vector_store %arg8[%c2_22, %c0_23, %c0_24], %43 {strides = array<i32>} : memref<16x8x128xf32, #tpu.memory_space<vmem>>, vector<1x8x128xf32>,
    %c3_i32 = arith.constant 3 : i32
    %44 = vector.broadcast %c3_i32 : i32 to vector<128x128xi32>
    %45 = arith.cmpi eq, %5, %44 : vector<128x128xi32>
    %46 = arith.extui %45 : vector<128x128xi1> to vector<128x128xi32>
    %47 = arith.sitofp %46 : vector<128x128xi32> to vector<128x128xf32>
    %48 = arith.truncf %47 : vector<128x128xf32> to vector<128x128xbf16>
    %cst_25 = arith.constant dense<0.000000e+00> : vector<8x128xf32>
    %49 = tpu.matmul %7, %48, %cst_25 {dimension_numbers = #tpu.dot_dimension_numbers<[1], [0], [0], [1], [0, 0, 1, 1], [], []>} : vector<8x128xbf16>, vector<128x128xbf16>, vector<8x128xf32> -> vector<8x128xf32>
    %c3 = arith.constant 3 : index
    %c0_26 = arith.constant 0 : index
    %c0_27 = arith.constant 0 : index
    %50 = vector.load %arg8[%c3, %c0_26, %c0_27] : memref<16x8x128xf32, #tpu.memory_space<vmem>>, vector<1x8x128xf32>
    %51 = vector.shape_cast %50 : vector<1x8x128xf32> to vector<8x128xf32>
    %52 = arith.addf %51, %49 : vector<8x128xf32>
    %c3_28 = arith.constant 3 : index
    %c0_29 = arith.constant 0 : index
    %c0_30 = arith.constant 0 : index
    %53 = vector.load %arg8[%c3_28, %c0_29, %c0_30] : memref<16x8x128xf32, #tpu.memory_space<vmem>>, vector<1x8x128xf32>
    %54 = vector.shape_cast %53 : vector<1x8x128xf32> to vector<8x128xf32>
    %55 = vector.shape_cast %52 : vector<8x128xf32> to vector<1x8x128xf32>
    tpu.vector_store %arg8[%c3_28, %c0_29, %c0_30], %55 {strides = array<i32>} : memref<16x8x128xf32, #tpu.memory_space<vmem>>, vector<1x8x128xf32>,
    %c4_i32 = arith.constant 4 : i32
    %56 = vector.broadcast %c4_i32 : i32 to vector<128x128xi32>
    %57 = arith.cmpi eq, %5, %56 : vector<128x128xi32>
    %58 = arith.extui %57 : vector<128x128xi1> to vector<128x128xi32>
    %59 = arith.sitofp %58 : vector<128x128xi32> to vector<128x128xf32>
    %60 = arith.truncf %59 : vector<128x128xf32> to vector<128x128xbf16>
    %cst_31 = arith.constant dense<0.000000e+00> : vector<8x128xf32>
    %61 = tpu.matmul %7, %60, %cst_31 {dimension_numbers = #tpu.dot_dimension_numbers<[1], [0], [0], [1], [0, 0, 1, 1], [], []>} : vector<8x128xbf16>, vector<128x128xbf16>, vector<8x128xf32> -> vector<8x128xf32>
    %c4 = arith.constant 4 : index
    %c0_32 = arith.constant 0 : index
    %c0_33 = arith.constant 0 : index
    %62 = vector.load %arg8[%c4, %c0_32, %c0_33] : memref<16x8x128xf32, #tpu.memory_space<vmem>>, vector<1x8x128xf32>
    %63 = vector.shape_cast %62 : vector<1x8x128xf32> to vector<8x128xf32>
    %64 = arith.addf %63, %61 : vector<8x128xf32>
    %c4_34 = arith.constant 4 : index
    %c0_35 = arith.constant 0 : index
    %c0_36 = arith.constant 0 : index
    %65 = vector.load %arg8[%c4_34, %c0_35, %c0_36] : memref<16x8x128xf32, #tpu.memory_space<vmem>>, vector<1x8x128xf32>
    %66 = vector.shape_cast %65 : vector<1x8x128xf32> to vector<8x128xf32>
    %67 = vector.shape_cast %64 : vector<8x128xf32> to vector<1x8x128xf32>
    tpu.vector_store %arg8[%c4_34, %c0_35, %c0_36], %67 {strides = array<i32>} : memref<16x8x128xf32, #tpu.memory_space<vmem>>, vector<1x8x128xf32>,
    %c5_i32 = arith.constant 5 : i32
    %68 = vector.broadcast %c5_i32 : i32 to vector<128x128xi32>
    %69 = arith.cmpi eq, %5, %68 : vector<128x128xi32>
    %70 = arith.extui %69 : vector<128x128xi1> to vector<128x128xi32>
    %71 = arith.sitofp %70 : vector<128x128xi32> to vector<128x128xf32>
    %72 = arith.truncf %71 : vector<128x128xf32> to vector<128x128xbf16>
    %cst_37 = arith.constant dense<0.000000e+00> : vector<8x128xf32>
    %73 = tpu.matmul %7, %72, %cst_37 {dimension_numbers = #tpu.dot_dimension_numbers<[1], [0], [0], [1], [0, 0, 1, 1], [], []>} : vector<8x128xbf16>, vector<128x128xbf16>, vector<8x128xf32> -> vector<8x128xf32>
    %c5 = arith.constant 5 : index
    %c0_38 = arith.constant 0 : index
    %c0_39 = arith.constant 0 : index
    %74 = vector.load %arg8[%c5, %c0_38, %c0_39] : memref<16x8x128xf32, #tpu.memory_space<vmem>>, vector<1x8x128xf32>
    %75 = vector.shape_cast %74 : vector<1x8x128xf32> to vector<8x128xf32>
    %76 = arith.addf %75, %73 : vector<8x128xf32>
    %c5_40 = arith.constant 5 : index
    %c0_41 = arith.constant 0 : index
    %c0_42 = arith.constant 0 : index
    %77 = vector.load %arg8[%c5_40, %c0_41, %c0_42] : memref<16x8x128xf32, #tpu.memory_space<vmem>>, vector<1x8x128xf32>
    %78 = vector.shape_cast %77 : vector<1x8x128xf32> to vector<8x128xf32>
    %79 = vector.shape_cast %76 : vector<8x128xf32> to vector<1x8x128xf32>
    tpu.vector_store %arg8[%c5_40, %c0_41, %c0_42], %79 {strides = array<i32>} : memref<16x8x128xf32, #tpu.memory_space<vmem>>, vector<1x8x128xf32>,
    %c6_i32 = arith.constant 6 : i32
    %80 = vector.broadcast %c6_i32 : i32 to vector<128x128xi32>
    %81 = arith.cmpi eq, %5, %80 : vector<128x128xi32>
    %82 = arith.extui %81 : vector<128x128xi1> to vector<128x128xi32>
    %83 = arith.sitofp %82 : vector<128x128xi32> to vector<128x128xf32>
    %84 = arith.truncf %83 : vector<128x128xf32> to vector<128x128xbf16>
    %cst_43 = arith.constant dense<0.000000e+00> : vector<8x128xf32>
    %85 = tpu.matmul %7, %84, %cst_43 {dimension_numbers = #tpu.dot_dimension_numbers<[1], [0], [0], [1], [0, 0, 1, 1], [], []>} : vector<8x128xbf16>, vector<128x128xbf16>, vector<8x128xf32> -> vector<8x128xf32>
    %c6 = arith.constant 6 : index
    %c0_44 = arith.constant 0 : index
    %c0_45 = arith.constant 0 : index
    %86 = vector.load %arg8[%c6, %c0_44, %c0_45] : memref<16x8x128xf32, #tpu.memory_space<vmem>>, vector<1x8x128xf32>
    %87 = vector.shape_cast %86 : vector<1x8x128xf32> to vector<8x128xf32>
    %88 = arith.addf %87, %85 : vector<8x128xf32>
    %c6_46 = arith.constant 6 : index
    %c0_47 = arith.constant 0 : index
    %c0_48 = arith.constant 0 : index
    %89 = vector.load %arg8[%c6_46, %c0_47, %c0_48] : memref<16x8x128xf32, #tpu.memory_space<vmem>>, vector<1x8x128xf32>
    %90 = vector.shape_cast %89 : vector<1x8x128xf32> to vector<8x128xf32>
    %91 = vector.shape_cast %88 : vector<8x128xf32> to vector<1x8x128xf32>
    tpu.vector_store %arg8[%c6_46, %c0_47, %c0_48], %91 {strides = array<i32>} : memref<16x8x128xf32, #tpu.memory_space<vmem>>, vector<1x8x128xf32>,
    %c7_i32 = arith.constant 7 : i32
    %92 = vector.broadcast %c7_i32 : i32 to vector<128x128xi32>
    %93 = arith.cmpi eq, %5, %92 : vector<128x128xi32>
    %94 = arith.extui %93 : vector<128x128xi1> to vector<128x128xi32>
    %95 = arith.sitofp %94 : vector<128x128xi32> to vector<128x128xf32>
    %96 = arith.truncf %95 : vector<128x128xf32> to vector<128x128xbf16>
    %cst_49 = arith.constant dense<0.000000e+00> : vector<8x128xf32>
    %97 = tpu.matmul %7, %96, %cst_49 {dimension_numbers = #tpu.dot_dimension_numbers<[1], [0], [0], [1], [0, 0, 1, 1], [], []>} : vector<8x128xbf16>, vector<128x128xbf16>, vector<8x128xf32> -> vector<8x128xf32>
    %c7 = arith.constant 7 : index
    %c0_50 = arith.constant 0 : index
    %c0_51 = arith.constant 0 : index
    %98 = vector.load %arg8[%c7, %c0_50, %c0_51] : memref<16x8x128xf32, #tpu.memory_space<vmem>>, vector<1x8x128xf32>
    %99 = vector.shape_cast %98 : vector<1x8x128xf32> to vector<8x128xf32>
    %100 = arith.addf %99, %97 : vector<8x128xf32>
    %c7_52 = arith.constant 7 : index
    %c0_53 = arith.constant 0 : index
    %c0_54 = arith.constant 0 : index
    %101 = vector.load %arg8[%c7_52, %c0_53, %c0_54] : memref<16x8x128xf32, #tpu.memory_space<vmem>>, vector<1x8x128xf32>
    %102 = vector.shape_cast %101 : vector<1x8x128xf32> to vector<8x128xf32>
    %103 = vector.shape_cast %100 : vector<8x128xf32> to vector<1x8x128xf32>
    tpu.vector_store %arg8[%c7_52, %c0_53, %c0_54], %103 {strides = array<i32>} : memref<16x8x128xf32, #tpu.memory_space<vmem>>, vector<1x8x128xf32>,
    %c8_i32 = arith.constant 8 : i32
    %104 = vector.broadcast %c8_i32 : i32 to vector<128x128xi32>
    %105 = arith.cmpi eq, %5, %104 : vector<128x128xi32>
    %106 = arith.extui %105 : vector<128x128xi1> to vector<128x128xi32>
    %107 = arith.sitofp %106 : vector<128x128xi32> to vector<128x128xf32>
    %108 = arith.truncf %107 : vector<128x128xf32> to vector<128x128xbf16>
    %cst_55 = arith.constant dense<0.000000e+00> : vector<8x128xf32>
    %109 = tpu.matmul %7, %108, %cst_55 {dimension_numbers = #tpu.dot_dimension_numbers<[1], [0], [0], [1], [0, 0, 1, 1], [], []>} : vector<8x128xbf16>, vector<128x128xbf16>, vector<8x128xf32> -> vector<8x128xf32>
    %c8 = arith.constant 8 : index
    %c0_56 = arith.constant 0 : index
    %c0_57 = arith.constant 0 : index
    %110 = vector.load %arg8[%c8, %c0_56, %c0_57] : memref<16x8x128xf32, #tpu.memory_space<vmem>>, vector<1x8x128xf32>
    %111 = vector.shape_cast %110 : vector<1x8x128xf32> to vector<8x128xf32>
    %112 = arith.addf %111, %109 : vector<8x128xf32>
    %c8_58 = arith.constant 8 : index
    %c0_59 = arith.constant 0 : index
    %c0_60 = arith.constant 0 : index
    %113 = vector.load %arg8[%c8_58, %c0_59, %c0_60] : memref<16x8x128xf32, #tpu.memory_space<vmem>>, vector<1x8x128xf32>
    %114 = vector.shape_cast %113 : vector<1x8x128xf32> to vector<8x128xf32>
    %115 = vector.shape_cast %112 : vector<8x128xf32> to vector<1x8x128xf32>
    tpu.vector_store %arg8[%c8_58, %c0_59, %c0_60], %115 {strides = array<i32>} : memref<16x8x128xf32, #tpu.memory_space<vmem>>, vector<1x8x128xf32>,
    %c9_i32 = arith.constant 9 : i32
    %116 = vector.broadcast %c9_i32 : i32 to vector<128x128xi32>
    %117 = arith.cmpi eq, %5, %116 : vector<128x128xi32>
    %118 = arith.extui %117 : vector<128x128xi1> to vector<128x128xi32>
    %119 = arith.sitofp %118 : vector<128x128xi32> to vector<128x128xf32>
    %120 = arith.truncf %119 : vector<128x128xf32> to vector<128x128xbf16>
    %cst_61 = arith.constant dense<0.000000e+00> : vector<8x128xf32>
    %121 = tpu.matmul %7, %120, %cst_61 {dimension_numbers = #tpu.dot_dimension_numbers<[1], [0], [0], [1], [0, 0, 1, 1], [], []>} : vector<8x128xbf16>, vector<128x128xbf16>, vector<8x128xf32> -> vector<8x128xf32>
    %c9 = arith.constant 9 : index
    %c0_62 = arith.constant 0 : index
    %c0_63 = arith.constant 0 : index
    %122 = vector.load %arg8[%c9, %c0_62, %c0_63] : memref<16x8x128xf32, #tpu.memory_space<vmem>>, vector<1x8x128xf32>
    %123 = vector.shape_cast %122 : vector<1x8x128xf32> to vector<8x128xf32>
    %124 = arith.addf %123, %121 : vector<8x128xf32>
    %c9_64 = arith.constant 9 : index
    %c0_65 = arith.constant 0 : index
    %c0_66 = arith.constant 0 : index
    %125 = vector.load %arg8[%c9_64, %c0_65, %c0_66] : memref<16x8x128xf32, #tpu.memory_space<vmem>>, vector<1x8x128xf32>
    %126 = vector.shape_cast %125 : vector<1x8x128xf32> to vector<8x128xf32>
    %127 = vector.shape_cast %124 : vector<8x128xf32> to vector<1x8x128xf32>
    tpu.vector_store %arg8[%c9_64, %c0_65, %c0_66], %127 {strides = array<i32>} : memref<16x8x128xf32, #tpu.memory_space<vmem>>, vector<1x8x128xf32>,
    %c10_i32 = arith.constant 10 : i32
    %128 = vector.broadcast %c10_i32 : i32 to vector<128x128xi32>
    %129 = arith.cmpi eq, %5, %128 : vector<128x128xi32>
    %130 = arith.extui %129 : vector<128x128xi1> to vector<128x128xi32>
    %131 = arith.sitofp %130 : vector<128x128xi32> to vector<128x128xf32>
    %132 = arith.truncf %131 : vector<128x128xf32> to vector<128x128xbf16>
    %cst_67 = arith.constant dense<0.000000e+00> : vector<8x128xf32>
    %133 = tpu.matmul %7, %132, %cst_67 {dimension_numbers = #tpu.dot_dimension_numbers<[1], [0], [0], [1], [0, 0, 1, 1], [], []>} : vector<8x128xbf16>, vector<128x128xbf16>, vector<8x128xf32> -> vector<8x128xf32>
    %c10 = arith.constant 10 : index
    %c0_68 = arith.constant 0 : index
    %c0_69 = arith.constant 0 : index
    %134 = vector.load %arg8[%c10, %c0_68, %c0_69] : memref<16x8x128xf32, #tpu.memory_space<vmem>>, vector<1x8x128xf32>
    %135 = vector.shape_cast %134 : vector<1x8x128xf32> to vector<8x128xf32>
    %136 = arith.addf %135, %133 : vector<8x128xf32>
    %c10_70 = arith.constant 10 : index
    %c0_71 = arith.constant 0 : index
    %c0_72 = arith.constant 0 : index
    %137 = vector.load %arg8[%c10_70, %c0_71, %c0_72] : memref<16x8x128xf32, #tpu.memory_space<vmem>>, vector<1x8x128xf32>
    %138 = vector.shape_cast %137 : vector<1x8x128xf32> to vector<8x128xf32>
    %139 = vector.shape_cast %136 : vector<8x128xf32> to vector<1x8x128xf32>
    tpu.vector_store %arg8[%c10_70, %c0_71, %c0_72], %139 {strides = array<i32>} : memref<16x8x128xf32, #tpu.memory_space<vmem>>, vector<1x8x128xf32>,
    %c11_i32 = arith.constant 11 : i32
    %140 = vector.broadcast %c11_i32 : i32 to vector<128x128xi32>
    %141 = arith.cmpi eq, %5, %140 : vector<128x128xi32>
    %142 = arith.extui %141 : vector<128x128xi1> to vector<128x128xi32>
    %143 = arith.sitofp %142 : vector<128x128xi32> to vector<128x128xf32>
    %144 = arith.truncf %143 : vector<128x128xf32> to vector<128x128xbf16>
    %cst_73 = arith.constant dense<0.000000e+00> : vector<8x128xf32>
    %145 = tpu.matmul %7, %144, %cst_73 {dimension_numbers = #tpu.dot_dimension_numbers<[1], [0], [0], [1], [0, 0, 1, 1], [], []>} : vector<8x128xbf16>, vector<128x128xbf16>, vector<8x128xf32> -> vector<8x128xf32>
    %c11 = arith.constant 11 : index
    %c0_74 = arith.constant 0 : index
    %c0_75 = arith.constant 0 : index
    %146 = vector.load %arg8[%c11, %c0_74, %c0_75] : memref<16x8x128xf32, #tpu.memory_space<vmem>>, vector<1x8x128xf32>
    %147 = vector.shape_cast %146 : vector<1x8x128xf32> to vector<8x128xf32>
    %148 = arith.addf %147, %145 : vector<8x128xf32>
    %c11_76 = arith.constant 11 : index
    %c0_77 = arith.constant 0 : index
    %c0_78 = arith.constant 0 : index
    %149 = vector.load %arg8[%c11_76, %c0_77, %c0_78] : memref<16x8x128xf32, #tpu.memory_space<vmem>>, vector<1x8x128xf32>
    %150 = vector.shape_cast %149 : vector<1x8x128xf32> to vector<8x128xf32>
    %151 = vector.shape_cast %148 : vector<8x128xf32> to vector<1x8x128xf32>
    tpu.vector_store %arg8[%c11_76, %c0_77, %c0_78], %151 {strides = array<i32>} : memref<16x8x128xf32, #tpu.memory_space<vmem>>, vector<1x8x128xf32>,
    %c12_i32 = arith.constant 12 : i32
    %152 = vector.broadcast %c12_i32 : i32 to vector<128x128xi32>
    %153 = arith.cmpi eq, %5, %152 : vector<128x128xi32>
    %154 = arith.extui %153 : vector<128x128xi1> to vector<128x128xi32>
    %155 = arith.sitofp %154 : vector<128x128xi32> to vector<128x128xf32>
    %156 = arith.truncf %155 : vector<128x128xf32> to vector<128x128xbf16>
    %cst_79 = arith.constant dense<0.000000e+00> : vector<8x128xf32>
    %157 = tpu.matmul %7, %156, %cst_79 {dimension_numbers = #tpu.dot_dimension_numbers<[1], [0], [0], [1], [0, 0, 1, 1], [], []>} : vector<8x128xbf16>, vector<128x128xbf16>, vector<8x128xf32> -> vector<8x128xf32>
    %c12 = arith.constant 12 : index
    %c0_80 = arith.constant 0 : index
    %c0_81 = arith.constant 0 : index
    %158 = vector.load %arg8[%c12, %c0_80, %c0_81] : memref<16x8x128xf32, #tpu.memory_space<vmem>>, vector<1x8x128xf32>
    %159 = vector.shape_cast %158 : vector<1x8x128xf32> to vector<8x128xf32>
    %160 = arith.addf %159, %157 : vector<8x128xf32>
    %c12_82 = arith.constant 12 : index
    %c0_83 = arith.constant 0 : index
    %c0_84 = arith.constant 0 : index
    %161 = vector.load %arg8[%c12_82, %c0_83, %c0_84] : memref<16x8x128xf32, #tpu.memory_space<vmem>>, vector<1x8x128xf32>
    %162 = vector.shape_cast %161 : vector<1x8x128xf32> to vector<8x128xf32>
    %163 = vector.shape_cast %160 : vector<8x128xf32> to vector<1x8x128xf32>
    tpu.vector_store %arg8[%c12_82, %c0_83, %c0_84], %163 {strides = array<i32>} : memref<16x8x128xf32, #tpu.memory_space<vmem>>, vector<1x8x128xf32>,
    %c13_i32 = arith.constant 13 : i32
    %164 = vector.broadcast %c13_i32 : i32 to vector<128x128xi32>
    %165 = arith.cmpi eq, %5, %164 : vector<128x128xi32>
    %166 = arith.extui %165 : vector<128x128xi1> to vector<128x128xi32>
    %167 = arith.sitofp %166 : vector<128x128xi32> to vector<128x128xf32>
    %168 = arith.truncf %167 : vector<128x128xf32> to vector<128x128xbf16>
    %cst_85 = arith.constant dense<0.000000e+00> : vector<8x128xf32>
    %169 = tpu.matmul %7, %168, %cst_85 {dimension_numbers = #tpu.dot_dimension_numbers<[1], [0], [0], [1], [0, 0, 1, 1], [], []>} : vector<8x128xbf16>, vector<128x128xbf16>, vector<8x128xf32> -> vector<8x128xf32>
    %c13 = arith.constant 13 : index
    %c0_86 = arith.constant 0 : index
    %c0_87 = arith.constant 0 : index
    %170 = vector.load %arg8[%c13, %c0_86, %c0_87] : memref<16x8x128xf32, #tpu.memory_space<vmem>>, vector<1x8x128xf32>
    %171 = vector.shape_cast %170 : vector<1x8x128xf32> to vector<8x128xf32>
    %172 = arith.addf %171, %169 : vector<8x128xf32>
    %c13_88 = arith.constant 13 : index
    %c0_89 = arith.constant 0 : index
    %c0_90 = arith.constant 0 : index
    %173 = vector.load %arg8[%c13_88, %c0_89, %c0_90] : memref<16x8x128xf32, #tpu.memory_space<vmem>>, vector<1x8x128xf32>
    %174 = vector.shape_cast %173 : vector<1x8x128xf32> to vector<8x128xf32>
    %175 = vector.shape_cast %172 : vector<8x128xf32> to vector<1x8x128xf32>
    tpu.vector_store %arg8[%c13_88, %c0_89, %c0_90], %175 {strides = array<i32>} : memref<16x8x128xf32, #tpu.memory_space<vmem>>, vector<1x8x128xf32>,
    %c14_i32 = arith.constant 14 : i32
    %176 = vector.broadcast %c14_i32 : i32 to vector<128x128xi32>
    %177 = arith.cmpi eq, %5, %176 : vector<128x128xi32>
    %178 = arith.extui %177 : vector<128x128xi1> to vector<128x128xi32>
    %179 = arith.sitofp %178 : vector<128x128xi32> to vector<128x128xf32>
    %180 = arith.truncf %179 : vector<128x128xf32> to vector<128x128xbf16>
    %cst_91 = arith.constant dense<0.000000e+00> : vector<8x128xf32>
    %181 = tpu.matmul %7, %180, %cst_91 {dimension_numbers = #tpu.dot_dimension_numbers<[1], [0], [0], [1], [0, 0, 1, 1], [], []>} : vector<8x128xbf16>, vector<128x128xbf16>, vector<8x128xf32> -> vector<8x128xf32>
    %c14 = arith.constant 14 : index
    %c0_92 = arith.constant 0 : index
    %c0_93 = arith.constant 0 : index
    %182 = vector.load %arg8[%c14, %c0_92, %c0_93] : memref<16x8x128xf32, #tpu.memory_space<vmem>>, vector<1x8x128xf32>
    %183 = vector.shape_cast %182 : vector<1x8x128xf32> to vector<8x128xf32>
    %184 = arith.addf %183, %181 : vector<8x128xf32>
    %c14_94 = arith.constant 14 : index
    %c0_95 = arith.constant 0 : index
    %c0_96 = arith.constant 0 : index
    %185 = vector.load %arg8[%c14_94, %c0_95, %c0_96] : memref<16x8x128xf32, #tpu.memory_space<vmem>>, vector<1x8x128xf32>
    %186 = vector.shape_cast %185 : vector<1x8x128xf32> to vector<8x128xf32>
    %187 = vector.shape_cast %184 : vector<8x128xf32> to vector<1x8x128xf32>
    tpu.vector_store %arg8[%c14_94, %c0_95, %c0_96], %187 {strides = array<i32>} : memref<16x8x128xf32, #tpu.memory_space<vmem>>, vector<1x8x128xf32>,
    %c15_i32 = arith.constant 15 : i32
    %188 = vector.broadcast %c15_i32 : i32 to vector<128x128xi32>
    %189 = arith.cmpi eq, %5, %188 : vector<128x128xi32>
    %190 = arith.extui %189 : vector<128x128xi1> to vector<128x128xi32>
    %191 = arith.sitofp %190 : vector<128x128xi32> to vector<128x128xf32>
    %192 = arith.truncf %191 : vector<128x128xf32> to vector<128x128xbf16>
    %cst_97 = arith.constant dense<0.000000e+00> : vector<8x128xf32>
    %193 = tpu.matmul %7, %192, %cst_97 {dimension_numbers = #tpu.dot_dimension_numbers<[1], [0], [0], [1], [0, 0, 1, 1], [], []>} : vector<8x128xbf16>, vector<128x128xbf16>, vector<8x128xf32> -> vector<8x128xf32>
    %c15 = arith.constant 15 : index
    %c0_98 = arith.constant 0 : index
    %c0_99 = arith.constant 0 : index
    %194 = vector.load %arg8[%c15, %c0_98, %c0_99] : memref<16x8x128xf32, #tpu.memory_space<vmem>>, vector<1x8x128xf32>
    %195 = vector.shape_cast %194 : vector<1x8x128xf32> to vector<8x128xf32>
    %196 = arith.addf %195, %193 : vector<8x128xf32>
    %c15_100 = arith.constant 15 : index
    %c0_101 = arith.constant 0 : index
    %c0_102 = arith.constant 0 : index
    %197 = vector.load %arg8[%c15_100, %c0_101, %c0_102] : memref<16x8x128xf32, #tpu.memory_space<vmem>>, vector<1x8x128xf32>
    %198 = vector.shape_cast %197 : vector<1x8x128xf32> to vector<8x128xf32>
    %199 = vector.shape_cast %196 : vector<8x128xf32> to vector<1x8x128xf32>
    tpu.vector_store %arg8[%c15_100, %c0_101, %c0_102], %199 {strides = array<i32>} : memref<16x8x128xf32, #tpu.memory_space<vmem>>, vector<1x8x128xf32>,
    %c1_i32_103 = arith.constant 1 : i32
    %200 = arith.cmpi eq, %arg2, %c1_i32_103 : i32
    %201 = arith.extui %200 : i1 to i32
    %c0_i32_104 = arith.constant 0 : i32
    %202 = arith.cmpi ne, %201, %c0_i32_104 : i32
    scf.if %202 {
      %c0_105 = arith.constant 0 : index
      %c0_106 = arith.constant 0 : index
      %c0_107 = arith.constant 0 : index
      %203 = vector.load %arg5[%c0_105, %c0_106, %c0_107] : memref<16x9x1xf32, #tpu.memory_space<vmem>>, vector<16x9x1xf32>
      %c0_108 = arith.constant 0 : index
      %c0_109 = arith.constant 0 : index
      %204 = vector.load %arg6[%c0_108, %c0_109] : memref<9x1xf32, #tpu.memory_space<vmem>>, vector<9x1xf32>
      %205 = vector.shape_cast %204 : vector<9x1xf32> to vector<9x1xf32>
      %206 = vector.broadcast %205 : vector<9x1xf32> to vector<9x128xf32>
      %c0_110 = arith.constant 0 : index
      %c0_111 = arith.constant 0 : index
      %c0_112 = arith.constant 0 : index
      %207 = vector.load %arg8[%c0_110, %c0_111, %c0_112] : memref<16x8x128xf32, #tpu.memory_space<vmem>>, vector<1x8x128xf32>
      %208 = vector.shape_cast %207 : vector<1x8x128xf32> to vector<8x128xf32>
      %209 = vector.extract_strided_slice %208 {offsets = [1, 0], sizes = [1, 128], strides = [1, 1]} : vector<8x128xf32> to vector<1x128xf32>
      %cst_113 = arith.constant 1.000000e+00 : f32
      %210 = vector.broadcast %cst_113 : f32 to vector<1x128xf32>
      %211 = arith.maximumf %209, %210 : vector<1x128xf32>
      %212 = tpu.reciprocal %211 : vector<1x128xf32> -> vector<1x128xf32>
      %213 = vector.extract_strided_slice %208 {offsets = [0, 0], sizes = [1, 128], strides = [1, 1]} : vector<8x128xf32> to vector<1x128xf32>
      %214 = arith.mulf %213, %212 : vector<1x128xf32>
      %215 = vector.extract_strided_slice %203 {offsets = [0, 0, 0], sizes = [1, 9, 1], strides = [1, 1, 1]} : vector<16x9x1xf32> to vector<1x9x1xf32>
      %216 = vector.shape_cast %215 : vector<1x9x1xf32> to vector<9x1xf32>
      %217 = vector.broadcast %216 : vector<9x1xf32> to vector<9x128xf32>
      %218 = vector.broadcast %214 : vector<1x128xf32> to vector<9x128xf32>
      %219 = arith.mulf %217, %218 : vector<9x128xf32>
      %220 = arith.addf %206, %219 : vector<9x128xf32>
      %c1_114 = arith.constant 1 : index
      %c0_115 = arith.constant 0 : index
      %c0_116 = arith.constant 0 : index
      %221 = vector.load %arg8[%c1_114, %c0_115, %c0_116] : memref<16x8x128xf32, #tpu.memory_space<vmem>>, vector<1x8x128xf32>
      %222 = vector.shape_cast %221 : vector<1x8x128xf32> to vector<8x128xf32>
      %223 = vector.extract_strided_slice %222 {offsets = [1, 0], sizes = [1, 128], strides = [1, 1]} : vector<8x128xf32> to vector<1x128xf32>
      %cst_117 = arith.constant 1.000000e+00 : f32
      %224 = vector.broadcast %cst_117 : f32 to vector<1x128xf32>
      %225 = arith.maximumf %223, %224 : vector<1x128xf32>
      %226 = tpu.reciprocal %225 : vector<1x128xf32> -> vector<1x128xf32>
      %227 = vector.extract_strided_slice %222 {offsets = [0, 0], sizes = [1, 128], strides = [1, 1]} : vector<8x128xf32> to vector<1x128xf32>
      %228 = arith.mulf %227, %226 : vector<1x128xf32>
      %229 = vector.extract_strided_slice %203 {offsets = [1, 0, 0], sizes = [1, 9, 1], strides = [1, 1, 1]} : vector<16x9x1xf32> to vector<1x9x1xf32>
      %230 = vector.shape_cast %229 : vector<1x9x1xf32> to vector<9x1xf32>
      %231 = vector.broadcast %230 : vector<9x1xf32> to vector<9x128xf32>
      %232 = vector.broadcast %228 : vector<1x128xf32> to vector<9x128xf32>
      %233 = arith.mulf %231, %232 : vector<9x128xf32>
      %234 = arith.addf %220, %233 : vector<9x128xf32>
      %c2_118 = arith.constant 2 : index
      %c0_119 = arith.constant 0 : index
      %c0_120 = arith.constant 0 : index
      %235 = vector.load %arg8[%c2_118, %c0_119, %c0_120] : memref<16x8x128xf32, #tpu.memory_space<vmem>>, vector<1x8x128xf32>
      %236 = vector.shape_cast %235 : vector<1x8x128xf32> to vector<8x128xf32>
      %237 = vector.extract_strided_slice %236 {offsets = [1, 0], sizes = [1, 128], strides = [1, 1]} : vector<8x128xf32> to vector<1x128xf32>
      %cst_121 = arith.constant 1.000000e+00 : f32
      %238 = vector.broadcast %cst_121 : f32 to vector<1x128xf32>
      %239 = arith.maximumf %237, %238 : vector<1x128xf32>
      %240 = tpu.reciprocal %239 : vector<1x128xf32> -> vector<1x128xf32>
      %241 = vector.extract_strided_slice %236 {offsets = [0, 0], sizes = [1, 128], strides = [1, 1]} : vector<8x128xf32> to vector<1x128xf32>
      %242 = arith.mulf %241, %240 : vector<1x128xf32>
      %243 = vector.extract_strided_slice %203 {offsets = [2, 0, 0], sizes = [1, 9, 1], strides = [1, 1, 1]} : vector<16x9x1xf32> to vector<1x9x1xf32>
      %244 = vector.shape_cast %243 : vector<1x9x1xf32> to vector<9x1xf32>
      %245 = vector.broadcast %244 : vector<9x1xf32> to vector<9x128xf32>
      %246 = vector.broadcast %242 : vector<1x128xf32> to vector<9x128xf32>
      %247 = arith.mulf %245, %246 : vector<9x128xf32>
      %248 = arith.addf %234, %247 : vector<9x128xf32>
      %c3_122 = arith.constant 3 : index
      %c0_123 = arith.constant 0 : index
      %c0_124 = arith.constant 0 : index
      %249 = vector.load %arg8[%c3_122, %c0_123, %c0_124] : memref<16x8x128xf32, #tpu.memory_space<vmem>>, vector<1x8x128xf32>
      %250 = vector.shape_cast %249 : vector<1x8x128xf32> to vector<8x128xf32>
      %251 = vector.extract_strided_slice %250 {offsets = [1, 0], sizes = [1, 128], strides = [1, 1]} : vector<8x128xf32> to vector<1x128xf32>
      %cst_125 = arith.constant 1.000000e+00 : f32
      %252 = vector.broadcast %cst_125 : f32 to vector<1x128xf32>
      %253 = arith.maximumf %251, %252 : vector<1x128xf32>
      %254 = tpu.reciprocal %253 : vector<1x128xf32> -> vector<1x128xf32>
      %255 = vector.extract_strided_slice %250 {offsets = [0, 0], sizes = [1, 128], strides = [1, 1]} : vector<8x128xf32> to vector<1x128xf32>
      %256 = arith.mulf %255, %254 : vector<1x128xf32>
      %257 = vector.extract_strided_slice %203 {offsets = [3, 0, 0], sizes = [1, 9, 1], strides = [1, 1, 1]} : vector<16x9x1xf32> to vector<1x9x1xf32>
      %258 = vector.shape_cast %257 : vector<1x9x1xf32> to vector<9x1xf32>
      %259 = vector.broadcast %258 : vector<9x1xf32> to vector<9x128xf32>
      %260 = vector.broadcast %256 : vector<1x128xf32> to vector<9x128xf32>
      %261 = arith.mulf %259, %260 : vector<9x128xf32>
      %262 = arith.addf %248, %261 : vector<9x128xf32>
      %c4_126 = arith.constant 4 : index
      %c0_127 = arith.constant 0 : index
      %c0_128 = arith.constant 0 : index
      %263 = vector.load %arg8[%c4_126, %c0_127, %c0_128] : memref<16x8x128xf32, #tpu.memory_space<vmem>>, vector<1x8x128xf32>
      %264 = vector.shape_cast %263 : vector<1x8x128xf32> to vector<8x128xf32>
      %265 = vector.extract_strided_slice %264 {offsets = [1, 0], sizes = [1, 128], strides = [1, 1]} : vector<8x128xf32> to vector<1x128xf32>
      %cst_129 = arith.constant 1.000000e+00 : f32
      %266 = vector.broadcast %cst_129 : f32 to vector<1x128xf32>
      %267 = arith.maximumf %265, %266 : vector<1x128xf32>
      %268 = tpu.reciprocal %267 : vector<1x128xf32> -> vector<1x128xf32>
      %269 = vector.extract_strided_slice %264 {offsets = [0, 0], sizes = [1, 128], strides = [1, 1]} : vector<8x128xf32> to vector<1x128xf32>
      %270 = arith.mulf %269, %268 : vector<1x128xf32>
      %271 = vector.extract_strided_slice %203 {offsets = [4, 0, 0], sizes = [1, 9, 1], strides = [1, 1, 1]} : vector<16x9x1xf32> to vector<1x9x1xf32>
      %272 = vector.shape_cast %271 : vector<1x9x1xf32> to vector<9x1xf32>
      %273 = vector.broadcast %272 : vector<9x1xf32> to vector<9x128xf32>
      %274 = vector.broadcast %270 : vector<1x128xf32> to vector<9x128xf32>
      %275 = arith.mulf %273, %274 : vector<9x128xf32>
      %276 = arith.addf %262, %275 : vector<9x128xf32>
      %c5_130 = arith.constant 5 : index
      %c0_131 = arith.constant 0 : index
      %c0_132 = arith.constant 0 : index
      %277 = vector.load %arg8[%c5_130, %c0_131, %c0_132] : memref<16x8x128xf32, #tpu.memory_space<vmem>>, vector<1x8x128xf32>
      %278 = vector.shape_cast %277 : vector<1x8x128xf32> to vector<8x128xf32>
      %279 = vector.extract_strided_slice %278 {offsets = [1, 0], sizes = [1, 128], strides = [1, 1]} : vector<8x128xf32> to vector<1x128xf32>
      %cst_133 = arith.constant 1.000000e+00 : f32
      %280 = vector.broadcast %cst_133 : f32 to vector<1x128xf32>
      %281 = arith.maximumf %279, %280 : vector<1x128xf32>
      %282 = tpu.reciprocal %281 : vector<1x128xf32> -> vector<1x128xf32>
      %283 = vector.extract_strided_slice %278 {offsets = [0, 0], sizes = [1, 128], strides = [1, 1]} : vector<8x128xf32> to vector<1x128xf32>
      %284 = arith.mulf %283, %282 : vector<1x128xf32>
      %285 = vector.extract_strided_slice %203 {offsets = [5, 0, 0], sizes = [1, 9, 1], strides = [1, 1, 1]} : vector<16x9x1xf32> to vector<1x9x1xf32>
      %286 = vector.shape_cast %285 : vector<1x9x1xf32> to vector<9x1xf32>
      %287 = vector.broadcast %286 : vector<9x1xf32> to vector<9x128xf32>
      %288 = vector.broadcast %284 : vector<1x128xf32> to vector<9x128xf32>
      %289 = arith.mulf %287, %288 : vector<9x128xf32>
      %290 = arith.addf %276, %289 : vector<9x128xf32>
      %c6_134 = arith.constant 6 : index
      %c0_135 = arith.constant 0 : index
      %c0_136 = arith.constant 0 : index
      %291 = vector.load %arg8[%c6_134, %c0_135, %c0_136] : memref<16x8x128xf32, #tpu.memory_space<vmem>>, vector<1x8x128xf32>
      %292 = vector.shape_cast %291 : vector<1x8x128xf32> to vector<8x128xf32>
      %293 = vector.extract_strided_slice %292 {offsets = [1, 0], sizes = [1, 128], strides = [1, 1]} : vector<8x128xf32> to vector<1x128xf32>
      %cst_137 = arith.constant 1.000000e+00 : f32
      %294 = vector.broadcast %cst_137 : f32 to vector<1x128xf32>
      %295 = arith.maximumf %293, %294 : vector<1x128xf32>
      %296 = tpu.reciprocal %295 : vector<1x128xf32> -> vector<1x128xf32>
      %297 = vector.extract_strided_slice %292 {offsets = [0, 0], sizes = [1, 128], strides = [1, 1]} : vector<8x128xf32> to vector<1x128xf32>
      %298 = arith.mulf %297, %296 : vector<1x128xf32>
      %299 = vector.extract_strided_slice %203 {offsets = [6, 0, 0], sizes = [1, 9, 1], strides = [1, 1, 1]} : vector<16x9x1xf32> to vector<1x9x1xf32>
      %300 = vector.shape_cast %299 : vector<1x9x1xf32> to vector<9x1xf32>
      %301 = vector.broadcast %300 : vector<9x1xf32> to vector<9x128xf32>
      %302 = vector.broadcast %298 : vector<1x128xf32> to vector<9x128xf32>
      %303 = arith.mulf %301, %302 : vector<9x128xf32>
      %304 = arith.addf %290, %303 : vector<9x128xf32>
      %c7_138 = arith.constant 7 : index
      %c0_139 = arith.constant 0 : index
      %c0_140 = arith.constant 0 : index
      %305 = vector.load %arg8[%c7_138, %c0_139, %c0_140] : memref<16x8x128xf32, #tpu.memory_space<vmem>>, vector<1x8x128xf32>
      %306 = vector.shape_cast %305 : vector<1x8x128xf32> to vector<8x128xf32>
      %307 = vector.extract_strided_slice %306 {offsets = [1, 0], sizes = [1, 128], strides = [1, 1]} : vector<8x128xf32> to vector<1x128xf32>
      %cst_141 = arith.constant 1.000000e+00 : f32
      %308 = vector.broadcast %cst_141 : f32 to vector<1x128xf32>
      %309 = arith.maximumf %307, %308 : vector<1x128xf32>
      %310 = tpu.reciprocal %309 : vector<1x128xf32> -> vector<1x128xf32>
      %311 = vector.extract_strided_slice %306 {offsets = [0, 0], sizes = [1, 128], strides = [1, 1]} : vector<8x128xf32> to vector<1x128xf32>
      %312 = arith.mulf %311, %310 : vector<1x128xf32>
      %313 = vector.extract_strided_slice %203 {offsets = [7, 0, 0], sizes = [1, 9, 1], strides = [1, 1, 1]} : vector<16x9x1xf32> to vector<1x9x1xf32>
      %314 = vector.shape_cast %313 : vector<1x9x1xf32> to vector<9x1xf32>
      %315 = vector.broadcast %314 : vector<9x1xf32> to vector<9x128xf32>
      %316 = vector.broadcast %312 : vector<1x128xf32> to vector<9x128xf32>
      %317 = arith.mulf %315, %316 : vector<9x128xf32>
      %318 = arith.addf %304, %317 : vector<9x128xf32>
      %c8_142 = arith.constant 8 : index
      %c0_143 = arith.constant 0 : index
      %c0_144 = arith.constant 0 : index
      %319 = vector.load %arg8[%c8_142, %c0_143, %c0_144] : memref<16x8x128xf32, #tpu.memory_space<vmem>>, vector<1x8x128xf32>
      %320 = vector.shape_cast %319 : vector<1x8x128xf32> to vector<8x128xf32>
      %321 = vector.extract_strided_slice %320 {offsets = [1, 0], sizes = [1, 128], strides = [1, 1]} : vector<8x128xf32> to vector<1x128xf32>
      %cst_145 = arith.constant 1.000000e+00 : f32
      %322 = vector.broadcast %cst_145 : f32 to vector<1x128xf32>
      %323 = arith.maximumf %321, %322 : vector<1x128xf32>
      %324 = tpu.reciprocal %323 : vector<1x128xf32> -> vector<1x128xf32>
      %325 = vector.extract_strided_slice %320 {offsets = [0, 0], sizes = [1, 128], strides = [1, 1]} : vector<8x128xf32> to vector<1x128xf32>
      %326 = arith.mulf %325, %324 : vector<1x128xf32>
      %327 = vector.extract_strided_slice %203 {offsets = [8, 0, 0], sizes = [1, 9, 1], strides = [1, 1, 1]} : vector<16x9x1xf32> to vector<1x9x1xf32>
      %328 = vector.shape_cast %327 : vector<1x9x1xf32> to vector<9x1xf32>
      %329 = vector.broadcast %328 : vector<9x1xf32> to vector<9x128xf32>
      %330 = vector.broadcast %326 : vector<1x128xf32> to vector<9x128xf32>
      %331 = arith.mulf %329, %330 : vector<9x128xf32>
      %332 = arith.addf %318, %331 : vector<9x128xf32>
      %c9_146 = arith.constant 9 : index
      %c0_147 = arith.constant 0 : index
      %c0_148 = arith.constant 0 : index
      %333 = vector.load %arg8[%c9_146, %c0_147, %c0_148] : memref<16x8x128xf32, #tpu.memory_space<vmem>>, vector<1x8x128xf32>
      %334 = vector.shape_cast %333 : vector<1x8x128xf32> to vector<8x128xf32>
      %335 = vector.extract_strided_slice %334 {offsets = [1, 0], sizes = [1, 128], strides = [1, 1]} : vector<8x128xf32> to vector<1x128xf32>
      %cst_149 = arith.constant 1.000000e+00 : f32
      %336 = vector.broadcast %cst_149 : f32 to vector<1x128xf32>
      %337 = arith.maximumf %335, %336 : vector<1x128xf32>
      %338 = tpu.reciprocal %337 : vector<1x128xf32> -> vector<1x128xf32>
      %339 = vector.extract_strided_slice %334 {offsets = [0, 0], sizes = [1, 128], strides = [1, 1]} : vector<8x128xf32> to vector<1x128xf32>
      %340 = arith.mulf %339, %338 : vector<1x128xf32>
      %341 = vector.extract_strided_slice %203 {offsets = [9, 0, 0], sizes = [1, 9, 1], strides = [1, 1, 1]} : vector<16x9x1xf32> to vector<1x9x1xf32>
      %342 = vector.shape_cast %341 : vector<1x9x1xf32> to vector<9x1xf32>
      %343 = vector.broadcast %342 : vector<9x1xf32> to vector<9x128xf32>
      %344 = vector.broadcast %340 : vector<1x128xf32> to vector<9x128xf32>
      %345 = arith.mulf %343, %344 : vector<9x128xf32>
      %346 = arith.addf %332, %345 : vector<9x128xf32>
      %c10_150 = arith.constant 10 : index
      %c0_151 = arith.constant 0 : index
      %c0_152 = arith.constant 0 : index
      %347 = vector.load %arg8[%c10_150, %c0_151, %c0_152] : memref<16x8x128xf32, #tpu.memory_space<vmem>>, vector<1x8x128xf32>
      %348 = vector.shape_cast %347 : vector<1x8x128xf32> to vector<8x128xf32>
      %349 = vector.extract_strided_slice %348 {offsets = [1, 0], sizes = [1, 128], strides = [1, 1]} : vector<8x128xf32> to vector<1x128xf32>
      %cst_153 = arith.constant 1.000000e+00 : f32
      %350 = vector.broadcast %cst_153 : f32 to vector<1x128xf32>
      %351 = arith.maximumf %349, %350 : vector<1x128xf32>
      %352 = tpu.reciprocal %351 : vector<1x128xf32> -> vector<1x128xf32>
      %353 = vector.extract_strided_slice %348 {offsets = [0, 0], sizes = [1, 128], strides = [1, 1]} : vector<8x128xf32> to vector<1x128xf32>
      %354 = arith.mulf %353, %352 : vector<1x128xf32>
      %355 = vector.extract_strided_slice %203 {offsets = [10, 0, 0], sizes = [1, 9, 1], strides = [1, 1, 1]} : vector<16x9x1xf32> to vector<1x9x1xf32>
      %356 = vector.shape_cast %355 : vector<1x9x1xf32> to vector<9x1xf32>
      %357 = vector.broadcast %356 : vector<9x1xf32> to vector<9x128xf32>
      %358 = vector.broadcast %354 : vector<1x128xf32> to vector<9x128xf32>
      %359 = arith.mulf %357, %358 : vector<9x128xf32>
      %360 = arith.addf %346, %359 : vector<9x128xf32>
      %c11_154 = arith.constant 11 : index
      %c0_155 = arith.constant 0 : index
      %c0_156 = arith.constant 0 : index
      %361 = vector.load %arg8[%c11_154, %c0_155, %c0_156] : memref<16x8x128xf32, #tpu.memory_space<vmem>>, vector<1x8x128xf32>
      %362 = vector.shape_cast %361 : vector<1x8x128xf32> to vector<8x128xf32>
      %363 = vector.extract_strided_slice %362 {offsets = [1, 0], sizes = [1, 128], strides = [1, 1]} : vector<8x128xf32> to vector<1x128xf32>
      %cst_157 = arith.constant 1.000000e+00 : f32
      %364 = vector.broadcast %cst_157 : f32 to vector<1x128xf32>
      %365 = arith.maximumf %363, %364 : vector<1x128xf32>
      %366 = tpu.reciprocal %365 : vector<1x128xf32> -> vector<1x128xf32>
      %367 = vector.extract_strided_slice %362 {offsets = [0, 0], sizes = [1, 128], strides = [1, 1]} : vector<8x128xf32> to vector<1x128xf32>
      %368 = arith.mulf %367, %366 : vector<1x128xf32>
      %369 = vector.extract_strided_slice %203 {offsets = [11, 0, 0], sizes = [1, 9, 1], strides = [1, 1, 1]} : vector<16x9x1xf32> to vector<1x9x1xf32>
      %370 = vector.shape_cast %369 : vector<1x9x1xf32> to vector<9x1xf32>
      %371 = vector.broadcast %370 : vector<9x1xf32> to vector<9x128xf32>
      %372 = vector.broadcast %368 : vector<1x128xf32> to vector<9x128xf32>
      %373 = arith.mulf %371, %372 : vector<9x128xf32>
      %374 = arith.addf %360, %373 : vector<9x128xf32>
      %c12_158 = arith.constant 12 : index
      %c0_159 = arith.constant 0 : index
      %c0_160 = arith.constant 0 : index
      %375 = vector.load %arg8[%c12_158, %c0_159, %c0_160] : memref<16x8x128xf32, #tpu.memory_space<vmem>>, vector<1x8x128xf32>
      %376 = vector.shape_cast %375 : vector<1x8x128xf32> to vector<8x128xf32>
      %377 = vector.extract_strided_slice %376 {offsets = [1, 0], sizes = [1, 128], strides = [1, 1]} : vector<8x128xf32> to vector<1x128xf32>
      %cst_161 = arith.constant 1.000000e+00 : f32
      %378 = vector.broadcast %cst_161 : f32 to vector<1x128xf32>
      %379 = arith.maximumf %377, %378 : vector<1x128xf32>
      %380 = tpu.reciprocal %379 : vector<1x128xf32> -> vector<1x128xf32>
      %381 = vector.extract_strided_slice %376 {offsets = [0, 0], sizes = [1, 128], strides = [1, 1]} : vector<8x128xf32> to vector<1x128xf32>
      %382 = arith.mulf %381, %380 : vector<1x128xf32>
      %383 = vector.extract_strided_slice %203 {offsets = [12, 0, 0], sizes = [1, 9, 1], strides = [1, 1, 1]} : vector<16x9x1xf32> to vector<1x9x1xf32>
      %384 = vector.shape_cast %383 : vector<1x9x1xf32> to vector<9x1xf32>
      %385 = vector.broadcast %384 : vector<9x1xf32> to vector<9x128xf32>
      %386 = vector.broadcast %382 : vector<1x128xf32> to vector<9x128xf32>
      %387 = arith.mulf %385, %386 : vector<9x128xf32>
      %388 = arith.addf %374, %387 : vector<9x128xf32>
      %c13_162 = arith.constant 13 : index
      %c0_163 = arith.constant 0 : index
      %c0_164 = arith.constant 0 : index
      %389 = vector.load %arg8[%c13_162, %c0_163, %c0_164] : memref<16x8x128xf32, #tpu.memory_space<vmem>>, vector<1x8x128xf32>
      %390 = vector.shape_cast %389 : vector<1x8x128xf32> to vector<8x128xf32>
      %391 = vector.extract_strided_slice %390 {offsets = [1, 0], sizes = [1, 128], strides = [1, 1]} : vector<8x128xf32> to vector<1x128xf32>
      %cst_165 = arith.constant 1.000000e+00 : f32
      %392 = vector.broadcast %cst_165 : f32 to vector<1x128xf32>
      %393 = arith.maximumf %391, %392 : vector<1x128xf32>
      %394 = tpu.reciprocal %393 : vector<1x128xf32> -> vector<1x128xf32>
      %395 = vector.extract_strided_slice %390 {offsets = [0, 0], sizes = [1, 128], strides = [1, 1]} : vector<8x128xf32> to vector<1x128xf32>
      %396 = arith.mulf %395, %394 : vector<1x128xf32>
      %397 = vector.extract_strided_slice %203 {offsets = [13, 0, 0], sizes = [1, 9, 1], strides = [1, 1, 1]} : vector<16x9x1xf32> to vector<1x9x1xf32>
      %398 = vector.shape_cast %397 : vector<1x9x1xf32> to vector<9x1xf32>
      %399 = vector.broadcast %398 : vector<9x1xf32> to vector<9x128xf32>
      %400 = vector.broadcast %396 : vector<1x128xf32> to vector<9x128xf32>
      %401 = arith.mulf %399, %400 : vector<9x128xf32>
      %402 = arith.addf %388, %401 : vector<9x128xf32>
      %c14_166 = arith.constant 14 : index
      %c0_167 = arith.constant 0 : index
      %c0_168 = arith.constant 0 : index
      %403 = vector.load %arg8[%c14_166, %c0_167, %c0_168] : memref<16x8x128xf32, #tpu.memory_space<vmem>>, vector<1x8x128xf32>
      %404 = vector.shape_cast %403 : vector<1x8x128xf32> to vector<8x128xf32>
      %405 = vector.extract_strided_slice %404 {offsets = [1, 0], sizes = [1, 128], strides = [1, 1]} : vector<8x128xf32> to vector<1x128xf32>
      %cst_169 = arith.constant 1.000000e+00 : f32
      %406 = vector.broadcast %cst_169 : f32 to vector<1x128xf32>
      %407 = arith.maximumf %405, %406 : vector<1x128xf32>
      %408 = tpu.reciprocal %407 : vector<1x128xf32> -> vector<1x128xf32>
      %409 = vector.extract_strided_slice %404 {offsets = [0, 0], sizes = [1, 128], strides = [1, 1]} : vector<8x128xf32> to vector<1x128xf32>
      %410 = arith.mulf %409, %408 : vector<1x128xf32>
      %411 = vector.extract_strided_slice %203 {offsets = [14, 0, 0], sizes = [1, 9, 1], strides = [1, 1, 1]} : vector<16x9x1xf32> to vector<1x9x1xf32>
      %412 = vector.shape_cast %411 : vector<1x9x1xf32> to vector<9x1xf32>
      %413 = vector.broadcast %412 : vector<9x1xf32> to vector<9x128xf32>
      %414 = vector.broadcast %410 : vector<1x128xf32> to vector<9x128xf32>
      %415 = arith.mulf %413, %414 : vector<9x128xf32>
      %416 = arith.addf %402, %415 : vector<9x128xf32>
      %c15_170 = arith.constant 15 : index
      %c0_171 = arith.constant 0 : index
      %c0_172 = arith.constant 0 : index
      %417 = vector.load %arg8[%c15_170, %c0_171, %c0_172] : memref<16x8x128xf32, #tpu.memory_space<vmem>>, vector<1x8x128xf32>
      %418 = vector.shape_cast %417 : vector<1x8x128xf32> to vector<8x128xf32>
      %419 = vector.extract_strided_slice %418 {offsets = [1, 0], sizes = [1, 128], strides = [1, 1]} : vector<8x128xf32> to vector<1x128xf32>
      %cst_173 = arith.constant 1.000000e+00 : f32
      %420 = vector.broadcast %cst_173 : f32 to vector<1x128xf32>
      %421 = arith.maximumf %419, %420 : vector<1x128xf32>
      %422 = tpu.reciprocal %421 : vector<1x128xf32> -> vector<1x128xf32>
      %423 = vector.extract_strided_slice %418 {offsets = [0, 0], sizes = [1, 128], strides = [1, 1]} : vector<8x128xf32> to vector<1x128xf32>
      %424 = arith.mulf %423, %422 : vector<1x128xf32>
      %425 = vector.extract_strided_slice %203 {offsets = [15, 0, 0], sizes = [1, 9, 1], strides = [1, 1, 1]} : vector<16x9x1xf32> to vector<1x9x1xf32>
      %426 = vector.shape_cast %425 : vector<1x9x1xf32> to vector<9x1xf32>
      %427 = vector.broadcast %426 : vector<9x1xf32> to vector<9x128xf32>
      %428 = vector.broadcast %424 : vector<1x128xf32> to vector<9x128xf32>
      %429 = arith.mulf %427, %428 : vector<9x128xf32>
      %430 = arith.addf %416, %429 : vector<9x128xf32>
      %c0_174 = arith.constant 0 : index
      %c0_175 = arith.constant 0 : index
      %c0_176 = arith.constant 0 : index
      %431 = vector.load %arg7[%c0_174, %c0_175, %c0_176] : memref<1x9x128xf32, #tpu.memory_space<vmem>>, vector<1x9x128xf32>
      %432 = vector.shape_cast %431 : vector<1x9x128xf32> to vector<9x128xf32>
      %433 = vector.shape_cast %430 : vector<9x128xf32> to vector<1x9x128xf32>
      tpu.vector_store %arg7[%c0_174, %c0_175, %c0_176], %433 {strides = array<i32>} : memref<1x9x128xf32, #tpu.memory_space<vmem>>, vector<1x9x128xf32>,
    } else {
    }
    return
  }
  func.func @transform_0(%arg0: i32, %arg1: i32, %arg2: i32) -> (i32, i32, i32) {
    %c0_i32 = arith.constant 0 : i32
    return %arg0, %arg2, %arg1 : i32, i32, i32
  }
  func.func @transform_1(%arg0: i32, %arg1: i32, %arg2: i32) -> (i32, i32, i32) {
    %c0_i32 = arith.constant 0 : i32
    %c0_i32_0 = arith.constant 0 : i32
    return %arg0, %c0_i32, %arg2 : i32, i32, i32
  }
  func.func @transform_2(%arg0: i32, %arg1: i32, %arg2: i32) -> (i32, i32, i32) {
    %c0_i32 = arith.constant 0 : i32
    %c0_i32_0 = arith.constant 0 : i32
    %c0_i32_1 = arith.constant 0 : i32
    %c0_i32_2 = arith.constant 0 : i32
    return %c0_i32, %c0_i32_0, %c0_i32_1 : i32, i32, i32
  }
  func.func @transform_3(%arg0: i32, %arg1: i32, %arg2: i32) -> (i32, i32) {
    %c0_i32 = arith.constant 0 : i32
    %c0_i32_0 = arith.constant 0 : i32
    %c0_i32_1 = arith.constant 0 : i32
    return %c0_i32, %c0_i32_0 : i32, i32
  }
  func.func @transform_4(%arg0: i32, %arg1: i32, %arg2: i32) -> (i32, i32, i32) {
    %c0_i32 = arith.constant 0 : i32
    %c0_i32_0 = arith.constant 0 : i32
    return %arg0, %c0_i32, %arg1 : i32, i32, i32
  }
}

</mosaic_0001>

<bundles_post_ra>
// kernel: tpu_custom_call.1
= control target key start
LH: loop header
LB: loop body
LE: loop exit
PB: predicated region body
PF: predicated region fallthrough
CT: control target
= control target key end

     0   :  { %s4785_s0 = inlined_call_operand.vmem [shape: s8[2,256,256], index: 0, kind: input, shape index: {}]   ;;  %s4786_s1 = inlined_call_operand.vmem [shape: bf16[2,8,256], index: 1, kind: input, shape index: {}]   ;;  %s4787_s2 = inlined_call_operand.vmem [shape: f32[16,9,1], index: 2, kind: input, shape index: {}]   ;;  %s4788_s3 = inlined_call_operand.vmem [shape: f32[9,1], index: 3, kind: input, shape index: {}]   ;;  %s4789_s4 = inlined_call_operand.vmem [shape: f32[2,9,256], index: 4, kind: output, shape index: {}]  }
   0x1   :  { %4794 = sst [smem:[#allocation9_spill]] %s4785_s0 }
   0x2   :  { %s3780_s15 = smov 0   ;;  %s3782_s16 = smov 0  }
   0x3   :  { %s3784_s17 = smov 0   ;;  %s3786_s18 = smov 0  }
   0x4   :  { %s3788_s19 = smov 0   ;;  %s3790_s20 = smov 0  }
   0x5   :  { %s3792_s21 = smov 0   ;;  %s3794_s22 = smov 0  }
   0x6   :  { %s3796_s23 = smov 0   ;;  %s3798_s24 = smov 0  }
   0x7   :  { %s3800_s25 = smov 0  }
   0x8 LB: > { %4795 = sst [smem:[#allocation5_spill]] %s3744_s24  ;;  %s26_s26 = sadd.s32 1, %s3736_s22  ;;  %s3748_s25 = sphi %s3800_s25, %s14_s25   ;;  %s3744_s24 = sphi %s3798_s24, %s4814_s24   ;;  %s3740_s23 = sphi %s3796_s23, %s4813_s23   ;;  %s3736_s22 = sphi %s3794_s22, %s4812_s22   ;;  %s3732_s21 = sphi %s3792_s21, %s4802_s21   ;;  %s3728_s20 = sphi %s3790_s20, %s4811_s20   ;;  %s3724_s19 = sphi %s3788_s19, %s4810_s19   ;;  %s3720_s18 = sphi %s3786_s18, %s4809_s18   ;;  %s3716_s17 = sphi %s3784_s17, %s4808_s17   ;;  %s3712_s16 = sphi %s3782_s16, %s4807_s16   ;;  %s3708_s15 = sphi %s3780_s15, %s4806_s15  }
   0x9   : > { %p27_p0 = scmp.ge.s32.totalorder %s26_s26, 2  ;;  %s29_s27 = sadd.s32 1, %s3740_s23 }
   0xa   : > { %s2536_s28 = sadd.s32 4294967295, %s3748_s25   ;;  %s33_s29 = sadd.s32 1, %s3744_s24 }
   0xb   : > { %s4816_s27 = smov (!%p27_p0, %s29_s27), %s3740_s23  ;;  %p51_p1 = scmp.ne.s32.totalorder %s3720_s18, %s3716_s17 }
   0xc   : > { %p31_p2 = scmp.ge.s32.totalorder %s4816_s27, 2  ;;  %p52_p3 = scmp.eq.s32.totalorder %s3748_s25, 0 }
   0xd   : > { %s4818_s26 = smov (%p27_p0, %s26_s26), 0  ;;  %p152_p5 = scmp.ne.s32.totalorder %s3712_s16, %s3708_s15 }
   0xe   : > { %4796 = sst [smem:[#allocation6_spill]] %s4818_s26  ;;  %s4820_s27 = smov (%p31_p2, %s4816_s27), 0 }
   0xf   : > { %4797 = sst [smem:[#allocation7_spill]] %s4820_s27  ;;  %s4822_s29 = smov (!%p31_p2, %s33_s29), %s3744_s24 }
  0x10   : > { %p3848_p4 = por %p52_p3, %p51_p1  ;;  %p35_p6 = scmp.ge.s32.totalorder %s4822_s29, 2 }
  0x11   : > { %p153_p7 = scmp.eq.s32.totalorder %s2536_s28, 7  ;;  %s38_s5 = ssub.s32 %s3736_s22, %s4818_s26 }
  0x12   : > { %s40_s6 = ssub.s32 %s3740_s23, %s4820_s27  ;;  %s4824_s29 = smov (%p35_p6, %s4822_s29), 0 }
  0x13   : > { %4799 = sst [smem:[#allocation8_spill]] %s4824_s29  ;;  %s44_s7 = sadd.s32 1, %s3720_s18 }
  0x14   : > { %p3861_p8 = por %p153_p7, %p152_p5  ;;  %s37_s9 = ssub.s32 %s3744_s24, %s4824_s29 }
  0x15   : > { %s142_s10 = sadd.s32 1, %s3712_s16  ;;  %s39_s11 = sor.u32 %s38_s5, %s37_s9 }
  0x16   : > { %s139_s12 = sor.u32 %s40_s6, %s37_s9  ;;  %s41_s13 = sor.u32 %s40_s6, %s39_s11 }
  0x17   : > { %p140_p9 = scmp.eq.s32.totalorder %s139_s12, 0  ;;  %p42_p10 = scmp.eq.s32.totalorder %s41_s13, 0 }
  0x18   : > { %p2539_p11 = scmp.ge.s32.totalorder %s3748_s25, 8 }
  0x19   : > { %s3869_s14 = scalar_select %p140_p9, %s3712_s16, %s142_s10  }
  0x1a   : > { %s3872_s28 = scalar_select %p42_p10, %s3720_s18, %s44_s7  }
  0x1b   : > { %181 = sbr.rel (%p2539_p11) target bundleno = 47 (0x2f), region = 24 }
  0x22   : > { %184 = sbr.rel (!%p3848_p4) target bundleno = 47 (0x2f), region = 28  ;;  %s186_s29 = sand.u32 (%p3848_p4), 1, %s3720_s18  }
  0x23   : > { %s3069_s5 = sshll.u32 (%p3848_p4), %s3736_s22, 3  ;;  %s2540_s9 = sshll.u32 (%p3848_p4), %s186_s29, 5 }
  0x24   : > { %s191_s6 = sadd.s32 (%p3848_p4), %s3740_s23, %s3069_s5  ;;  %s2543_s11 = sshll.u32 (%p3848_p4), %s3744_s24, 4 }
  0x25   : > { %s193_s12 = sadd.s32 (%p3848_p4), %s2543_s11, %s191_s6  ;;  %s4801_s0 = sld [smem:[#allocation9_spill]] (%p3848_p4) }
  0x26   : > { %s2544_s10 = sshll.u32 (%p3848_p4), %s193_s12, 3  ;;  %s188_s30 = scalar_lea.vmem (%p3848_p4), [#allocation3], %s2540_s9 }
  0x2b   : > { %s195_s27 = scalar_lea.vmem %s4801_s0, %s2544_s10 }
  0x2c   : > { %v229_v0 = vld [vmem:[%s195_s27] sm:$0xff]  ;;  %v231_v1 = vld [vmem:[%s195_s27 + $0x10] sm:$0xff] }
  0x2d   : > { %v233_v2 = vld [vmem:[%s195_s27 + $0x20] sm:$0xff]  ;;  %230 = vst [vmem:[%s188_s30] sm:$0xff] %v229_v0  ;;  %232 = vst [vmem:[%s188_s30 + $0x8] sm:$0xff] %v231_v1  ;;  %v235_v3 = vld [vmem:[%s195_s27 + $0x30] sm:$0xff] }
  0x2e   : > { %234 = vst [vmem:[%s188_s30 + $0x10] sm:$0xff] %v233_v2  ;;  %236 = vst [vmem:[%s188_s30 + $0x18] sm:$0xff] %v235_v3 }
  0x2f PF: > { %p2545_p12 = scmp.ge.s32.totalorder %s3748_s25, 1  ;;  %p252_p13 = scmp.lt.s32.totalorder %s3748_s25, 9 }
  0x31   : > { %p253_p0 = pnand %p2545_p12, %p252_p13 }
  0x32   : > { %s259_s29 = sand.u32 (!%p253_p0), 1, %s3716_s17   ;;  %s288_s5 = sand.u32 (!%p253_p0), 1, %s3708_s15  }
  0x33   : > { %256 = sbr.rel (%p253_p0) target bundleno = 631 (0x277), region = 70  ;;  %s2546_s9 = sshll.u32 (!%p253_p0), %s259_s29, 5 }
  0x34   : > { %s2547_s6 = sshll.u32 (!%p253_p0), %s288_s5, 4  ;;  %p292_p1 = scmp.lt.s32.totalorder (!%p253_p0), %s3732_s21, 1 }
  0x35   : > { %p294_p2 = scmp.lt.s32.totalorder (!%p253_p0), %s3724_s19, 1  ;;  %s3897_s26 = scalar_lea.vmem (!%p253_p0), [#allocation3], %s2546_s9 }
  0x36   : > { %s3899_s24 = scalar_lea.vmem (!%p253_p0), [#allocation4], %s2547_s6  ;;  %p2550_p3 = scmp.ne.s32.totalorder (!%p253_p0), %s3724_s19, 0 }
  0x3a   : > { %s293_s27 = scalar_select %p292_p1, %s3732_s21, 1 }
  0x3b   : > { %s295_s11 = scalar_select %p294_p2, %s3724_s19, 1 }
  0x3c   : > { %s2548_s12 = sshll.u32 %s293_s27, 1  ;;  %304 = sbr.rel (%p2550_p3) target bundleno = 69 (0x45), region = 78  ;;  %v3750_v4 = vmov (!%p2550_p3), 0.0  }
  0x3d   : > { %s297_s10 = sadd.s32 %s2548_s12, %s295_s11  ;;  %305 = vst [vmem:[#allocation2] sm:$0xff] (!%p2550_p3), %v3750_v4  ;;  %306 = vst [vmem:[#allocation2 + $0x8] sm:$0xff] (!%p2550_p3), %v3750_v4 }
  0x3e   : > { %s2549_s13 = sshll.u32 %s297_s10, 2  ;;  %307 = vst [vmem:[#allocation2 + $0x10] sm:$0xff] (!%p2550_p3), %v3750_v4  ;;  %308 = vst [vmem:[#allocation2 + $0x18] sm:$0xff] (!%p2550_p3), %v3750_v4 }
  0x3f   : > { %s3895_s0 = scalar_lea.vmem %s4786_s1, %s2549_s13  ;;  %309 = vst [vmem:[#allocation2 + $0x20] sm:$0xff] (!%p2550_p3), %v3750_v4  ;;  %310 = vst [vmem:[#allocation2 + $0x28] sm:$0xff] (!%p2550_p3), %v3750_v4 }
  0x40   : > { %311 = vst [vmem:[#allocation2 + $0x30] sm:$0xff] (!%p2550_p3), %v3750_v4  ;;  %312 = vst [vmem:[#allocation2 + $0x38] sm:$0xff] (!%p2550_p3), %v3750_v4 }
  0x41   : > { %313 = vst [vmem:[#allocation2 + $0x40] sm:$0xff] (!%p2550_p3), %v3750_v4  ;;  %314 = vst [vmem:[#allocation2 + $0x48] sm:$0xff] (!%p2550_p3), %v3750_v4 }
  0x42   : > { %315 = vst [vmem:[#allocation2 + $0x50] sm:$0xff] (!%p2550_p3), %v3750_v4  ;;  %316 = vst [vmem:[#allocation2 + $0x58] sm:$0xff] (!%p2550_p3), %v3750_v4 }
  0x43   : > { %317 = vst [vmem:[#allocation2 + $0x60] sm:$0xff] %v3750_v4  ;;  %318 = vst [vmem:[#allocation2 + $0x68] sm:$0xff] %v3750_v4 }
  0x44   : > { %319 = vst [vmem:[#allocation2 + $0x70] sm:$0xff] %v3750_v4  ;;  %320 = vst [vmem:[#allocation2 + $0x78] sm:$0xff] %v3750_v4 }
  0x45 PF: > { %v321_v5 = vld [vmem:[%s3897_s26] sm:$0xff]  ;;  %v322_v6 = vld [vmem:[%s3897_s26 + $0x8] sm:$0xff]  ;;  %v3751_v7 = vmov 0.0   ;;  %v3752_v14 = vmov 1.0|1.0   ;;  %v323_v17 = vld [vmem:[%s3897_s26 + $0x10] sm:$0xff] }
  0x46   : > { %3214 = vmatprep.subr.bf16.mxu0 %v3751_v7  ;;  %3234 = vmatprep.subr.bf16.mxu1 %v3751_v7  ;;  %v3906_v8 = vunpack.c.0.s8 %v321_v5  ;;  %v3908_v9 = vunpack.c.1.s8 %v321_v5  ;;  %v3910_v10 = vunpack.c.2.s8 %v321_v5  ;;  %v3912_v11 = vunpack.c.3.s8 %v321_v5  ;;  %v324_v22 = vld [vmem:[%s3897_s26 + $0x18] sm:$0xff]  ;;  %v4010_v27 = vld [vmem:[%s3895_s0] sm:$0xf]  ;;  %v538_v30 = vld [vmem:[#allocation2 + $0x8] sm:$0xff]  ;;  %p3063_p4 = scmp.ne.s32.totalorder %s3724_s19, 1 }
  0x47   : > { %v3914_v12 = vunpack.c.0.s8 %v322_v6  ;;  %v3916_v13 = vunpack.c.1.s8 %v322_v6  ;;  %v3932_v15 = vunpack.c.2.s8 %v322_v6  ;;  %v3934_v16 = vunpack.c.3.s8 %v322_v6  ;;  %v4438_v28 = vld [vmem:[%s3895_s0] sm:$0xf]  ;;  %v638_v41 = vld [vmem:[#allocation2 + $0x10] sm:$0xff]  ;;  %v738_v42 = vld [vmem:[#allocation2 + $0x18] sm:$0xff] }
  0x48   : > { %vm342_vm0 = vcmp.eq.s32.totalorder %v3906_v8, 0  ;;  %vm343_vm1 = vcmp.eq.s32.totalorder %v3908_v9, 0  ;;  %vm441_vm2 = vcmp.eq.s32.totalorder %v3906_v8, 1  ;;  %vm442_vm3 = vcmp.eq.s32.totalorder %v3908_v9, 1  ;;  %v438_v29 = vld [vmem:[#allocation2] sm:$0xff]  ;;  %v938_v54 = vld [vmem:[#allocation2 + $0x28] sm:$0xff] }
  0x49   : > { %vm2567_vm4 = vmpackc.low %vm343_vm1, %vm342_vm0  ;;  %vm344_vm5 = vcmp.eq.s32.totalorder %v3910_v10, 0  ;;  %vm345_vm6 = vcmp.eq.s32.totalorder %v3912_v11, 0  ;;  %vm443_vm7 = vcmp.eq.s32.totalorder %v3910_v10, 1  ;;  %vm444_vm8 = vcmp.eq.s32.totalorder %v3912_v11, 1  ;;  %v838_v53 = vld [vmem:[#allocation2 + $0x20] sm:$0xff]  ;;  %v1038_v1 = vld [vmem:[#allocation2 + $0x30] sm:$0xff] }
  0x4a   : > { %3215 = vmatpush3.bf16.msk.msra.mxu0 %vm2567_vm4, %v3752_v14  ;;  %vm2599_vm9 = vmpackc.low %vm442_vm3, %vm441_vm2  ;;  %vm346_vm12 = vcmp.eq.s32.totalorder %v3914_v12, 0  ;;  %vm347_vm13 = vcmp.eq.s32.totalorder %v3916_v13, 0  ;;  %vm445_vm14 = vcmp.eq.s32.totalorder %v3914_v12, 1  ;;  %vm446_vm15 = vcmp.eq.s32.totalorder %v3916_v13, 1  ;;  %v1138_v2 = vld [vmem:[#allocation2 + $0x38] sm:$0xff] }
  0x4b   : > { %3235 = vmatpush3.bf16.msk.msra.mxu1 %vm2599_vm9, %v3752_v14  ;;  %3216 = vmatprep.subr.bf16.mxu0 %v3751_v7  ;;  %vm2569_vm10 = vmpackc.low %vm345_vm6, %vm344_vm5  ;;  %vm348_vm2 = vcmp.eq.s32.totalorder %v3932_v15, 0  ;;  %vm349_vm3 = vcmp.eq.s32.totalorder %v3934_v16, 0  ;;  %v3945_v18 = vunpack.c.0.s8 %v323_v17  ;;  %v3947_v19 = vunpack.c.1.s8 %v323_v17 }
  0x4c   : > { %3236 = vmatprep.subr.bf16.mxu1 %v3751_v7  ;;  %vm2601_vm11 = vmpackc.low %vm444_vm8, %vm443_vm7  ;;  %vm447_vm4 = vcmp.eq.s32.totalorder %v3932_v15, 1  ;;  %vm448_vm5 = vcmp.eq.s32.totalorder %v3934_v16, 1  ;;  %v3957_v20 = vunpack.c.2.s8 %v323_v17  ;;  %v3959_v21 = vunpack.c.3.s8 %v323_v17 }
  0x4d   : > { %vm2571_vm0 = vmpackc.low %vm347_vm13, %vm346_vm12  ;;  %vm350_vm8 = vcmp.eq.s32.totalorder %v3945_v18, 0  ;;  %vm351_vm9 = vcmp.eq.s32.totalorder %v3947_v19, 0  ;;  %vm450_vm12 = vcmp.eq.s32.totalorder %v3947_v19, 1  ;;  %v3974_v23 = vunpack.c.0.s8 %v324_v22 }
  0x4e   : > { %3217 = vmatpush3.bf16.msk.msra.mxu0 %vm2569_vm10, %v3752_v14  ;;  %vm2603_vm1 = vmpackc.low %vm446_vm15, %vm445_vm14  ;;  %vm3753_vm10 = vmmov 0   ;;  %vm352_vm15 = vcmp.eq.s32.totalorder %v3957_v20, 0  ;;  %v3976_v24 = vunpack.c.1.s8 %v324_v22  ;;  %v3986_v25 = vunpack.c.2.s8 %v324_v22 }
  0x4f   : > { %3237 = vmatpush3.bf16.msk.msra.mxu1 %vm2601_vm11, %v3752_v14  ;;  %3218 = vmatprep.subr.bf16.mxu0 %v3751_v7  ;;  %vm2573_vm6 = vmpackc.low %vm349_vm3, %vm348_vm2  ;;  %vm449_vm11 = vcmp.eq.s32.totalorder %v3945_v18, 1  ;;  %vm452_vm2 = vcmp.eq.s32.totalorder %v3959_v21, 1  ;;  %v3988_v26 = vunpack.c.3.s8 %v324_v22 }
  0x50   : > { %3238 = vmatprep.subr.bf16.mxu1 %v3751_v7  ;;  %vm2605_vm7 = vmpackc.low %vm448_vm5, %vm447_vm4  ;;  %3230 = vmatprep.mubr.msk.bf16.mxu0 %vm3753_vm10, %v3751_v7  ;;  %vm354_vm5 = vcmp.eq.s32.totalorder %v3974_v23, 0 }
  0x51   : > { %3250 = vmatprep.mubr.msk.bf16.mxu1 %vm3753_vm10, %v3751_v7  ;;  %vm2575_vm13 = vmpackc.low %vm351_vm9, %vm350_vm8  ;;  %vm454_vm8 = vcmp.eq.s32.totalorder %v3976_v24, 1 }
  0x52   : > { %3219 = vmatpush3.bf16.msk.msra.mxu0 %vm2571_vm0, %v3752_v14  ;;  %vm2607_vm14 = vmpackc.low %vm450_vm12, %vm449_vm11  ;;  %vm353_vm0 = vcmp.eq.s32.totalorder %v3959_v21, 0  ;;  %vm356_vm12 = vcmp.eq.s32.totalorder %v3986_v25, 0 }
  0x53   : > { %3239 = vmatpush3.bf16.msk.msra.mxu1 %vm2603_vm1, %v3752_v14  ;;  %3220 = vmatprep.subr.bf16.mxu0 %v3751_v7  ;;  %vm451_vm1 = vcmp.eq.s32.totalorder %v3957_v20, 1  ;;  %vm2577_vm3 = vmpackc.low %vm353_vm0, %vm352_vm15  ;;  %vm456_vm15 = vcmp.eq.s32.totalorder %v3988_v26, 1 }
  0x54   : > { %3240 = vmatprep.subr.bf16.mxu1 %v3751_v7  ;;  %vm2609_vm4 = vmpackc.low %vm452_vm2, %vm451_vm1  ;;  %vm541_vm2 = vcmp.eq.s32.totalorder %v3906_v8, 2 }
  0x56   : > { %3221 = vmatpush3.bf16.msk.msra.mxu0 %vm2573_vm6, %v3752_v14  ;;  %vm355_vm6 = vcmp.eq.s32.totalorder %v3976_v24, 0 }
  0x57   : > { %3241 = vmatpush3.bf16.msk.msra.mxu1 %vm2605_vm7, %v3752_v14  ;;  %3222 = vmatprep.subr.bf16.mxu0 %v3751_v7  ;;  %vm453_vm7 = vcmp.eq.s32.totalorder %v3974_v23, 1  ;;  %vm2579_vm9 = vmpackc.low %vm355_vm6, %vm354_vm5  ;;  %vm642_vm5 = vcmp.eq.s32.totalorder %v3908_v9, 3 }
  0x58   : > { %3242 = vmatprep.subr.bf16.mxu1 %v3751_v7  ;;  %vm2611_vm11 = vmpackc.low %vm454_vm8, %vm453_vm7  ;;  %vm543_vm8 = vcmp.eq.s32.totalorder %v3910_v10, 2 }
  0x5a   : > { %3223 = vmatpush3.bf16.msk.msra.mxu0 %vm2575_vm13, %v3752_v14  ;;  %vm357_vm13 = vcmp.eq.s32.totalorder %v3988_v26, 0 }
  0x5b   : > { %3243 = vmatpush3.bf16.msk.msra.mxu1 %vm2607_vm14, %v3752_v14  ;;  %3224 = vmatprep.subr.bf16.mxu0 %v3751_v7  ;;  %vm455_vm14 = vcmp.eq.s32.totalorder %v3986_v25, 1  ;;  %vm2581_vm0 = vmpackc.low %vm357_vm13, %vm356_vm12  ;;  %vm644_vm12 = vcmp.eq.s32.totalorder %v3912_v11, 3 }
  0x5c   : > { %3244 = vmatprep.subr.bf16.mxu1 %v3751_v7  ;;  %vm2613_vm1 = vmpackc.low %vm456_vm15, %vm455_vm14  ;;  %vm545_vm15 = vcmp.eq.s32.totalorder %v3914_v12, 2 }
  0x5e   : > { %3225 = vmatpush3.bf16.msk.msra.mxu0 %vm2577_vm3, %v3752_v14  ;;  %vm542_vm3 = vcmp.eq.s32.totalorder %v3908_v9, 2 }
  0x5f   : > { %3245 = vmatpush3.bf16.msk.msra.mxu1 %vm2609_vm4, %v3752_v14  ;;  %3226 = vmatprep.subr.bf16.mxu0 %v3751_v7  ;;  %vm641_vm4 = vcmp.eq.s32.totalorder %v3906_v8, 3  ;;  %vm2631_vm6 = vmpackc.low %vm542_vm3, %vm541_vm2  ;;  %vm646_vm2 = vcmp.eq.s32.totalorder %v3916_v13, 3 }
  0x60   : > { %3246 = vmatprep.subr.bf16.mxu1 %v3751_v7  ;;  %vm2663_vm7 = vmpackc.low %vm642_vm5, %vm641_vm4  ;;  %vm547_vm5 = vcmp.eq.s32.totalorder %v3932_v15, 2 }
  0x62   : > { %3227 = vmatpush3.bf16.msk.msra.mxu0 %vm2579_vm9, %v3752_v14  ;;  %vm544_vm9 = vcmp.eq.s32.totalorder %v3912_v11, 2 }
  0x63   : > { %3247 = vmatpush3.bf16.msk.msra.mxu1 %vm2611_vm11, %v3752_v14  ;;  %3228 = vmatprep.subr.bf16.mxu0 %v3751_v7  ;;  %vm643_vm11 = vcmp.eq.s32.totalorder %v3910_v10, 3  ;;  %vm2633_vm13 = vmpackc.low %vm544_vm9, %vm543_vm8  ;;  %vm648_vm8 = vcmp.eq.s32.totalorder %v3934_v16, 3 }
  0x64   : > { %3248 = vmatprep.subr.bf16.mxu1 %v3751_v7  ;;  %vm2665_vm14 = vmpackc.low %vm644_vm12, %vm643_vm11  ;;  %vm549_vm12 = vcmp.eq.s32.totalorder %v3945_v18, 2 }
  0x66   : > { %3229 = vmatpush3.bf16.msk.msra.mxu0 %vm2581_vm0, %v3752_v14  ;;  %vm546_vm0 = vcmp.eq.s32.totalorder %v3916_v13, 2 }
  0x67   : > { %3249 = vmatpush3.bf16.msk.msra.mxu1 %vm2613_vm1, %v3752_v14  ;;  %3254 = vmatprep.subr.bf16.mxu0 %v3751_v7  ;;  %vm645_vm1 = vcmp.eq.s32.totalorder %v3914_v12, 3  ;;  %vm2635_vm3 = vmpackc.low %vm546_vm0, %vm545_vm15  ;;  %vm650_vm15 = vcmp.eq.s32.totalorder %v3947_v19, 3 }
  0x68   : > { %3274 = vmatprep.subr.bf16.mxu1 %v3751_v7  ;;  %vm2667_vm4 = vmpackc.low %vm646_vm2, %vm645_vm1  ;;  %vm551_vm2 = vcmp.eq.s32.totalorder %v3957_v20, 2 }
  0x69   : > { %3231 = vmatmul.mubr.bf16.vlgmr.msra.gmra.mrb[0].mxu0 %v4010_v27 }
  0x6a   : > { %3251 = vmatmul.mubr.bf16.vlgmr.msra.gmra.mrb[0].mxu1 %v4010_v27  ;;  %3255 = vmatpush3.bf16.msk.msra.mxu0 %vm2631_vm6, %v3752_v14  ;;  %vm548_vm6 = vcmp.eq.s32.totalorder %v3934_v16, 2 }
  0x6b   : > { %3275 = vmatpush3.bf16.msk.msra.mxu1 %vm2663_vm7, %v3752_v14  ;;  %3256 = vmatprep.subr.bf16.mxu0 %v3751_v7  ;;  %vm647_vm7 = vcmp.eq.s32.totalorder %v3932_v15, 3  ;;  %vm2637_vm9 = vmpackc.low %vm548_vm6, %vm547_vm5  ;;  %vm652_vm5 = vcmp.eq.s32.totalorder %v3959_v21, 3 }
  0x6c   : > { %3276 = vmatprep.subr.bf16.mxu1 %v3751_v7  ;;  %3270 = vmatprep.mubr.msk.bf16.mxu0 %vm3753_vm10, %v3751_v7  ;;  %vm2669_vm11 = vmpackc.low %vm648_vm8, %vm647_vm7  ;;  %vm553_vm8 = vcmp.eq.s32.totalorder %v3974_v23, 2 }
  0x6d   : > { %3290 = vmatprep.mubr.msk.bf16.mxu1 %vm3753_vm10, %v3751_v7 }
  0x6e   : > { %3257 = vmatpush3.bf16.msk.msra.mxu0 %vm2633_vm13, %v3752_v14  ;;  %vm550_vm13 = vcmp.eq.s32.totalorder %v3947_v19, 2 }
  0x6f   : > { %3277 = vmatpush3.bf16.msk.msra.mxu1 %vm2665_vm14, %v3752_v14  ;;  %3258 = vmatprep.subr.bf16.mxu0 %v3751_v7  ;;  %vm649_vm14 = vcmp.eq.s32.totalorder %v3945_v18, 3  ;;  %vm2639_vm0 = vmpackc.low %vm550_vm13, %vm549_vm12  ;;  %vm654_vm12 = vcmp.eq.s32.totalorder %v3976_v24, 3 }
  0x70   : > { %3278 = vmatprep.subr.bf16.mxu1 %v3751_v7  ;;  %vm2671_vm1 = vmpackc.low %vm650_vm15, %vm649_vm14  ;;  %vm555_vm15 = vcmp.eq.s32.totalorder %v3986_v25, 2 }
  0x72   : > { %3259 = vmatpush3.bf16.msk.msra.mxu0 %vm2635_vm3, %v3752_v14  ;;  %vm552_vm3 = vcmp.eq.s32.totalorder %v3959_v21, 2 }
  0x73   : > { %3279 = vmatpush3.bf16.msk.msra.mxu1 %vm2667_vm4, %v3752_v14  ;;  %3260 = vmatprep.subr.bf16.mxu0 %v3751_v7  ;;  %vm651_vm4 = vcmp.eq.s32.totalorder %v3957_v20, 3  ;;  %vm2641_vm6 = vmpackc.low %vm552_vm3, %vm551_vm2  ;;  %vm656_vm2 = vcmp.eq.s32.totalorder %v3988_v26, 3 }
  0x74   : > { %3280 = vmatprep.subr.bf16.mxu1 %v3751_v7  ;;  %vm2673_vm7 = vmpackc.low %vm652_vm5, %vm651_vm4  ;;  %vm741_vm5 = vcmp.eq.s32.totalorder %v3906_v8, 4 }
  0x76   : > { %3261 = vmatpush3.bf16.msk.msra.mxu0 %vm2637_vm9, %v3752_v14  ;;  %vm554_vm9 = vcmp.eq.s32.totalorder %v3976_v24, 2 }
  0x77   : > { %3281 = vmatpush3.bf16.msk.msra.mxu1 %vm2669_vm11, %v3752_v14  ;;  %3262 = vmatprep.subr.bf16.mxu0 %v3751_v7  ;;  %vm653_vm11 = vcmp.eq.s32.totalorder %v3974_v23, 3  ;;  %vm2643_vm13 = vmpackc.low %vm554_vm9, %vm553_vm8  ;;  %vm842_vm8 = vcmp.eq.s32.totalorder %v3908_v9, 5 }
  0x78   : > { %3282 = vmatprep.subr.bf16.mxu1 %v3751_v7  ;;  %vm2675_vm14 = vmpackc.low %vm654_vm12, %vm653_vm11  ;;  %vm743_vm12 = vcmp.eq.s32.totalorder %v3910_v10, 4 }
  0x7a   : > { %3263 = vmatpush3.bf16.msk.msra.mxu0 %vm2639_vm0, %v3752_v14  ;;  %vm556_vm0 = vcmp.eq.s32.totalorder %v3988_v26, 2 }
  0x7b   : > { %3283 = vmatpush3.bf16.msk.msra.mxu1 %vm2671_vm1, %v3752_v14  ;;  %3264 = vmatprep.subr.bf16.mxu0 %v3751_v7  ;;  %vm655_vm1 = vcmp.eq.s32.totalorder %v3986_v25, 3  ;;  %vm2645_vm3 = vmpackc.low %vm556_vm0, %vm555_vm15  ;;  %vm844_vm15 = vcmp.eq.s32.totalorder %v3912_v11, 5 }
  0x7c   : > { %3284 = vmatprep.subr.bf16.mxu1 %v3751_v7  ;;  %vm2677_vm4 = vmpackc.low %vm656_vm2, %vm655_vm1  ;;  %vm745_vm2 = vcmp.eq.s32.totalorder %v3914_v12, 4 }
  0x7e   : > { %3265 = vmatpush3.bf16.msk.msra.mxu0 %vm2641_vm6, %v3752_v14  ;;  %vm742_vm6 = vcmp.eq.s32.totalorder %v3908_v9, 4 }
  0x7f   : > { %3285 = vmatpush3.bf16.msk.msra.mxu1 %vm2673_vm7, %v3752_v14  ;;  %3266 = vmatprep.subr.bf16.mxu0 %v3751_v7  ;;  %vm841_vm7 = vcmp.eq.s32.totalorder %v3906_v8, 5  ;;  %vm2695_vm9 = vmpackc.low %vm742_vm6, %vm741_vm5  ;;  %vm846_vm5 = vcmp.eq.s32.totalorder %v3916_v13, 5 }
  0x80   : > { %3286 = vmatprep.subr.bf16.mxu1 %v3751_v7  ;;  %vm2727_vm11 = vmpackc.low %vm842_vm8, %vm841_vm7  ;;  %vm747_vm8 = vcmp.eq.s32.totalorder %v3932_v15, 4 }
  0x82   : > { %3267 = vmatpush3.bf16.msk.msra.mxu0 %vm2643_vm13, %v3752_v14  ;;  %vm744_vm13 = vcmp.eq.s32.totalorder %v3912_v11, 4 }
  0x83   : > { %3287 = vmatpush3.bf16.msk.msra.mxu1 %vm2675_vm14, %v3752_v14  ;;  %3268 = vmatprep.subr.bf16.mxu0 %v3751_v7  ;;  %vm843_vm14 = vcmp.eq.s32.totalorder %v3910_v10, 5  ;;  %vm2697_vm0 = vmpackc.low %vm744_vm13, %vm743_vm12  ;;  %vm848_vm12 = vcmp.eq.s32.totalorder %v3934_v16, 5 }
  0x84   : > { %3288 = vmatprep.subr.bf16.mxu1 %v3751_v7  ;;  %vm2729_vm1 = vmpackc.low %vm844_vm15, %vm843_vm14  ;;  %vm749_vm15 = vcmp.eq.s32.totalorder %v3945_v18, 4 }
  0x86   : > { %3269 = vmatpush3.bf16.msk.msra.mxu0 %vm2645_vm3, %v3752_v14  ;;  %vm746_vm3 = vcmp.eq.s32.totalorder %v3916_v13, 4 }
  0x87   : > { %3289 = vmatpush3.bf16.msk.msra.mxu1 %vm2677_vm4, %v3752_v14  ;;  %3294 = vmatprep.subr.bf16.mxu0 %v3751_v7  ;;  %vm845_vm4 = vcmp.eq.s32.totalorder %v3914_v12, 5  ;;  %vm2699_vm6 = vmpackc.low %vm746_vm3, %vm745_vm2  ;;  %vm850_vm2 = vcmp.eq.s32.totalorder %v3947_v19, 5 }
  0x88   : > { %3314 = vmatprep.subr.bf16.mxu1 %v3751_v7  ;;  %vm2731_vm7 = vmpackc.low %vm846_vm5, %vm845_vm4  ;;  %vm751_vm5 = vcmp.eq.s32.totalorder %v3957_v20, 4 }
  0x89   : > { %3271 = vmatmul.mubr.bf16.vlgmr.msra.gmra.mrb[4].mxu0 %v4010_v27 }
  0x8a   : > { %3291 = vmatmul.mubr.bf16.vlgmr.msra.gmra.mrb[4].mxu1 %v4010_v27  ;;  %3295 = vmatpush3.bf16.msk.msra.mxu0 %vm2695_vm9, %v3752_v14  ;;  %vm748_vm9 = vcmp.eq.s32.totalorder %v3934_v16, 4 }
  0x8b   : > { %3315 = vmatpush3.bf16.msk.msra.mxu1 %vm2727_vm11, %v3752_v14  ;;  %3296 = vmatprep.subr.bf16.mxu0 %v3751_v7  ;;  %vm847_vm11 = vcmp.eq.s32.totalorder %v3932_v15, 5  ;;  %vm2701_vm13 = vmpackc.low %vm748_vm9, %vm747_vm8  ;;  %vm852_vm8 = vcmp.eq.s32.totalorder %v3959_v21, 5 }
  0x8c   : > { %3316 = vmatprep.subr.bf16.mxu1 %v3751_v7  ;;  %3310 = vmatprep.mubr.msk.bf16.mxu0 %vm3753_vm10, %v3751_v7  ;;  %vm2733_vm14 = vmpackc.low %vm848_vm12, %vm847_vm11  ;;  %vm753_vm12 = vcmp.eq.s32.totalorder %v3974_v23, 4 }
  0x8d   : > { %3330 = vmatprep.mubr.msk.bf16.mxu1 %vm3753_vm10, %v3751_v7 }
  0x8e   : > { %3297 = vmatpush3.bf16.msk.msra.mxu0 %vm2697_vm0, %v3752_v14  ;;  %vm750_vm0 = vcmp.eq.s32.totalorder %v3947_v19, 4 }
  0x8f   : > { %3317 = vmatpush3.bf16.msk.msra.mxu1 %vm2729_vm1, %v3752_v14  ;;  %3298 = vmatprep.subr.bf16.mxu0 %v3751_v7  ;;  %vm849_vm1 = vcmp.eq.s32.totalorder %v3945_v18, 5  ;;  %vm2703_vm3 = vmpackc.low %vm750_vm0, %vm749_vm15  ;;  %vm854_vm15 = vcmp.eq.s32.totalorder %v3976_v24, 5 }
  0x90   : > { %3318 = vmatprep.subr.bf16.mxu1 %v3751_v7  ;;  %vm2735_vm4 = vmpackc.low %vm850_vm2, %vm849_vm1  ;;  %vm755_vm2 = vcmp.eq.s32.totalorder %v3986_v25, 4 }
  0x92   : > { %3299 = vmatpush3.bf16.msk.msra.mxu0 %vm2699_vm6, %v3752_v14  ;;  %vm752_vm6 = vcmp.eq.s32.totalorder %v3959_v21, 4 }
  0x93   : > { %3319 = vmatpush3.bf16.msk.msra.mxu1 %vm2731_vm7, %v3752_v14  ;;  %3300 = vmatprep.subr.bf16.mxu0 %v3751_v7  ;;  %vm851_vm7 = vcmp.eq.s32.totalorder %v3957_v20, 5  ;;  %vm2705_vm9 = vmpackc.low %vm752_vm6, %vm751_vm5  ;;  %vm856_vm5 = vcmp.eq.s32.totalorder %v3988_v26, 5 }
  0x94   : > { %3320 = vmatprep.subr.bf16.mxu1 %v3751_v7  ;;  %vm2737_vm11 = vmpackc.low %vm852_vm8, %vm851_vm7  ;;  %vm941_vm8 = vcmp.eq.s32.totalorder %v3906_v8, 6 }
  0x96   : > { %3301 = vmatpush3.bf16.msk.msra.mxu0 %vm2701_vm13, %v3752_v14  ;;  %vm754_vm13 = vcmp.eq.s32.totalorder %v3976_v24, 4 }
  0x97   : > { %3321 = vmatpush3.bf16.msk.msra.mxu1 %vm2733_vm14, %v3752_v14  ;;  %3302 = vmatprep.subr.bf16.mxu0 %v3751_v7  ;;  %vm853_vm14 = vcmp.eq.s32.totalorder %v3974_v23, 5  ;;  %vm2707_vm0 = vmpackc.low %vm754_vm13, %vm753_vm12  ;;  %vm1042_vm12 = vcmp.eq.s32.totalorder %v3908_v9, 7 }
  0x98   : > { %3322 = vmatprep.subr.bf16.mxu1 %v3751_v7  ;;  %vm2739_vm1 = vmpackc.low %vm854_vm15, %vm853_vm14  ;;  %vm943_vm15 = vcmp.eq.s32.totalorder %v3910_v10, 6 }
  0x9a   : > { %3303 = vmatpush3.bf16.msk.msra.mxu0 %vm2703_vm3, %v3752_v14  ;;  %vm756_vm3 = vcmp.eq.s32.totalorder %v3988_v26, 4 }
  0x9b   : > { %3323 = vmatpush3.bf16.msk.msra.mxu1 %vm2735_vm4, %v3752_v14  ;;  %3304 = vmatprep.subr.bf16.mxu0 %v3751_v7  ;;  %vm855_vm4 = vcmp.eq.s32.totalorder %v3986_v25, 5  ;;  %vm2709_vm6 = vmpackc.low %vm756_vm3, %vm755_vm2  ;;  %vm1044_vm2 = vcmp.eq.s32.totalorder %v3912_v11, 7 }
  0x9c   : > { %3324 = vmatprep.subr.bf16.mxu1 %v3751_v7  ;;  %vm2741_vm7 = vmpackc.low %vm856_vm5, %vm855_vm4  ;;  %vm945_vm5 = vcmp.eq.s32.totalorder %v3914_v12, 6 }
  0x9e   : > { %3305 = vmatpush3.bf16.msk.msra.mxu0 %vm2705_vm9, %v3752_v14  ;;  %vm942_vm9 = vcmp.eq.s32.totalorder %v3908_v9, 6 }
  0x9f   : > { %3325 = vmatpush3.bf16.msk.msra.mxu1 %vm2737_vm11, %v3752_v14  ;;  %3306 = vmatprep.subr.bf16.mxu0 %v3751_v7  ;;  %vm1041_vm11 = vcmp.eq.s32.totalorder %v3906_v8, 7  ;;  %vm2759_vm13 = vmpackc.low %vm942_vm9, %vm941_vm8  ;;  %vm1046_vm8 = vcmp.eq.s32.totalorder %v3916_v13, 7 }
  0xa0   : > { %3326 = vmatprep.subr.bf16.mxu1 %v3751_v7  ;;  %vm2791_vm14 = vmpackc.low %vm1042_vm12, %vm1041_vm11  ;;  %vm947_vm12 = vcmp.eq.s32.totalorder %v3932_v15, 6 }
  0xa2   : > { %3307 = vmatpush3.bf16.msk.msra.mxu0 %vm2707_vm0, %v3752_v14  ;;  %vm944_vm0 = vcmp.eq.s32.totalorder %v3912_v11, 6 }
  0xa3   : > { %3327 = vmatpush3.bf16.msk.msra.mxu1 %vm2739_vm1, %v3752_v14  ;;  %3308 = vmatprep.subr.bf16.mxu0 %v3751_v7  ;;  %vm1043_vm1 = vcmp.eq.s32.totalorder %v3910_v10, 7  ;;  %vm2761_vm3 = vmpackc.low %vm944_vm0, %vm943_vm15  ;;  %vm1048_vm15 = vcmp.eq.s32.totalorder %v3934_v16, 7 }
  0xa4   : > { %3328 = vmatprep.subr.bf16.mxu1 %v3751_v7  ;;  %vm2793_vm4 = vmpackc.low %vm1044_vm2, %vm1043_vm1  ;;  %vm949_vm2 = vcmp.eq.s32.totalorder %v3945_v18, 6 }
  0xa6   : > { %3309 = vmatpush3.bf16.msk.msra.mxu0 %vm2709_vm6, %v3752_v14  ;;  %vm946_vm6 = vcmp.eq.s32.totalorder %v3916_v13, 6 }
  0xa7   : > { %3329 = vmatpush3.bf16.msk.msra.mxu1 %vm2741_vm7, %v3752_v14  ;;  %3334 = vmatprep.subr.bf16.mxu0 %v3751_v7  ;;  %vm1045_vm7 = vcmp.eq.s32.totalorder %v3914_v12, 7  ;;  %vm2763_vm9 = vmpackc.low %vm946_vm6, %vm945_vm5  ;;  %vm1050_vm5 = vcmp.eq.s32.totalorder %v3947_v19, 7 }
  0xa8   : > { %3354 = vmatprep.subr.bf16.mxu1 %v3751_v7  ;;  %vm2795_vm11 = vmpackc.low %vm1046_vm8, %vm1045_vm7  ;;  %vm951_vm8 = vcmp.eq.s32.totalorder %v3957_v20, 6 }
  0xa9   : > { %3311 = vmatmul.mubr.bf16.vlgmr.msra.gmra.mrb[8].mxu0 %v4010_v27 }
  0xaa   : > { %3331 = vmatmul.mubr.bf16.vlgmr.msra.gmra.mrb[8].mxu1 %v4010_v27  ;;  %3335 = vmatpush3.bf16.msk.msra.mxu0 %vm2759_vm13, %v3752_v14  ;;  %vm948_vm13 = vcmp.eq.s32.totalorder %v3934_v16, 6 }
  0xab   : > { %3355 = vmatpush3.bf16.msk.msra.mxu1 %vm2791_vm14, %v3752_v14  ;;  %3336 = vmatprep.subr.bf16.mxu0 %v3751_v7  ;;  %vm1047_vm14 = vcmp.eq.s32.totalorder %v3932_v15, 7  ;;  %vm2765_vm0 = vmpackc.low %vm948_vm13, %vm947_vm12  ;;  %vm1052_vm12 = vcmp.eq.s32.totalorder %v3959_v21, 7 }
  0xac   : > { %3356 = vmatprep.subr.bf16.mxu1 %v3751_v7  ;;  %3350 = vmatprep.mubr.msk.bf16.mxu0 %vm3753_vm10, %v3751_v7  ;;  %vm2797_vm1 = vmpackc.low %vm1048_vm15, %vm1047_vm14  ;;  %vm953_vm15 = vcmp.eq.s32.totalorder %v3974_v23, 6 }
  0xad   : > { %3370 = vmatprep.mubr.msk.bf16.mxu1 %vm3753_vm10, %v3751_v7 }
  0xae   : > { %3337 = vmatpush3.bf16.msk.msra.mxu0 %vm2761_vm3, %v3752_v14  ;;  %vm950_vm3 = vcmp.eq.s32.totalorder %v3947_v19, 6 }
  0xaf   : > { %3357 = vmatpush3.bf16.msk.msra.mxu1 %vm2793_vm4, %v3752_v14  ;;  %3338 = vmatprep.subr.bf16.mxu0 %v3751_v7  ;;  %vm1049_vm4 = vcmp.eq.s32.totalorder %v3945_v18, 7  ;;  %vm2767_vm6 = vmpackc.low %vm950_vm3, %vm949_vm2  ;;  %vm1054_vm2 = vcmp.eq.s32.totalorder %v3976_v24, 7 }
  0xb0   : > { %3358 = vmatprep.subr.bf16.mxu1 %v3751_v7  ;;  %vm2799_vm7 = vmpackc.low %vm1050_vm5, %vm1049_vm4  ;;  %vm955_vm5 = vcmp.eq.s32.totalorder %v3986_v25, 6 }
  0xb2   : > { %3339 = vmatpush3.bf16.msk.msra.mxu0 %vm2763_vm9, %v3752_v14  ;;  %vm952_vm9 = vcmp.eq.s32.totalorder %v3959_v21, 6 }
  0xb3   : > { %3359 = vmatpush3.bf16.msk.msra.mxu1 %vm2795_vm11, %v3752_v14  ;;  %3340 = vmatprep.subr.bf16.mxu0 %v3751_v7  ;;  %vm1051_vm11 = vcmp.eq.s32.totalorder %v3957_v20, 7  ;;  %vm2769_vm13 = vmpackc.low %vm952_vm9, %vm951_vm8  ;;  %vm1056_vm8 = vcmp.eq.s32.totalorder %v3988_v26, 7 }
  0xb4   : > { %3360 = vmatprep.subr.bf16.mxu1 %v3751_v7  ;;  %vm2801_vm14 = vmpackc.low %vm1052_vm12, %vm1051_vm11  ;;  %vm1141_vm12 = vcmp.eq.s32.totalorder %v3906_v8, 8 }
  0xb6   : > { %3341 = vmatpush3.bf16.msk.msra.mxu0 %vm2765_vm0, %v3752_v14  ;;  %vm954_vm0 = vcmp.eq.s32.totalorder %v3976_v24, 6 }
  0xb7   : > { %3361 = vmatpush3.bf16.msk.msra.mxu1 %vm2797_vm1, %v3752_v14  ;;  %3342 = vmatprep.subr.bf16.mxu0 %v3751_v7  ;;  %vm1053_vm1 = vcmp.eq.s32.totalorder %v3974_v23, 7  ;;  %vm2771_vm3 = vmpackc.low %vm954_vm0, %vm953_vm15  ;;  %vm1242_vm15 = vcmp.eq.s32.totalorder %v3908_v9, 9 }
  0xb8   : > { %3362 = vmatprep.subr.bf16.mxu1 %v3751_v7  ;;  %vm2803_vm4 = vmpackc.low %vm1054_vm2, %vm1053_vm1  ;;  %vm1143_vm2 = vcmp.eq.s32.totalorder %v3910_v10, 8 }
  0xba   : > { %3343 = vmatpush3.bf16.msk.msra.mxu0 %vm2767_vm6, %v3752_v14  ;;  %vm956_vm6 = vcmp.eq.s32.totalorder %v3988_v26, 6 }
  0xbb   : > { %3363 = vmatpush3.bf16.msk.msra.mxu1 %vm2799_vm7, %v3752_v14  ;;  %3344 = vmatprep.subr.bf16.mxu0 %v3751_v7  ;;  %vm1055_vm7 = vcmp.eq.s32.totalorder %v3986_v25, 7  ;;  %vm2773_vm9 = vmpackc.low %vm956_vm6, %vm955_vm5  ;;  %vm1244_vm5 = vcmp.eq.s32.totalorder %v3912_v11, 9 }
  0xbc   : > { %3364 = vmatprep.subr.bf16.mxu1 %v3751_v7  ;;  %vm2805_vm11 = vmpackc.low %vm1056_vm8, %vm1055_vm7  ;;  %vm1145_vm8 = vcmp.eq.s32.totalorder %v3914_v12, 8 }
  0xbe   : > { %3345 = vmatpush3.bf16.msk.msra.mxu0 %vm2769_vm13, %v3752_v14  ;;  %vm1142_vm13 = vcmp.eq.s32.totalorder %v3908_v9, 8 }
  0xbf   : > { %3365 = vmatpush3.bf16.msk.msra.mxu1 %vm2801_vm14, %v3752_v14  ;;  %3346 = vmatprep.subr.bf16.mxu0 %v3751_v7  ;;  %vm1241_vm14 = vcmp.eq.s32.totalorder %v3906_v8, 9  ;;  %vm2823_vm0 = vmpackc.low %vm1142_vm13, %vm1141_vm12  ;;  %vm1246_vm12 = vcmp.eq.s32.totalorder %v3916_v13, 9 }
  0xc0   : > { %3366 = vmatprep.subr.bf16.mxu1 %v3751_v7  ;;  %vm2855_vm1 = vmpackc.low %vm1242_vm15, %vm1241_vm14  ;;  %vm1147_vm15 = vcmp.eq.s32.totalorder %v3932_v15, 8 }
  0xc2   : > { %3347 = vmatpush3.bf16.msk.msra.mxu0 %vm2771_vm3, %v3752_v14  ;;  %vm1144_vm3 = vcmp.eq.s32.totalorder %v3912_v11, 8 }
  0xc3   : > { %3367 = vmatpush3.bf16.msk.msra.mxu1 %vm2803_vm4, %v3752_v14  ;;  %3348 = vmatprep.subr.bf16.mxu0 %v3751_v7  ;;  %vm1243_vm4 = vcmp.eq.s32.totalorder %v3910_v10, 9  ;;  %vm2825_vm6 = vmpackc.low %vm1144_vm3, %vm1143_vm2  ;;  %vm1248_vm2 = vcmp.eq.s32.totalorder %v3934_v16, 9 }
  0xc4   : > { %3368 = vmatprep.subr.bf16.mxu1 %v3751_v7  ;;  %vm2857_vm7 = vmpackc.low %vm1244_vm5, %vm1243_vm4  ;;  %vm1149_vm5 = vcmp.eq.s32.totalorder %v3945_v18, 8 }
  0xc6   : > { %3349 = vmatpush3.bf16.msk.msra.mxu0 %vm2773_vm9, %v3752_v14  ;;  %vm1146_vm9 = vcmp.eq.s32.totalorder %v3916_v13, 8 }
  0xc7   : > { %3369 = vmatpush3.bf16.msk.msra.mxu1 %vm2805_vm11, %v3752_v14  ;;  %3374 = vmatprep.subr.bf16.mxu0 %v3751_v7  ;;  %vm1245_vm11 = vcmp.eq.s32.totalorder %v3914_v12, 9  ;;  %vm2827_vm13 = vmpackc.low %vm1146_vm9, %vm1145_vm8  ;;  %vm1250_vm8 = vcmp.eq.s32.totalorder %v3947_v19, 9 }
  0xc8   : > { %3394 = vmatprep.subr.bf16.mxu1 %v3751_v7  ;;  %vm2859_vm14 = vmpackc.low %vm1246_vm12, %vm1245_vm11  ;;  %vm1151_vm12 = vcmp.eq.s32.totalorder %v3957_v20, 8 }
  0xc9   : > { %3351 = vmatmul.mubr.bf16.vlgmr.msra.gmra.mrb[12].mxu0 %v4010_v27 }
  0xca   : > { %3371 = vmatmul.mubr.bf16.vlgmr.msra.gmra.mrb[12].mxu1 %v4010_v27  ;;  %3375 = vmatpush3.bf16.msk.msra.mxu0 %vm2823_vm0, %v3752_v14  ;;  %vm1148_vm0 = vcmp.eq.s32.totalorder %v3934_v16, 8 }
  0xcb   : > { %3395 = vmatpush3.bf16.msk.msra.mxu1 %vm2855_vm1, %v3752_v14  ;;  %3376 = vmatprep.subr.bf16.mxu0 %v3751_v7  ;;  %vm1247_vm1 = vcmp.eq.s32.totalorder %v3932_v15, 9  ;;  %vm2829_vm3 = vmpackc.low %vm1148_vm0, %vm1147_vm15  ;;  %vm1252_vm15 = vcmp.eq.s32.totalorder %v3959_v21, 9 }
  0xcc   : > { %3396 = vmatprep.subr.bf16.mxu1 %v3751_v7  ;;  %3390 = vmatprep.mubr.msk.bf16.mxu0 %vm3753_vm10, %v3751_v7  ;;  %vm2861_vm4 = vmpackc.low %vm1248_vm2, %vm1247_vm1  ;;  %vm1153_vm2 = vcmp.eq.s32.totalorder %v3974_v23, 8 }
  0xcd   : > { %3410 = vmatprep.mubr.msk.bf16.mxu1 %vm3753_vm10, %v3751_v7 }
  0xce   : > { %3377 = vmatpush3.bf16.msk.msra.mxu0 %vm2825_vm6, %v3752_v14  ;;  %vm1150_vm6 = vcmp.eq.s32.totalorder %v3947_v19, 8 }
  0xcf   : > { %3397 = vmatpush3.bf16.msk.msra.mxu1 %vm2857_vm7, %v3752_v14  ;;  %3378 = vmatprep.subr.bf16.mxu0 %v3751_v7  ;;  %vm1249_vm7 = vcmp.eq.s32.totalorder %v3945_v18, 9  ;;  %vm2831_vm9 = vmpackc.low %vm1150_vm6, %vm1149_vm5  ;;  %vm1254_vm5 = vcmp.eq.s32.totalorder %v3976_v24, 9 }
  0xd0   : > { %3398 = vmatprep.subr.bf16.mxu1 %v3751_v7  ;;  %vm2863_vm11 = vmpackc.low %vm1250_vm8, %vm1249_vm7  ;;  %vm1155_vm8 = vcmp.eq.s32.totalorder %v3986_v25, 8 }
  0xd2   : > { %3379 = vmatpush3.bf16.msk.msra.mxu0 %vm2827_vm13, %v3752_v14  ;;  %vm1152_vm13 = vcmp.eq.s32.totalorder %v3959_v21, 8 }
  0xd3   : > { %3399 = vmatpush3.bf16.msk.msra.mxu1 %vm2859_vm14, %v3752_v14  ;;  %3380 = vmatprep.subr.bf16.mxu0 %v3751_v7  ;;  %vm1251_vm14 = vcmp.eq.s32.totalorder %v3957_v20, 9  ;;  %vm2833_vm0 = vmpackc.low %vm1152_vm13, %vm1151_vm12  ;;  %vm1256_vm12 = vcmp.eq.s32.totalorder %v3988_v26, 9 }
  0xd4   : > { %3400 = vmatprep.subr.bf16.mxu1 %v3751_v7  ;;  %vm2865_vm1 = vmpackc.low %vm1252_vm15, %vm1251_vm14  ;;  %vm1341_vm15 = vcmp.eq.s32.totalorder %v3906_v8, 10 }
  0xd6   : > { %3381 = vmatpush3.bf16.msk.msra.mxu0 %vm2829_vm3, %v3752_v14  ;;  %vm1154_vm3 = vcmp.eq.s32.totalorder %v3976_v24, 8 }
  0xd7   : > { %3401 = vmatpush3.bf16.msk.msra.mxu1 %vm2861_vm4, %v3752_v14  ;;  %3382 = vmatprep.subr.bf16.mxu0 %v3751_v7  ;;  %vm1253_vm4 = vcmp.eq.s32.totalorder %v3974_v23, 9  ;;  %vm2835_vm6 = vmpackc.low %vm1154_vm3, %vm1153_vm2  ;;  %vm1442_vm2 = vcmp.eq.s32.totalorder %v3908_v9, 11 }
  0xd8   : > { %3402 = vmatprep.subr.bf16.mxu1 %v3751_v7  ;;  %vm2867_vm7 = vmpackc.low %vm1254_vm5, %vm1253_vm4  ;;  %vm1343_vm5 = vcmp.eq.s32.totalorder %v3910_v10, 10 }
  0xda   : > { %3383 = vmatpush3.bf16.msk.msra.mxu0 %vm2831_vm9, %v3752_v14  ;;  %vm1156_vm9 = vcmp.eq.s32.totalorder %v3988_v26, 8 }
  0xdb   : > { %3403 = vmatpush3.bf16.msk.msra.mxu1 %vm2863_vm11, %v3752_v14  ;;  %3384 = vmatprep.subr.bf16.mxu0 %v3751_v7  ;;  %vm1255_vm11 = vcmp.eq.s32.totalorder %v3986_v25, 9  ;;  %vm2837_vm13 = vmpackc.low %vm1156_vm9, %vm1155_vm8  ;;  %vm1444_vm8 = vcmp.eq.s32.totalorder %v3912_v11, 11 }
  0xdc   : > { %3404 = vmatprep.subr.bf16.mxu1 %v3751_v7  ;;  %vm2869_vm14 = vmpackc.low %vm1256_vm12, %vm1255_vm11  ;;  %vm1345_vm12 = vcmp.eq.s32.totalorder %v3914_v12, 10 }
  0xde   : > { %3385 = vmatpush3.bf16.msk.msra.mxu0 %vm2833_vm0, %v3752_v14  ;;  %vm1342_vm0 = vcmp.eq.s32.totalorder %v3908_v9, 10 }
  0xdf   : > { %3405 = vmatpush3.bf16.msk.msra.mxu1 %vm2865_vm1, %v3752_v14  ;;  %3386 = vmatprep.subr.bf16.mxu0 %v3751_v7  ;;  %vm1441_vm1 = vcmp.eq.s32.totalorder %v3906_v8, 11  ;;  %vm2887_vm3 = vmpackc.low %vm1342_vm0, %vm1341_vm15  ;;  %vm1446_vm15 = vcmp.eq.s32.totalorder %v3916_v13, 11 }
  0xe0   : > { %3406 = vmatprep.subr.bf16.mxu1 %v3751_v7  ;;  %vm2919_vm4 = vmpackc.low %vm1442_vm2, %vm1441_vm1  ;;  %vm1347_vm2 = vcmp.eq.s32.totalorder %v3932_v15, 10 }
  0xe2   : > { %3387 = vmatpush3.bf16.msk.msra.mxu0 %vm2835_vm6, %v3752_v14  ;;  %vm1344_vm6 = vcmp.eq.s32.totalorder %v3912_v11, 10 }
  0xe3   : > { %3407 = vmatpush3.bf16.msk.msra.mxu1 %vm2867_vm7, %v3752_v14  ;;  %3388 = vmatprep.subr.bf16.mxu0 %v3751_v7  ;;  %vm1443_vm7 = vcmp.eq.s32.totalorder %v3910_v10, 11  ;;  %vm2889_vm9 = vmpackc.low %vm1344_vm6, %vm1343_vm5  ;;  %vm1448_vm5 = vcmp.eq.s32.totalorder %v3934_v16, 11 }
  0xe4   : > { %3408 = vmatprep.subr.bf16.mxu1 %v3751_v7  ;;  %vm2921_vm11 = vmpackc.low %vm1444_vm8, %vm1443_vm7  ;;  %vm1349_vm8 = vcmp.eq.s32.totalorder %v3945_v18, 10 }
  0xe6   : > { %3389 = vmatpush3.bf16.msk.msra.mxu0 %vm2837_vm13, %v3752_v14  ;;  %vm1346_vm13 = vcmp.eq.s32.totalorder %v3916_v13, 10 }
  0xe7   : > { %3409 = vmatpush3.bf16.msk.msra.mxu1 %vm2869_vm14, %v3752_v14  ;;  %3414 = vmatprep.subr.bf16.mxu0 %v3751_v7  ;;  %vm1445_vm14 = vcmp.eq.s32.totalorder %v3914_v12, 11  ;;  %vm2891_vm0 = vmpackc.low %vm1346_vm13, %vm1345_vm12  ;;  %vm1450_vm12 = vcmp.eq.s32.totalorder %v3947_v19, 11 }
  0xe8   : > { %3434 = vmatprep.subr.bf16.mxu1 %v3751_v7  ;;  %vm2923_vm1 = vmpackc.low %vm1446_vm15, %vm1445_vm14  ;;  %vm1351_vm15 = vcmp.eq.s32.totalorder %v3957_v20, 10 }
  0xe9   : > { %3391 = vmatmul.mubr.bf16.vlgmr.msra.gmra.mrb[16].mxu0 %v4010_v27 }
  0xea   : > { %3411 = vmatmul.mubr.bf16.vlgmr.msra.gmra.mrb[16].mxu1 %v4010_v27  ;;  %3415 = vmatpush3.bf16.msk.msra.mxu0 %vm2887_vm3, %v3752_v14  ;;  %vm1348_vm3 = vcmp.eq.s32.totalorder %v3934_v16, 10 }
  0xeb   : > { %3435 = vmatpush3.bf16.msk.msra.mxu1 %vm2919_vm4, %v3752_v14  ;;  %3416 = vmatprep.subr.bf16.mxu0 %v3751_v7  ;;  %vm1447_vm4 = vcmp.eq.s32.totalorder %v3932_v15, 11  ;;  %vm2893_vm6 = vmpackc.low %vm1348_vm3, %vm1347_vm2  ;;  %vm1452_vm2 = vcmp.eq.s32.totalorder %v3959_v21, 11 }
  0xec   : > { %3436 = vmatprep.subr.bf16.mxu1 %v3751_v7  ;;  %3430 = vmatprep.mubr.msk.bf16.mxu0 %vm3753_vm10, %v3751_v7  ;;  %vm2925_vm7 = vmpackc.low %vm1448_vm5, %vm1447_vm4  ;;  %vm1353_vm5 = vcmp.eq.s32.totalorder %v3974_v23, 10 }
  0xed   : > { %3450 = vmatprep.mubr.msk.bf16.mxu1 %vm3753_vm10, %v3751_v7 }
  0xee   : > { %3417 = vmatpush3.bf16.msk.msra.mxu0 %vm2889_vm9, %v3752_v14  ;;  %vm1350_vm9 = vcmp.eq.s32.totalorder %v3947_v19, 10 }
  0xef   : > { %3437 = vmatpush3.bf16.msk.msra.mxu1 %vm2921_vm11, %v3752_v14  ;;  %3418 = vmatprep.subr.bf16.mxu0 %v3751_v7  ;;  %vm1449_vm11 = vcmp.eq.s32.totalorder %v3945_v18, 11  ;;  %vm2895_vm13 = vmpackc.low %vm1350_vm9, %vm1349_vm8  ;;  %vm1454_vm8 = vcmp.eq.s32.totalorder %v3976_v24, 11 }
  0xf0   : > { %3438 = vmatprep.subr.bf16.mxu1 %v3751_v7  ;;  %vm2927_vm14 = vmpackc.low %vm1450_vm12, %vm1449_vm11  ;;  %vm1355_vm12 = vcmp.eq.s32.totalorder %v3986_v25, 10 }
  0xf2   : > { %3419 = vmatpush3.bf16.msk.msra.mxu0 %vm2891_vm0, %v3752_v14  ;;  %vm1352_vm0 = vcmp.eq.s32.totalorder %v3959_v21, 10 }
  0xf3   : > { %3439 = vmatpush3.bf16.msk.msra.mxu1 %vm2923_vm1, %v3752_v14  ;;  %3420 = vmatprep.subr.bf16.mxu0 %v3751_v7  ;;  %vm1451_vm1 = vcmp.eq.s32.totalorder %v3957_v20, 11  ;;  %vm2897_vm3 = vmpackc.low %vm1352_vm0, %vm1351_vm15  ;;  %vm1456_vm15 = vcmp.eq.s32.totalorder %v3988_v26, 11 }
  0xf4   : > { %3440 = vmatprep.subr.bf16.mxu1 %v3751_v7  ;;  %vm2929_vm4 = vmpackc.low %vm1452_vm2, %vm1451_vm1  ;;  %vm1541_vm2 = vcmp.eq.s32.totalorder %v3906_v8, 12 }
  0xf6   : > { %3421 = vmatpush3.bf16.msk.msra.mxu0 %vm2893_vm6, %v3752_v14  ;;  %vm1354_vm6 = vcmp.eq.s32.totalorder %v3976_v24, 10 }
  0xf7   : > { %3441 = vmatpush3.bf16.msk.msra.mxu1 %vm2925_vm7, %v3752_v14  ;;  %3422 = vmatprep.subr.bf16.mxu0 %v3751_v7  ;;  %vm1453_vm7 = vcmp.eq.s32.totalorder %v3974_v23, 11  ;;  %vm2899_vm9 = vmpackc.low %vm1354_vm6, %vm1353_vm5  ;;  %vm1642_vm5 = vcmp.eq.s32.totalorder %v3908_v9, 13 }
  0xf8   : > { %3442 = vmatprep.subr.bf16.mxu1 %v3751_v7  ;;  %vm2931_vm11 = vmpackc.low %vm1454_vm8, %vm1453_vm7  ;;  %vm1543_vm8 = vcmp.eq.s32.totalorder %v3910_v10, 12 }
  0xfa   : > { %3423 = vmatpush3.bf16.msk.msra.mxu0 %vm2895_vm13, %v3752_v14  ;;  %vm1356_vm13 = vcmp.eq.s32.totalorder %v3988_v26, 10 }
  0xfb   : > { %3443 = vmatpush3.bf16.msk.msra.mxu1 %vm2927_vm14, %v3752_v14  ;;  %3424 = vmatprep.subr.bf16.mxu0 %v3751_v7  ;;  %vm1455_vm14 = vcmp.eq.s32.totalorder %v3986_v25, 11  ;;  %vm2901_vm0 = vmpackc.low %vm1356_vm13, %vm1355_vm12  ;;  %vm1644_vm12 = vcmp.eq.s32.totalorder %v3912_v11, 13 }
  0xfc   : > { %3444 = vmatprep.subr.bf16.mxu1 %v3751_v7  ;;  %vm2933_vm1 = vmpackc.low %vm1456_vm15, %vm1455_vm14  ;;  %vm1545_vm15 = vcmp.eq.s32.totalorder %v3914_v12, 12 }
  0xfe   : > { %3425 = vmatpush3.bf16.msk.msra.mxu0 %vm2897_vm3, %v3752_v14  ;;  %vm1542_vm3 = vcmp.eq.s32.totalorder %v3908_v9, 12 }
  0xff   : > { %3445 = vmatpush3.bf16.msk.msra.mxu1 %vm2929_vm4, %v3752_v14  ;;  %3426 = vmatprep.subr.bf16.mxu0 %v3751_v7  ;;  %vm1641_vm4 = vcmp.eq.s32.totalorder %v3906_v8, 13  ;;  %vm2951_vm6 = vmpackc.low %vm1542_vm3, %vm1541_vm2  ;;  %vm1646_vm2 = vcmp.eq.s32.totalorder %v3916_v13, 13 }
 0x100   : > { %3446 = vmatprep.subr.bf16.mxu1 %v3751_v7  ;;  %vm2983_vm7 = vmpackc.low %vm1642_vm5, %vm1641_vm4  ;;  %vm1547_vm5 = vcmp.eq.s32.totalorder %v3932_v15, 12 }
 0x102   : > { %3427 = vmatpush3.bf16.msk.msra.mxu0 %vm2899_vm9, %v3752_v14  ;;  %vm1544_vm9 = vcmp.eq.s32.totalorder %v3912_v11, 12 }
 0x103   : > { %3447 = vmatpush3.bf16.msk.msra.mxu1 %vm2931_vm11, %v3752_v14  ;;  %3428 = vmatprep.subr.bf16.mxu0 %v3751_v7  ;;  %vm1643_vm11 = vcmp.eq.s32.totalorder %v3910_v10, 13  ;;  %vm2953_vm13 = vmpackc.low %vm1544_vm9, %vm1543_vm8  ;;  %vm1648_vm8 = vcmp.eq.s32.totalorder %v3934_v16, 13 }
 0x104   : > { %3448 = vmatprep.subr.bf16.mxu1 %v3751_v7  ;;  %vm2985_vm14 = vmpackc.low %vm1644_vm12, %vm1643_vm11  ;;  %vm1549_vm12 = vcmp.eq.s32.totalorder %v3945_v18, 12 }
 0x106   : > { %3429 = vmatpush3.bf16.msk.msra.mxu0 %vm2901_vm0, %v3752_v14  ;;  %vm1546_vm0 = vcmp.eq.s32.totalorder %v3916_v13, 12 }
 0x107   : > { %3449 = vmatpush3.bf16.msk.msra.mxu1 %vm2933_vm1, %v3752_v14  ;;  %3454 = vmatprep.subr.bf16.mxu0 %v3751_v7  ;;  %vm1645_vm1 = vcmp.eq.s32.totalorder %v3914_v12, 13  ;;  %vm2955_vm3 = vmpackc.low %vm1546_vm0, %vm1545_vm15  ;;  %vm1650_vm15 = vcmp.eq.s32.totalorder %v3947_v19, 13 }
 0x108   : > { %3474 = vmatprep.subr.bf16.mxu1 %v3751_v7  ;;  %vm2987_vm4 = vmpackc.low %vm1646_vm2, %vm1645_vm1  ;;  %vm1551_vm2 = vcmp.eq.s32.totalorder %v3957_v20, 12 }
 0x109   : > { %3431 = vmatmul.mubr.bf16.vlgmr.msra.gmra.mrb[20].mxu0 %v4010_v27 }
 0x10a   : > { %3451 = vmatmul.mubr.bf16.vlgmr.msra.gmra.mrb[20].mxu1 %v4010_v27  ;;  %3455 = vmatpush3.bf16.msk.msra.mxu0 %vm2951_vm6, %v3752_v14  ;;  %vm1548_vm6 = vcmp.eq.s32.totalorder %v3934_v16, 12 }
 0x10b   : > { %3475 = vmatpush3.bf16.msk.msra.mxu1 %vm2983_vm7, %v3752_v14  ;;  %3456 = vmatprep.subr.bf16.mxu0 %v3751_v7  ;;  %vm1647_vm7 = vcmp.eq.s32.totalorder %v3932_v15, 13  ;;  %vm2957_vm9 = vmpackc.low %vm1548_vm6, %vm1547_vm5  ;;  %vm1652_vm5 = vcmp.eq.s32.totalorder %v3959_v21, 13 }
 0x10c   : > { %3476 = vmatprep.subr.bf16.mxu1 %v3751_v7  ;;  %3470 = vmatprep.mubr.msk.bf16.mxu0 %vm3753_vm10, %v3751_v7  ;;  %vm2989_vm11 = vmpackc.low %vm1648_vm8, %vm1647_vm7  ;;  %vm1553_vm8 = vcmp.eq.s32.totalorder %v3974_v23, 12 }
 0x10d   : > { %3490 = vmatprep.mubr.msk.bf16.mxu1 %vm3753_vm10, %v3751_v7 }
 0x10e   : > { %3457 = vmatpush3.bf16.msk.msra.mxu0 %vm2953_vm13, %v3752_v14  ;;  %vm1550_vm13 = vcmp.eq.s32.totalorder %v3947_v19, 12 }
 0x10f   : > { %3477 = vmatpush3.bf16.msk.msra.mxu1 %vm2985_vm14, %v3752_v14  ;;  %3458 = vmatprep.subr.bf16.mxu0 %v3751_v7  ;;  %vm1649_vm14 = vcmp.eq.s32.totalorder %v3945_v18, 13  ;;  %vm2959_vm0 = vmpackc.low %vm1550_vm13, %vm1549_vm12  ;;  %vm1654_vm12 = vcmp.eq.s32.totalorder %v3976_v24, 13 }
 0x110   : > { %3478 = vmatprep.subr.bf16.mxu1 %v3751_v7  ;;  %vm2991_vm1 = vmpackc.low %vm1650_vm15, %vm1649_vm14  ;;  %vm1555_vm15 = vcmp.eq.s32.totalorder %v3986_v25, 12 }
 0x112   : > { %3459 = vmatpush3.bf16.msk.msra.mxu0 %vm2955_vm3, %v3752_v14  ;;  %vm1552_vm3 = vcmp.eq.s32.totalorder %v3959_v21, 12 }
 0x113   : > { %3479 = vmatpush3.bf16.msk.msra.mxu1 %vm2987_vm4, %v3752_v14  ;;  %3460 = vmatprep.subr.bf16.mxu0 %v3751_v7  ;;  %vm1651_vm4 = vcmp.eq.s32.totalorder %v3957_v20, 13  ;;  %vm2961_vm6 = vmpackc.low %vm1552_vm3, %vm1551_vm2  ;;  %vm1656_vm2 = vcmp.eq.s32.totalorder %v3988_v26, 13 }
 0x114   : > { %3480 = vmatprep.subr.bf16.mxu1 %v3751_v7  ;;  %vm2993_vm7 = vmpackc.low %vm1652_vm5, %vm1651_vm4  ;;  %vm1741_vm5 = vcmp.eq.s32.totalorder %v3906_v8, 14 }
 0x116   : > { %3461 = vmatpush3.bf16.msk.msra.mxu0 %vm2957_vm9, %v3752_v14  ;;  %vm1554_vm9 = vcmp.eq.s32.totalorder %v3976_v24, 12 }
 0x117   : > { %3481 = vmatpush3.bf16.msk.msra.mxu1 %vm2989_vm11, %v3752_v14  ;;  %3462 = vmatprep.subr.bf16.mxu0 %v3751_v7  ;;  %vm1653_vm11 = vcmp.eq.s32.totalorder %v3974_v23, 13  ;;  %vm2963_vm13 = vmpackc.low %vm1554_vm9, %vm1553_vm8  ;;  %vm1842_vm8 = vcmp.eq.s32.totalorder %v3908_v9, 15 }
 0x118   : > { %3482 = vmatprep.subr.bf16.mxu1 %v3751_v7  ;;  %vm2995_vm14 = vmpackc.low %vm1654_vm12, %vm1653_vm11  ;;  %vm1743_vm12 = vcmp.eq.s32.totalorder %v3910_v10, 14 }
 0x11a   : > { %3463 = vmatpush3.bf16.msk.msra.mxu0 %vm2959_vm0, %v3752_v14  ;;  %vm1556_vm0 = vcmp.eq.s32.totalorder %v3988_v26, 12 }
 0x11b   : > { %3483 = vmatpush3.bf16.msk.msra.mxu1 %vm2991_vm1, %v3752_v14  ;;  %3464 = vmatprep.subr.bf16.mxu0 %v3751_v7  ;;  %vm1655_vm1 = vcmp.eq.s32.totalorder %v3986_v25, 13  ;;  %vm2965_vm3 = vmpackc.low %vm1556_vm0, %vm1555_vm15  ;;  %vm1844_vm15 = vcmp.eq.s32.totalorder %v3912_v11, 15 }
 0x11c   : > { %3484 = vmatprep.subr.bf16.mxu1 %v3751_v7  ;;  %vm2997_vm4 = vmpackc.low %vm1656_vm2, %vm1655_vm1  ;;  %vm1745_vm2 = vcmp.eq.s32.totalorder %v3914_v12, 14 }
 0x11e   : > { %3465 = vmatpush3.bf16.msk.msra.mxu0 %vm2961_vm6, %v3752_v14  ;;  %vm1742_vm6 = vcmp.eq.s32.totalorder %v3908_v9, 14 }
 0x11f   : > { %3485 = vmatpush3.bf16.msk.msra.mxu1 %vm2993_vm7, %v3752_v14  ;;  %3466 = vmatprep.subr.bf16.mxu0 %v3751_v7  ;;  %vm1841_vm7 = vcmp.eq.s32.totalorder %v3906_v8, 15  ;;  %vm3015_vm9 = vmpackc.low %vm1742_vm6, %vm1741_vm5  ;;  %vm1846_vm5 = vcmp.eq.s32.totalorder %v3916_v13, 15 }
 0x120   : > { %3486 = vmatprep.subr.bf16.mxu1 %v3751_v7  ;;  %vm3047_vm11 = vmpackc.low %vm1842_vm8, %vm1841_vm7  ;;  %vm1747_vm8 = vcmp.eq.s32.totalorder %v3932_v15, 14 }
 0x122   : > { %3467 = vmatpush3.bf16.msk.msra.mxu0 %vm2963_vm13, %v3752_v14  ;;  %vm1744_vm13 = vcmp.eq.s32.totalorder %v3912_v11, 14 }
 0x123   : > { %3487 = vmatpush3.bf16.msk.msra.mxu1 %vm2995_vm14, %v3752_v14  ;;  %3468 = vmatprep.subr.bf16.mxu0 %v3751_v7  ;;  %vm1843_vm14 = vcmp.eq.s32.totalorder %v3910_v10, 15  ;;  %vm3017_vm0 = vmpackc.low %vm1744_vm13, %vm1743_vm12  ;;  %vm1848_vm12 = vcmp.eq.s32.totalorder %v3934_v16, 15 }
 0x124   : > { %3488 = vmatprep.subr.bf16.mxu1 %v3751_v7  ;;  %vm3049_vm1 = vmpackc.low %vm1844_vm15, %vm1843_vm14  ;;  %vm1749_vm14 = vcmp.eq.s32.totalorder %v3945_v18, 14  ;;  %vm1750_vm15 = vcmp.eq.s32.totalorder %v3947_v19, 14 }
 0x126   : > { %3469 = vmatpush3.bf16.msk.msra.mxu0 %vm2965_vm3, %v3752_v14  ;;  %vm1746_vm3 = vcmp.eq.s32.totalorder %v3916_v13, 14  ;;  %v1238_v13 = vld [vmem:[#allocation2 + $0x40] sm:$0xff] }
 0x127   : > { %3489 = vmatpush3.bf16.msk.msra.mxu1 %vm2997_vm4, %v3752_v14  ;;  %3494 = vmatprep.subr.bf16.mxu0 %v3751_v7  ;;  %vm1845_vm4 = vcmp.eq.s32.totalorder %v3914_v12, 15  ;;  %vm3019_vm6 = vmpackc.low %vm1746_vm3, %vm1745_vm2 }
 0x128   : > { %3514 = vmatprep.subr.bf16.mxu1 %v3751_v7  ;;  %vm3051_vm7 = vmpackc.low %vm1846_vm5, %vm1845_vm4  ;;  %vm1751_vm4 = vcmp.eq.s32.totalorder %v3957_v20, 14  ;;  %vm1752_vm5 = vcmp.eq.s32.totalorder %v3959_v21, 14 }
 0x129   : > { %3471 = vmatmul.mubr.bf16.vlgmr.msra.gmra.mrb[24].mxu0 %v4438_v28  ;;  %vm3023_vm2 = vmpackc.low %vm1750_vm15, %vm1749_vm14 }
 0x12a   : > { %3491 = vmatmul.mubr.bf16.vlgmr.msra.gmra.mrb[24].mxu1 %v4438_v28  ;;  %3495 = vmatpush3.bf16.msk.msra.mxu0 %vm3015_vm9, %v3752_v14  ;;  %vm1748_vm9 = vcmp.eq.s32.totalorder %v3934_v16, 14 }
 0x12b   : > { %3515 = vmatpush3.bf16.msk.msra.mxu1 %vm3047_vm11, %v3752_v14  ;;  %3496 = vmatprep.subr.bf16.mxu0 %v3751_v7  ;;  %vm1847_vm11 = vcmp.eq.s32.totalorder %v3932_v15, 15 }
 0x12c   : > { %3516 = vmatprep.subr.bf16.mxu1 %v3751_v7  ;;  %3510 = vmatprep.mubr.msk.bf16.mxu0 %vm3753_vm10, %v3751_v7  ;;  %vm3053_vm13 = vmpackc.low %vm1848_vm12, %vm1847_vm11  ;;  %vm1753_vm11 = vcmp.eq.s32.totalorder %v3974_v23, 14  ;;  %vm1754_vm12 = vcmp.eq.s32.totalorder %v3976_v24, 14 }
 0x12d   : > { %3530 = vmatprep.mubr.msk.bf16.mxu1 %vm3753_vm10, %v3751_v7  ;;  %vm3021_vm10 = vmpackc.low %vm1748_vm9, %vm1747_vm8 }
 0x12e   : > { %3497 = vmatpush3.bf16.msk.msra.mxu0 %vm3017_vm0, %v3752_v14  ;;  %vm1849_vm0 = vcmp.eq.s32.totalorder %v3945_v18, 15  ;;  %vm3025_vm8 = vmpackc.low %vm1752_vm5, %vm1751_vm4 }
 0x12f   : > { %3517 = vmatpush3.bf16.msk.msra.mxu1 %vm3049_vm1, %v3752_v14  ;;  %3498 = vmatprep.subr.bf16.mxu0 %v3751_v7  ;;  %vm1850_vm1 = vcmp.eq.s32.totalorder %v3947_v19, 15  ;;  %vm3027_vm14 = vmpackc.low %vm1754_vm12, %vm1753_vm11 }
 0x130   : > { %3518 = vmatprep.subr.bf16.mxu1 %v3751_v7  ;;  %vm3055_vm3 = vmpackc.low %vm1850_vm1, %vm1849_vm0  ;;  %vm1755_vm0 = vcmp.eq.s32.totalorder %v3986_v25, 14  ;;  %vm1756_vm1 = vcmp.eq.s32.totalorder %v3988_v26, 14 }
 0x131   : > { %vm3029_vm4 = vmpackc.low %vm1756_vm1, %vm1755_vm0 }
 0x132   : > { %3499 = vmatpush3.bf16.msk.msra.mxu0 %vm3019_vm6, %v3752_v14  ;;  %vm1851_vm6 = vcmp.eq.s32.totalorder %v3957_v20, 15 }
 0x133   : > { %3519 = vmatpush3.bf16.msk.msra.mxu1 %vm3051_vm7, %v3752_v14  ;;  %3500 = vmatprep.subr.bf16.mxu0 %v3751_v7  ;;  %vm1852_vm7 = vcmp.eq.s32.totalorder %v3959_v21, 15 }
 0x134   : > { %3520 = vmatprep.subr.bf16.mxu1 %v3751_v7  ;;  %vm3057_vm9 = vmpackc.low %vm1852_vm7, %vm1851_vm6 }
 0x136   : > { %3501 = vmatpush3.bf16.msk.msra.mxu0 %vm3021_vm10, %v3752_v14  ;;  %vm1853_vm10 = vcmp.eq.s32.totalorder %v3974_v23, 15 }
 0x137   : > { %3521 = vmatpush3.bf16.msk.msra.mxu1 %vm3053_vm13, %v3752_v14  ;;  %3502 = vmatprep.subr.bf16.mxu0 %v3751_v7  ;;  %vm1854_vm13 = vcmp.eq.s32.totalorder %v3976_v24, 15 }
 0x138   : > { %3522 = vmatprep.subr.bf16.mxu1 %v3751_v7  ;;  %vm3059_vm15 = vmpackc.low %vm1854_vm13, %vm1853_vm10 }
 0x13a   : > { %3503 = vmatpush3.bf16.msk.msra.mxu0 %vm3023_vm2, %v3752_v14  ;;  %vm1855_vm2 = vcmp.eq.s32.totalorder %v3986_v25, 15  ;;  %v1438_v25 = vld [vmem:[#allocation2 + $0x50] sm:$0xff] }
 0x13b   : > { %3523 = vmatpush3.bf16.msk.msra.mxu1 %vm3055_vm3, %v3752_v14  ;;  %3504 = vmatprep.subr.bf16.mxu0 %v3751_v7  ;;  %vm1856_vm3 = vcmp.eq.s32.totalorder %v3988_v26, 15  ;;  %v1538_v26 = vld [vmem:[#allocation2 + $0x58] sm:$0xff] }
 0x13c   : > { %v432_v31 = vpop.f32.mrb[0].mxu0  ;;  %3524 = vmatprep.subr.bf16.mxu1 %v3751_v7  ;;  %vm3061_vm5 = vmpackc.low %vm1856_vm3, %vm1855_vm2 }
 0x13d   : > { %v439_v32 = vadd.f32 %v438_v29, %v432_v31  ;;  %v531_v33 = vpop.f32.mrb[0].mxu1  ;;  %v3232_v34 = vpop.f32.mrb[1].mxu0 }
 0x13e   : > { %v539_v35 = vadd.f32 %v538_v30, %v531_v33  ;;  %v3252_v36 = vpop.f32.mrb[1].mxu1  ;;  %v435_v37 = vpop.f32.mrb[2].mxu0  ;;  %3505 = vmatpush3.bf16.msk.msra.mxu0 %vm3025_vm8, %v3752_v14 }
 0x13f   : > { %440 = vst [vmem:[#allocation2] sm:$0xff] %v439_v32  ;;  %v534_v38 = vpop.f32.mrb[2].mxu1  ;;  %3525 = vmatpush3.bf16.msk.msra.mxu1 %vm3057_vm9, %v3752_v14  ;;  %v3233_v39 = vpop.f32.mrb[3].mxu0  ;;  %3506 = vmatprep.subr.bf16.mxu0 %v3751_v7  ;;  %v1638_v37 = vld [vmem:[#allocation2 + $0x60] sm:$0xff] }
 0x140   : > { %540 = vst [vmem:[#allocation2 + $0x8] sm:$0xff] %v539_v35  ;;  %v3253_v40 = vpop.f32.mrb[3].mxu1  ;;  %3526 = vmatprep.subr.bf16.mxu1 %v3751_v7  ;;  %v1738_v38 = vld [vmem:[#allocation2 + $0x68] sm:$0xff] }
 0x142   : > { %3507 = vmatpush3.bf16.msk.msra.mxu0 %vm3027_vm14, %v3752_v14 }
 0x143   : > { %3527 = vmatpush3.bf16.msk.msra.mxu1 %vm3059_vm15, %v3752_v14  ;;  %3508 = vmatprep.subr.bf16.mxu0 %v3751_v7 }
 0x144   : > { %3528 = vmatprep.subr.bf16.mxu1 %v3751_v7 }
 0x146   : > { %3509 = vmatpush3.bf16.msk.msra.mxu0 %vm3029_vm4, %v3752_v14 }
 0x147   : > { %3529 = vmatpush3.bf16.msk.msra.mxu1 %vm3061_vm5, %v3752_v14  ;;  %v1338_v14 = vld [vmem:[#allocation2 + $0x48] sm:$0xff] }
 0x149   : > { %3511 = vmatmul.mubr.bf16.vlgmr.msra.gmra.mrb[28].mxu0 %v4438_v28 }
 0x14a   : > { %3531 = vmatmul.mubr.bf16.vlgmr.msra.gmra.mrb[28].mxu1 %v4438_v28 }
 0x15c   : > { %v631_v43 = vpop.f32.mrb[4].mxu0 }
 0x15d   : > { %v639_v44 = vadd.f32 %v638_v41, %v631_v43  ;;  %v731_v45 = vpop.f32.mrb[4].mxu1  ;;  %v3272_v46 = vpop.f32.mrb[5].mxu0 }
 0x15e   : > { %v739_v47 = vadd.f32 %v738_v42, %v731_v45  ;;  %v3292_v48 = vpop.f32.mrb[5].mxu1  ;;  %v634_v49 = vpop.f32.mrb[6].mxu0 }
 0x15f   : > { %640 = vst [vmem:[#allocation2 + $0x10] sm:$0xff] %v639_v44  ;;  %v734_v50 = vpop.f32.mrb[6].mxu1  ;;  %v3273_v51 = vpop.f32.mrb[7].mxu0  ;;  %v1838_v49 = vld [vmem:[#allocation2 + $0x70] sm:$0xff] }
 0x160   : > { %740 = vst [vmem:[#allocation2 + $0x18] sm:$0xff] %v739_v47  ;;  %v3293_v52 = vpop.f32.mrb[7].mxu1  ;;  %v1938_v50 = vld [vmem:[#allocation2 + $0x78] sm:$0xff] }
 0x17c   : > { %v831_v55 = vpop.f32.mrb[8].mxu0 }
 0x17d   : > { %v839_v56 = vadd.f32 %v838_v53, %v831_v55  ;;  %v931_v57 = vpop.f32.mrb[8].mxu1  ;;  %v3312_v58 = vpop.f32.mrb[9].mxu0 }
 0x17e   : > { %v939_v59 = vadd.f32 %v938_v54, %v931_v57  ;;  %v3332_v60 = vpop.f32.mrb[9].mxu1  ;;  %v834_v61 = vpop.f32.mrb[10].mxu0 }
 0x17f   : > { %840 = vst [vmem:[#allocation2 + $0x20] sm:$0xff] %v839_v56  ;;  %v934_v62 = vpop.f32.mrb[10].mxu1  ;;  %v3313_v63 = vpop.f32.mrb[11].mxu0  ;;  %v1977_v61 = vld [vmem:[%s4788_s3] sm:$0xff] (!%p3063_p4) }
 0x180   : > { %940 = vst [vmem:[#allocation2 + $0x28] sm:$0xff] %v939_v59  ;;  %v3333_v0 = vpop.f32.mrb[11].mxu1  ;;  %v1945_v62 = vld [vmem:[%s4787_s2] sm:$0xff] (!%p3063_p4)  ;;  %v3754_v63 = vmov (!%p3063_p4), 0  }
 0x181   : > { %3629 = vset.pattern.permute.xlu1 (!%p3063_p4), %v3754_v63  ;;  %3628 = vset.pattern.permute.xlu0 (!%p3063_p4), %v3754_v63  ;;  %v1978_v0 = vld [vmem:[%s4788_s3 + $0x8] sm:$0x1] (!%p3063_p4) }
 0x182   : > { %1981 = vperm.xlu0 (!%p3063_p4), %3628, %v1977_v61   ;;  %1998 = vperm.xlu1 (!%p3063_p4), %3629, %v1945_v62  }
 0x186   : > { %1986 = vperm.xlu0 (!%p3063_p4), %3628, %v1978_v0  }
 0x19c   : > { %v1031_v3 = vpop.f32.mrb[12].mxu0 }
 0x19d   : > { %v1039_v4 = vadd.f32 %v1038_v1, %v1031_v3  ;;  %v1131_v5 = vpop.f32.mrb[12].mxu1  ;;  %v3352_v6 = vpop.f32.mrb[13].mxu0  ;;  %v1946_v1 = vld [vmem:[%s4787_s2 + $0x8] sm:$0x1] (!%p3063_p4)  ;;  %v1948_v3 = vld [vmem:[%s4787_s2 + $0x18] sm:$0x1] (!%p3063_p4) }
 0x19e   : > { %v1139_v7 = vadd.f32 %v1138_v2, %v1131_v5  ;;  %v3372_v8 = vpop.f32.mrb[13].mxu1  ;;  %v1034_v9 = vpop.f32.mrb[14].mxu0  ;;  %2003 = vperm.xlu1 (!%p3063_p4), %3629, %v1946_v1   ;;  %v1947_v2 = vld [vmem:[%s4787_s2 + $0x10] sm:$0xff] (!%p3063_p4)  ;;  %v1950_v5 = vld [vmem:[%s4787_s2 + $0x28] sm:$0x1] (!%p3063_p4) }
 0x19f   : > { %1040 = vst [vmem:[#allocation2 + $0x30] sm:$0xff] %v1039_v4  ;;  %v1134_v10 = vpop.f32.mrb[14].mxu1  ;;  %v3353_v11 = vpop.f32.mrb[15].mxu0  ;;  %2023 = vperm.xlu0 (!%p3063_p4), %3628, %v1947_v2   ;;  %v1949_v4 = vld [vmem:[%s4787_s2 + $0x20] sm:$0xff] (!%p3063_p4)  ;;  %v1951_v6 = vld [vmem:[%s4787_s2 + $0x30] sm:$0xff] (!%p3063_p4) }
 0x1a0   : > { %1140 = vst [vmem:[#allocation2 + $0x38] sm:$0xff] %v1139_v7  ;;  %v3373_v12 = vpop.f32.mrb[15].mxu1  ;;  %v1952_v7 = vld [vmem:[%s4787_s2 + $0x38] sm:$0x1] (!%p3063_p4)  ;;  %v1953_v8 = vld [vmem:[%s4787_s2 + $0x40] sm:$0xff] (!%p3063_p4)  ;;  %v1955_v10 = vld [vmem:[%s4787_s2 + $0x50] sm:$0xff] (!%p3063_p4) }
 0x1a1   : > { %v1954_v9 = vld [vmem:[%s4787_s2 + $0x48] sm:$0x1] (!%p3063_p4)  ;;  %v1956_v11 = vld [vmem:[%s4787_s2 + $0x58] sm:$0x1] (!%p3063_p4)  ;;  %v1957_v12 = vld [vmem:[%s4787_s2 + $0x60] sm:$0xff] (!%p3063_p4) }
 0x1a2   : > { %2028 = vperm.xlu1 (!%p3063_p4), %3629, %v1948_v3  }
 0x1a3   : > { %2048 = vperm.xlu0 (!%p3063_p4), %3628, %v1949_v4  }
 0x1a6   : > { %2053 = vperm.xlu1 (!%p3063_p4), %3629, %v1950_v5  }
 0x1a7   : > { %2073 = vperm.xlu0 (!%p3063_p4), %3628, %v1951_v6  }
 0x1aa   : > { %2078 = vperm.xlu1 (!%p3063_p4), %3629, %v1952_v7  }
 0x1ab   : > { %2098 = vperm.xlu0 (!%p3063_p4), %3628, %v1953_v8  }
 0x1ae   : > { %2103 = vperm.xlu1 (!%p3063_p4), %3629, %v1954_v9  }
 0x1af   : > { %2123 = vperm.xlu0 (!%p3063_p4), %3628, %v1955_v10  }
 0x1b2   : > { %2128 = vperm.xlu1 (!%p3063_p4), %3629, %v1956_v11  }
 0x1b3   : > { %2148 = vperm.xlu0 (!%p3063_p4), %3628, %v1957_v12  }
 0x1bc   : > { %v1231_v15 = vpop.f32.mrb[16].mxu0 }
 0x1bd   : > { %v1239_v16 = vadd.f32 %v1238_v13, %v1231_v15  ;;  %v1331_v17 = vpop.f32.mrb[16].mxu1  ;;  %v3392_v18 = vpop.f32.mrb[17].mxu0  ;;  %v1958_v13 = vld [vmem:[%s4787_s2 + $0x68] sm:$0x1] (!%p3063_p4)  ;;  %v1960_v15 = vld [vmem:[%s4787_s2 + $0x78] sm:$0x1] (!%p3063_p4) }
 0x1be   : > { %v1339_v19 = vadd.f32 %v1338_v14, %v1331_v17  ;;  %v3412_v20 = vpop.f32.mrb[17].mxu1  ;;  %v1234_v21 = vpop.f32.mrb[18].mxu0  ;;  %2153 = vperm.xlu1 (!%p3063_p4), %3629, %v1958_v13   ;;  %v1959_v14 = vld [vmem:[%s4787_s2 + $0x70] sm:$0xff] (!%p3063_p4)  ;;  %v1962_v17 = vld [vmem:[%s4787_s2 + $0x88] sm:$0x1] (!%p3063_p4) }
 0x1bf   : > { %1240 = vst [vmem:[#allocation2 + $0x40] sm:$0xff] %v1239_v16  ;;  %v1334_v22 = vpop.f32.mrb[18].mxu1  ;;  %v3393_v23 = vpop.f32.mrb[19].mxu0  ;;  %2173 = vperm.xlu0 (!%p3063_p4), %3628, %v1959_v14   ;;  %v1961_v16 = vld [vmem:[%s4787_s2 + $0x80] sm:$0xff] (!%p3063_p4)  ;;  %v1963_v18 = vld [vmem:[%s4787_s2 + $0x90] sm:$0xff] (!%p3063_p4) }
 0x1c0   : > { %1340 = vst [vmem:[#allocation2 + $0x48] sm:$0xff] %v1339_v19  ;;  %v3413_v24 = vpop.f32.mrb[19].mxu1  ;;  %v1964_v19 = vld [vmem:[%s4787_s2 + $0x98] sm:$0x1] (!%p3063_p4)  ;;  %v1965_v20 = vld [vmem:[%s4787_s2 + $0xa0] sm:$0xff] (!%p3063_p4)  ;;  %v1967_v22 = vld [vmem:[%s4787_s2 + $0xb0] sm:$0xff] (!%p3063_p4) }
 0x1c1   : > { %v1966_v21 = vld [vmem:[%s4787_s2 + $0xa8] sm:$0x1] (!%p3063_p4)  ;;  %v1968_v23 = vld [vmem:[%s4787_s2 + $0xb8] sm:$0x1] (!%p3063_p4)  ;;  %v1969_v24 = vld [vmem:[%s4787_s2 + $0xc0] sm:$0xff] (!%p3063_p4) }
 0x1c2   : > { %2178 = vperm.xlu1 (!%p3063_p4), %3629, %v1960_v15  }
 0x1c3   : > { %2198 = vperm.xlu0 (!%p3063_p4), %3628, %v1961_v16  }
 0x1c6   : > { %2203 = vperm.xlu1 (!%p3063_p4), %3629, %v1962_v17  }
 0x1c7   : > { %2223 = vperm.xlu0 (!%p3063_p4), %3628, %v1963_v18   ;;  %v4653_v61 = vld [vmem:[#allocation2 + $0x48] sm:$0xff] (!%p3063_p4) }
 0x1c8   : > { %v2215_v5 = vmax.f32 (!%p3063_p4), %v4653_v61, 1.0 }
 0x1ca   : > { %2228 = vperm.xlu1 (!%p3063_p4), %3629, %v1964_v19  }
 0x1cb   : > { %2248 = vperm.xlu0 (!%p3063_p4), %3628, %v1965_v20  }
 0x1ce   : > { %2253 = vperm.xlu1 (!%p3063_p4), %3629, %v1966_v21  }
 0x1cf   : > { %2273 = vperm.xlu0 (!%p3063_p4), %3628, %v1967_v22  }
 0x1d2   : > { %2278 = vperm.xlu1 (!%p3063_p4), %3629, %v1968_v23  }
 0x1d3   : > { %2298 = vperm.xlu0 (!%p3063_p4), %3628, %v1969_v24  }
 0x1dc   : > { %v1431_v27 = vpop.f32.mrb[20].mxu0 }
 0x1dd   : > { %v1439_v28 = vadd.f32 %v1438_v25, %v1431_v27  ;;  %v1531_v29 = vpop.f32.mrb[20].mxu1  ;;  %v3432_v30 = vpop.f32.mrb[21].mxu0  ;;  %v1970_v25 = vld [vmem:[%s4787_s2 + $0xc8] sm:$0x1] (!%p3063_p4)  ;;  %v1972_v27 = vld [vmem:[%s4787_s2 + $0xd8] sm:$0x1] (!%p3063_p4) }
 0x1de   : > { %v1539_v31 = vadd.f32 %v1538_v26, %v1531_v29  ;;  %v3452_v32 = vpop.f32.mrb[21].mxu1  ;;  %v1434_v33 = vpop.f32.mrb[22].mxu0  ;;  %2303 = vperm.xlu1 (!%p3063_p4), %3629, %v1970_v25   ;;  %v1971_v26 = vld [vmem:[%s4787_s2 + $0xd0] sm:$0xff] (!%p3063_p4)  ;;  %v1974_v29 = vld [vmem:[%s4787_s2 + $0xe8] sm:$0x1] (!%p3063_p4) }
 0x1df   : > { %1440 = vst [vmem:[#allocation2 + $0x50] sm:$0xff] %v1439_v28  ;;  %v1534_v34 = vpop.f32.mrb[22].mxu1  ;;  %v3433_v35 = vpop.f32.mrb[23].mxu0  ;;  %2323 = vperm.xlu0 (!%p3063_p4), %3628, %v1971_v26   ;;  %v1973_v28 = vld [vmem:[%s4787_s2 + $0xe0] sm:$0xff] (!%p3063_p4)  ;;  %v1975_v30 = vld [vmem:[%s4787_s2 + $0xf0] sm:$0xff] (!%p3063_p4) }
 0x1e0   : > { %1540 = vst [vmem:[#allocation2 + $0x58] sm:$0xff] %v1539_v31  ;;  %v3453_v36 = vpop.f32.mrb[23].mxu1  ;;  %v1976_v31 = vld [vmem:[%s4787_s2 + $0xf8] sm:$0x1] (!%p3063_p4)  ;;  %v1989_v34 = vld [vmem:[#allocation2] sm:$0xff] (!%p3063_p4)  ;;  %v2014_v35 = vld [vmem:[#allocation2 + $0x8] sm:$0xff] (!%p3063_p4) }
 0x1e1   : > { %v1990_v36 = vmax.f32 (!%p3063_p4), %v1989_v34, 1.0 }
 0x1e2   : > { %2328 = vperm.xlu1 (!%p3063_p4), %3629, %v1972_v27  }
 0x1e3   : > { %2348 = vperm.xlu0 (!%p3063_p4), %3628, %v1973_v28   ;;  %3630 = vrcp.f32 (!%p3063_p4), %v1990_v36 }
 0x1e6   : > { %2353 = vperm.xlu1 (!%p3063_p4), %3629, %v1974_v29   ;;  %v4660_v3 = vld [vmem:[#allocation2 + $0x50] sm:$0xff] (!%p3063_p4) }
 0x1e7   : > { %2373 = vperm.xlu0 (!%p3063_p4), %3628, %v1975_v30   ;;  %v4663_v7 = vld [vmem:[#allocation2 + $0x58] sm:$0xff] (!%p3063_p4)  ;;  %v2240_v9 = vmax.f32 (!%p3063_p4), %v4660_v3, 1.0 }
 0x1e8   : > { %v2265_v18 = vmax.f32 (!%p3063_p4), %v4663_v7, 1.0 }
 0x1ea   : > { %2378 = vperm.xlu1 (!%p3063_p4), %3629, %v1976_v31  }
 0x1fc   : > { %v1631_v39 = vpop.f32.mrb[24].mxu0 }
 0x1fd   : > { %v1639_v40 = vadd.f32 %v1638_v37, %v1631_v39  ;;  %v1731_v41 = vpop.f32.mrb[24].mxu1  ;;  %v3472_v42 = vpop.f32.mrb[25].mxu0  ;;  %v4621_v39 = vld [vmem:[#allocation2 + $0x10] sm:$0xff] (!%p3063_p4) }
 0x1fe   : > { %v1739_v43 = vadd.f32 %v1738_v38, %v1731_v41  ;;  %v3492_v44 = vpop.f32.mrb[25].mxu1  ;;  %v1634_v45 = vpop.f32.mrb[26].mxu0  ;;  %v4623_v41 = vld [vmem:[#allocation2 + $0x18] sm:$0xff] (!%p3063_p4) }
 0x1ff   : > { %1640 = vst [vmem:[#allocation2 + $0x60] sm:$0xff] %v1639_v40  ;;  %v1734_v46 = vpop.f32.mrb[26].mxu1  ;;  %v3473_v47 = vpop.f32.mrb[27].mxu0  ;;  %v2015_v40 = vmax.f32 (!%p3063_p4), %v2014_v35, 1.0  ;;  %v2040_v44 = vmax.f32 (!%p3063_p4), %v4621_v39, 1.0  ;;  %v4630_v45 = vld [vmem:[#allocation2 + $0x20] sm:$0xff] (!%p3063_p4) }
 0x200   : > { %1740 = vst [vmem:[#allocation2 + $0x68] sm:$0xff] %v1739_v43  ;;  %v3493_v48 = vpop.f32.mrb[27].mxu1  ;;  %v2065_v46 = vmax.f32 (!%p3063_p4), %v4623_v41, 1.0  ;;  %v4633_v47 = vld [vmem:[#allocation2 + $0x28] sm:$0xff] (!%p3063_p4) }
 0x201   : > { %v4613_v32 = vpop.permute.xlu0 (!%p3063_p4), %1981  ;;  %v4615_v33 = vpop.permute.xlu1 (!%p3063_p4), %1998  ;;  %3632 = vrcp.f32 (!%p3063_p4), %v2015_v40  ;;  %v2090_v48 = vmax.f32 (!%p3063_p4), %v4630_v45, 1.0 }
 0x202   : > { %3634 = vrcp.f32 (!%p3063_p4), %v2040_v44 }
 0x203   : > { %3636 = vrcp.f32 (!%p3063_p4), %v2065_v46 }
 0x204   : > { %3638 = vrcp.f32 (!%p3063_p4), %v2090_v48 }
 0x205   : > { %v4617_v37 = vpop.permute.xlu0 (!%p3063_p4), %1986 }
 0x206   : > { %v4672_v14 = vld [vmem:[#allocation2 + $0x60] sm:$0xff] (!%p3063_p4) }
 0x207   : > { %v4675_v19 = vld [vmem:[#allocation2 + $0x68] sm:$0xff] (!%p3063_p4)  ;;  %v2290_v23 = vmax.f32 (!%p3063_p4), %v4672_v14, 1.0 }
 0x208   : > { %v2315_v31 = vmax.f32 (!%p3063_p4), %v4675_v19, 1.0 }
 0x21a   : > { %1944 = sbr.rel (%p3063_p4) target bundleno = 623 (0x26f), region = 82 }
 0x21c   : > { %v1831_v51 = vpop.f32.mrb[28].mxu0 }
 0x21d   : > { %v1839_v52 = vadd.f32 %v1838_v49, %v1831_v51  ;;  %v1931_v53 = vpop.f32.mrb[28].mxu1  ;;  %v3512_v54 = vpop.f32.mrb[29].mxu0  ;;  %v4640_v51 = vld [vmem:[#allocation2 + $0x30] sm:$0xff] (!%p3063_p4) }
 0x21e   : > { %v1939_v55 = vadd.f32 %v1938_v50, %v1931_v53  ;;  %v3532_v56 = vpop.f32.mrb[29].mxu1  ;;  %v1834_v57 = vpop.f32.mrb[30].mxu0  ;;  %v4643_v53 = vld [vmem:[#allocation2 + $0x38] sm:$0xff] (!%p3063_p4)  ;;  %v2140_v54 = vmax.f32 (!%p3063_p4), %v4640_v51, 1.0 }
 0x21f   : > { %1840 = vst [vmem:[#allocation2 + $0x70] sm:$0xff] %v1839_v52  ;;  %v1934_v58 = vpop.f32.mrb[30].mxu1  ;;  %v3513_v59 = vpop.f32.mrb[31].mxu0  ;;  %v2115_v52 = vmax.f32 (!%p3063_p4), %v4633_v47, 1.0 }
 0x220   : > { %1940 = vst [vmem:[#allocation2 + $0x78] sm:$0xff] %v1939_v55  ;;  %v3533_v60 = vpop.f32.mrb[31].mxu1  ;;  %v4619_v38 = vpop.permute.xlu1 (!%p3063_p4), %2003  ;;  %v2006_v55 = vlaneseq (!%p3063_p4)  ;;  %v4650_v58 = vld [vmem:[#allocation2 + $0x40] sm:$0xff] (!%p3063_p4)  ;;  %v2165_v59 = vmax.f32 (!%p3063_p4), %v4643_v53, 1.0 }
 0x221   : > { %v4625_v42 = vpop.permute.xlu0 %2023  ;;  %3640 = vrcp.f32 %v2115_v52  ;;  %v3631_v60 = vpop.eup %3630  ;;  %v2190_v62 = vmax.f32 %v4650_v58, 1.0 }
 0x222   : > { %3642 = vrcp.f32 %v2140_v54  ;;  %v3633_v63 = vpop.eup %3632  ;;  %v2007_v0 = vshrl.u32 %v2006_v55, 7  ;;  %v1993_v4 = vrot.slane %v3631_v60, 1 }
 0x223   : > { %3644 = vrcp.f32 %v2165_v59  ;;  %v3635_v6 = vpop.eup %3634  ;;  %v2018_v8 = vrot.slane %v3633_v63, 1 }
 0x224   : > { %v4627_v43 = vpop.permute.xlu1 %2028  ;;  %3646 = vrcp.f32 %v2190_v62  ;;  %v3637_v10 = vpop.eup %3636  ;;  %v4666_v11 = vsub.s32 0, %v2007_v0  ;;  %v1995_v16 = vmul.f32 %v1993_v4, %v1989_v34  ;;  %v2043_v17 = vrot.slane %v3635_v6, 1 }
 0x225   : > { %v4636_v49 = vpop.permute.xlu0 %2048  ;;  %v3639_v15 = vpop.eup %3638  ;;  %3648 = vrcp.f32 %v2215_v5  ;;  %v2020_v21 = vmul.f32 %v2018_v8, %v2014_v35  ;;  %v2068_v22 = vrot.slane %v3637_v10, 1 }
 0x226   : > { %3650 = vrcp.f32 %v2240_v9  ;;  %v2093_v24 = vrot.slane %v3639_v15, 1  ;;  %v4682_v27 = vld [vmem:[#allocation2 + $0x70] sm:$0xff]  ;;  %v2009_v29 = vrot.slane %v1995_v16, %v4666_v11  ;;  %v2045_v30 = vmul.f32 %v2043_v17, %v4621_v39 }
 0x227   : > { %3652 = vrcp.f32 %v2265_v18  ;;  %v2034_v36 = vrot.slane %v2020_v21, %v4666_v11  ;;  %v2070_v40 = vmul.f32 %v2068_v22, %v4623_v41  ;;  %v2340_v44 = vmax.f32 %v4682_v27, 1.0  ;;  %v4690_v46 = vld [vmem:[#allocation2 + $0x78] sm:$0xff] }
 0x228   : > { %v4638_v50 = vpop.permute.xlu1 %2053  ;;  %3654 = vrcp.f32 %v2290_v23  ;;  %v2095_v48 = vmul.f32 %v2093_v24, %v4630_v45  ;;  %v2010_v59 = vmul.f32 %v2009_v29, %v4615_v33  ;;  %v2011_v60 = vmul.f32 %v2009_v29, %v4619_v38 }
 0x229   : > { %v4646_v56 = vpop.permute.xlu0 %2073  ;;  %v2059_v62 = vrot.slane %v2045_v30, %v4666_v11  ;;  %3656 = vrcp.f32 %v2315_v31  ;;  %v2365_v0 = vmax.f32 %v4690_v46, 1.0  ;;  %v2035_v45 = vmul.f32 %v2034_v36, %v4625_v42 }
 0x22a   : > { %v2036_v5 = vmul.f32 %v2034_v36, %v4627_v43  ;;  %v2084_v6 = vrot.slane %v2070_v40, %v4666_v11  ;;  %3658 = vrcp.f32 %v2340_v44  ;;  %v2109_v33 = vrot.slane %v2095_v48, %v4666_v11 }
 0x22b   : > { %v3641_v20 = vpop.eup %3640  ;;  %v2013_v16 = vadd.f32 %v2011_v60, %v4617_v37  ;;  %v2060_v17 = vmul.f32 %v2059_v62, %v4636_v49  ;;  %v2061_v42 = vmul.f32 %v2059_v62, %v4638_v50  ;;  %3660 = vrcp.f32 %v2365_v0 }
 0x22c   : > { %v4648_v57 = vpop.permute.xlu1 %2078  ;;  %v3643_v28 = vpop.eup %3642  ;;  %v2118_v34 = vrot.slane %v3641_v20, 1  ;;  %v2085_v23 = vmul.f32 %v2084_v6, %v4646_v56 }
 0x22d   : > { %v4656_v1 = vpop.permute.xlu0 %2098  ;;  %v3645_v35 = vpop.eup %3644  ;;  %v2143_v52 = vrot.slane %v3643_v28, 1  ;;  %v2038_v22 = vadd.f32 %v2036_v5, %v2013_v16  ;;  %v2086_v24 = vmul.f32 %v2084_v6, %v4648_v57 }
 0x22e   : > { %v3647_v55 = vpop.eup %3646  ;;  %v2120_v41 = vmul.f32 %v2118_v34, %v4633_v47  ;;  %v2168_v63 = vrot.slane %v3645_v35, 1  ;;  %v2012_v47 = vadd.f32 %v2010_v59, %v4613_v32 }
 0x22f   : > { %v3649_v4 = vpop.eup %3648  ;;  %v2145_v38 = vmul.f32 %v2143_v52, %v4640_v51  ;;  %v2193_v8 = vrot.slane %v3647_v55, 1  ;;  %v2063_v31 = vadd.f32 %v2061_v42, %v2038_v22 }
 0x230   : > { %v4658_v2 = vpop.permute.xlu1 %2103  ;;  %v3651_v15 = vpop.eup %3650  ;;  %v2134_v43 = vrot.slane %v2120_v41, %v4666_v11  ;;  %v2170_v18 = vmul.f32 %v2168_v63, %v4643_v53  ;;  %v2218_v20 = vrot.slane %v3649_v4, 1  ;;  %v2037_v51 = vadd.f32 %v2035_v45, %v2012_v47 }
 0x231   : > { %v4668_v12 = vpop.permute.xlu0 %2123  ;;  %v3653_v21 = vpop.eup %3652  ;;  %v2159_v32 = vrot.slane %v2145_v38, %v4666_v11  ;;  %v2195_v37 = vmul.f32 %v2193_v8, %v4650_v58  ;;  %v2243_v50 = vrot.slane %v3651_v15, 1  ;;  %v2110_v53 = vmul.f32 %v2109_v33, %v4656_v1 }
 0x232   : > { %v3655_v29 = vpop.eup %3654  ;;  %v2062_v30 = vadd.f32 %v2060_v17, %v2037_v51  ;;  %v2111_v34 = vmul.f32 %v2109_v33, %v4658_v2  ;;  %v2184_v35 = vrot.slane %v2170_v18, %v4666_v11  ;;  %v2220_v56 = vmul.f32 %v2218_v20, %v4653_v61 }
 0x233   : > { %v2268_v36 = vrot.slane %v3653_v21, 1  ;;  %v3657_v57 = vpop.eup %3656  ;;  %v2088_v44 = vadd.f32 %v2086_v24, %v2063_v31  ;;  %v2135_v58 = vmul.f32 %v2134_v43, %v4668_v12  ;;  %v2209_v52 = vrot.slane %v2195_v37, %v4666_v11 }
 0x234   : > { %v4670_v13 = vpop.permute.xlu1 %2128  ;;  %v2087_v40 = vadd.f32 %v2085_v23, %v2062_v30  ;;  %v2245_v55 = vmul.f32 %v2243_v50, %v4660_v3  ;;  %v2293_v60 = vrot.slane %v3655_v29, 1  ;;  %v3659_v2 = vpop.eup %3658  ;;  %v2234_v0 = vrot.slane %v2220_v56, %v4666_v11 }
 0x235   : > { %v4678_v25 = vpop.permute.xlu0 %2148  ;;  %v2136_v48 = vmul.f32 %v2134_v43, %v4670_v13  ;;  %v2113_v41 = vadd.f32 %v2111_v34, %v2088_v44  ;;  %v2270_v12 = vmul.f32 %v2268_v36, %v4663_v7  ;;  %v2318_v4 = vrot.slane %v3657_v57, 1  ;;  %v3661_v6 = vpop.eup %3660 }
 0x236   : > { %v2112_v62 = vadd.f32 %v2110_v53, %v2087_v40  ;;  %v2160_v61 = vmul.f32 %v2159_v32, %v4678_v25  ;;  %v2259_v33 = vrot.slane %v2245_v55, %v4666_v11  ;;  %v2295_v25 = vmul.f32 %v2293_v60, %v4672_v14 }
 0x237   : > { %v2138_v45 = vadd.f32 %v2136_v48, %v2113_v41  ;;  %v2343_v15 = vrot.slane %v3659_v2, 1  ;;  %v2284_v7 = vrot.slane %v2270_v12, %v4666_v11  ;;  %v2320_v42 = vmul.f32 %v2318_v4, %v4675_v19 }
 0x238   : > { %v2137_v13 = vadd.f32 %v2135_v58, %v2112_v62  ;;  %v2309_v20 = vrot.slane %v2295_v25, %v4666_v11  ;;  %v2368_v14 = vrot.slane %v3661_v6, 1 }
 0x239   : > { %v2345_v22 = vmul.f32 %v2343_v15, %v4682_v27 }
 0x23a   : > { %v2370_v31 = vmul.f32 %v2368_v14, %v4690_v46 }
 0x23c   : > { %v2384_v48 = vrot.slane %v2370_v31, %v4666_v11 }
 0x23d   : > { %v4680_v26 = vpop.permute.xlu1 %2153 }
 0x23e   : > { %v4693_v54 = vpop.permute.xlu0 %2173  ;;  %v2161_v63 = vmul.f32 %v2159_v32, %v4680_v26  ;;  %v2162_v26 = vadd.f32 %v2160_v61, %v2137_v13 }
 0x23f   : > { %v2185_v5 = vmul.f32 %v2184_v35, %v4693_v54 }
 0x240   : > { %v2163_v47 = vadd.f32 %v2161_v63, %v2138_v45 }
 0x241   : > { %v4695_v39 = vpop.permute.xlu1 %2178  ;;  %v2187_v43 = vadd.f32 %v2185_v5, %v2162_v26 }
 0x242   : > { %v2199_v9 = vpop.permute.xlu0 %2198  ;;  %v2186_v3 = vmul.f32 %v2184_v35, %v4695_v39 }
 0x243   : > { %v2210_v16 = vmul.f32 %v2209_v52, %v2199_v9 }
 0x244   : > { %v2188_v54 = vadd.f32 %v2186_v3, %v2163_v47 }
 0x245   : > { %v2204_v10 = vpop.permute.xlu1 %2203  ;;  %v2212_v23 = vadd.f32 %v2210_v16, %v2187_v43 }
 0x246   : > { %v2224_v49 = vpop.permute.xlu0 %2223  ;;  %v2211_v17 = vmul.f32 %v2209_v52, %v2204_v10  ;;  %v2334_v10 = vrot.slane %v2320_v42, %v4666_v11 }
 0x247   : > { %v2235_v18 = vmul.f32 %v2234_v0, %v2224_v49 }
 0x248   : > { %v2213_v24 = vadd.f32 %v2211_v17, %v2188_v54 }
 0x249   : > { %v2229_v28 = vpop.permute.xlu1 %2228  ;;  %v2237_v37 = vadd.f32 %v2235_v18, %v2212_v23 }
 0x24a   : > { %v2249_v59 = vpop.permute.xlu0 %2248  ;;  %v2236_v39 = vmul.f32 %v2234_v0, %v2229_v28  ;;  %v2359_v28 = vrot.slane %v2345_v22, %v4666_v11 }
 0x24b   : > { %v2260_v32 = vmul.f32 %v2259_v33, %v2249_v59 }
 0x24c   : > { %v2238_v50 = vadd.f32 %v2236_v39, %v2213_v24 }
 0x24d   : > { %v2254_v1 = vpop.permute.xlu1 %2253  ;;  %v2262_v53 = vadd.f32 %v2260_v32, %v2237_v37 }
 0x24e   : > { %v2274_v38 = vpop.permute.xlu0 %2273  ;;  %v2261_v9 = vmul.f32 %v2259_v33, %v2254_v1 }
 0x24f   : > { %v2285_v19 = vmul.f32 %v2284_v7, %v2274_v38 }
 0x250   : > { %v2263_v34 = vadd.f32 %v2261_v9, %v2238_v50 }
 0x251   : > { %v2279_v8 = vpop.permute.xlu1 %2278  ;;  %v2287_v56 = vadd.f32 %v2285_v19, %v2262_v53 }
 0x252   : > { %v2299_v21 = vpop.permute.xlu0 %2298  ;;  %v2286_v29 = vmul.f32 %v2284_v7, %v2279_v8 }
 0x253   : > { %v2310_v27 = vmul.f32 %v2309_v20, %v2299_v21 }
 0x254   : > { %v2288_v36 = vadd.f32 %v2286_v29, %v2263_v34 }
 0x255   : > { %v2312_v52 = vadd.f32 %v2310_v27, %v2287_v56 }
 0x25d   : > { %v2304_v51 = vpop.permute.xlu1 %2303 }
 0x25e   : > { %v2324_v30 = vpop.permute.xlu0 %2323  ;;  %v2311_v35 = vmul.f32 %v2309_v20, %v2304_v51 }
 0x25f   : > { %v2335_v57 = vmul.f32 %v2334_v10, %v2324_v30 }
 0x260   : > { %v2313_v55 = vadd.f32 %v2311_v35, %v2288_v36 }
 0x261   : > { %v2329_v49 = vpop.permute.xlu1 %2328  ;;  %v2337_v60 = vadd.f32 %v2335_v57, %v2312_v52 }
 0x262   : > { %v2336_v40 = vmul.f32 %v2334_v10, %v2329_v49  ;;  %v2349_v44 = vpop.permute.xlu0 %2348 }
 0x263   : > { %v2360_v59 = vmul.f32 %v2359_v28, %v2349_v44 }
 0x264   : > { %v2338_v46 = vadd.f32 %v2336_v40, %v2313_v55 }
 0x265   : > { %v2354_v58 = vpop.permute.xlu1 %2353  ;;  %v2362_v41 = vadd.f32 %v2360_v59, %v2337_v60 }
 0x266   : > { %v2361_v1 = vmul.f32 %v2359_v28, %v2354_v58  ;;  %v2374_v2 = vpop.permute.xlu0 %2373 }
 0x267   : > { %v2385_v63 = vmul.f32 %v2384_v48, %v2374_v2 }
 0x268   : > { %v2363_v61 = vadd.f32 %v2361_v1, %v2338_v46 }
 0x269   : > { %v2379_v62 = vpop.permute.xlu1 %2378  ;;  %v2387_v12 = vadd.f32 %v2385_v63, %v2362_v41 }
 0x26a   : > { %v2386_v0 = vmul.f32 %v2384_v48, %v2379_v62 }
 0x26b   : > { %2389 = vst [vmem:[%s3899_s24] sm:$0xff] %v2387_v12 }
 0x26c   : > { %v2388_v4 = vadd.f32 %v2386_v0, %v2363_v61 }
 0x26e   : > { %2390 = vst [vmem:[%s3899_s24 + $0x8] sm:$0x1] %v2388_v4 }
 0x26f PF: > { %2397 = sbr.rel (!%p3861_p8) target bundleno = 631 (0x277), region = 86  ;;  %s3065_s29 = sshll.u32 (%p3861_p8), %s3732_s21, 2 }
 0x270   : > { %s2399_s5 = sadd.s32 (%p3861_p8), %s3728_s20, %s3065_s29 }
 0x271   : > { %s3066_s9 = sshll.u32 (%p3861_p8), %s2399_s5, 3 }
 0x272   : > { %v2431_v11 = vld [vmem:[%s3899_s24] sm:$0xff] (%p3861_p8)  ;;  %s2401_s27 = scalar_lea.vmem (%p3861_p8), %s4789_s4, %s3066_s9 }
 0x273   : > { %2432 = vst [vmem:[%s2401_s27] sm:$0xff] (%p3861_p8), %v2431_v11 }
 0x275   : > { %v2433_v13 = vld [vmem:[%s3899_s24 + $0x8] sm:$0xff] (%p3861_p8) }
 0x276   : > { %2434 = vst [vmem:[%s2401_s27 + $0x10] sm:$0xff] %v2433_v13 }
 0x277 PF: > { %s14_s25 = sadd.s32 1, %s3748_s25   ;;  %s4802_s21 = sld [smem:[#allocation5_spill]] }
 0x278   : > { %p11_p5 = scmp.ge.s32.totalorder %s14_s25, 10   ;;  %s4803_s24 = sld [smem:[#allocation6_spill]] }
 0x279   : > { %s4804_s8 = sld [smem:[#allocation7_spill]]  ;;  %s4805_s11 = sld [smem:[#allocation8_spill]] }
 0x27a   : > { %s4806_s15 = smov %s3712_s16  ;;  %s4807_s16 = smov %s3869_s14 }
 0x27b   : > { %s4808_s17 = smov %s3720_s18  ;;  %s4809_s18 = smov %s3872_s28 }
 0x27c   : > { %s4810_s19 = smov %s3736_s22  ;;  %s4811_s20 = smov %s3740_s23 }
 0x27d   :  { %13 = sbr.rel (!%p11_p5) target bundleno = 8 (0x8), region = 173 }
 0x27e   : > { %s4812_s22 = smov %s4803_s24 }
 0x27f   : > { %s4813_s23 = smov %s4804_s8  ;;  %s4814_s24 = smov %s4805_s11 }

</bundles_post_ra>
